<compile_context>
chip_gen: v7x
topology: tpu7x:2x2x1
jax: 0.10.0
libtpu: 0.0.40
codegen_flags: <defaults>
</compile_context>

<pallas_src>
import jax
import jax.numpy as jnp
from jax.experimental import pallas as pl
from jax.experimental.pallas import tpu as pltpu

# ---- stand-ins for the external `settings` module -------------------------
HIDDEN      = 32   # settings.layer_size
EMBED       = 16   # settings.embedding_size
ALPHABET    = 8    # settings.alphabet_size
N_LAYERS    = 2    # settings.n_layers
MAX_SEQ_LEN = 8    # settings.max_len
N_SAMPLES   = 16   # forward(..., n_samples=16) default
BATCH       = 2


# ---------------------------------------------------------------------------
# Weight / bias packing (pure JAX, done once in the wrapper)
# ---------------------------------------------------------------------------
def _pack_kernel_params(params):
    H, E, A = HIDDEN, EMBED, ALPHABET
    f32 = jnp.float32

    wih0, whh0 = params["wih0"], params["whh0"]            # (E,3H), (H,3H)
    wih1, whh1 = params["wih1"], params["whh1"]            # (H,3H), (H,3H)
    bih0 = params["bih0"].reshape(-1)
    bhh0 = params["bhh0"].reshape(-1)
    bih1 = params["bih1"].reshape(-1)
    bhh1 = params["bhh1"].reshape(-1)

    # Layer 0: 4-block column layout [r | z | i_n | h_n] (each H wide) so that
    # the x-matmul (and ALL layer-0 biases) can be hoisted out of the loop
    # while keeping the exact PyTorch n-gate:  n = tanh(i_n + r*(h_n + b_hn)).
    w0i = jnp.zeros((E, 4 * H), f32).at[:, :3 * H].set(wih0)                 # [ir|iz|in|0]
    w0h = jnp.concatenate(
        [whh0[:, :2 * H], jnp.zeros((H, H), f32), whh0[:, 2 * H:]], axis=1)  # [hr|hz|0|hn]
    b0 = jnp.concatenate(
        [bih0[:2 * H] + bhh0[:2 * H], bih0[2 * H:], bhh0[2 * H:]])           # (4H,)

    # Layer 1: fuse the x(=h0) and h matmuls into one (2H,4H) weight.
    w1 = jnp.zeros((2 * H, 4 * H), f32)
    w1 = w1.at[:H, :2 * H].set(wih1[:, :2 * H])          # r,z from layer-0 output
    w1 = w1.at[H:, :2 * H].set(whh1[:, :2 * H])          # r,z from own hidden
    w1 = w1.at[:H, 2 * H:3 * H].set(wih1[:, 2 * H:])     # i_n
    w1 = w1.at[H:, 3 * H:].set(whh1[:, 2 * H:])          # h_n
    b1 = jnp.concatenate(
        [bih1[:2 * H] + bhh1[:2 * H], bih1[2 * H:], bhh1[2 * H:]])           # (4H,)

    # Pack everything into one weight blob and one bias blob (2 DMAs).
    w_blob = jnp.zeros((E + 4 * H, 4 * H), f32)          # (144, 128)
    w_blob = w_blob.at[0:E].set(w0i)
    w_blob = w_blob.at[E:E + H].set(w0h)
    w_blob = w_blob.at[E + H:E + 3 * H].set(w1)
    w_blob = w_blob.at[E + 3 * H:E + 4 * H, :A].set(params["wp"])

    b_blob = jnp.zeros((8, 4 * H), f32)                  # (8, 128) = one vreg
    b_blob = b_blob.at[0].set(b0)
    b_blob = b_blob.at[1].set(b1)
    b_blob = b_blob.at[2, :A].set(params["bp"].reshape(-1))
    return w_blob, b_blob


# ---------------------------------------------------------------------------
# Pallas kernel: the whole forward recurrence in one invocation
# ---------------------------------------------------------------------------
def _run_pallas_gru(emb_flat, w_blob, b_blob, N):
    """emb_flat: (S*N, E) time-major embedded inputs. Returns (S*N, A) probs."""
    S, H, E, A = MAX_SEQ_LEN, HIDDEN, EMBED, ALPHABET

    def kernel(x_ref, w_ref, b_ref, out_ref, gi0_scr, h_all_scr):
        # ---- time-parallel precompute: layer-0 input gates for all steps ----
        w0i = w_ref[0:E, :]                                    # (E, 4H)
        gi0_scr[...] = (
            jnp.dot(x_ref[...], w0i, preferred_element_type=jnp.float32)
            + b_ref[0:1, :])                                   # (S*N, 4H)

        # ---- recurrent weights / biases, loaded & broadcast once ----
        w0h = w_ref[E:E + H, :]                                # (H, 4H)
        w1 = w_ref[E + H:E + 3 * H, :]                         # (2H, 4H)
        wp = w_ref[E + 3 * H:E + 4 * H, 0:A]                   # (H, A)
        b1 = jnp.broadcast_to(b_ref[1:2, :], (N, 4 * H))       # hoisted broadcast
        bp = b_ref[2:3, 0:A]                                   # (1, A)

        h0 = jnp.zeros((N, H), jnp.float32)
        h1 = jnp.zeros((N, H), jnp.float32)

        # ---- fully-unrolled static time loop (S=8): only the h-matmuls are
        #      on the serial critical path (2 MXU pushes / step) ----
        for t in range(S):
            # layer 0: gates = precomputed input part + h0 @ W_hh0(packed)
            g0 = gi0_scr[t * N:(t + 1) * N, :] + jnp.dot(
                h0, w0h, preferred_element_type=jnp.float32)
            r0 = jax.nn.sigmoid(g0[:, :H])
            z0 = jax.nn.sigmoid(g0[:, H:2 * H])
            n0 = jnp.tanh(g0[:, 2 * H:3 * H] + r0 * g0[:, 3 * H:])
            h0 = (1.0 - z0) * n0 + z0 * h0

            # layer 1: single fused matmul on [h0_new | h1]
            g1 = jnp.dot(jnp.concatenate([h0, h1], axis=-1), w1,
                         preferred_element_type=jnp.float32) + b1
            r1 = jax.nn.sigmoid(g1[:, :H])
            z1 = jax.nn.sigmoid(g1[:, H:2 * H])
            n1 = jnp.tanh(g1[:, 2 * H:3 * H] + r1 * g1[:, 3 * H:])
            h1 = (1.0 - z1) * n1 + z1 * h1

            h_all_scr[t * N:(t + 1) * N, :] = h1

        # ---- time-parallel epilogue: one batched projection + sigmoid ----
        logits = jnp.dot(h_all_scr[...], wp,
                         preferred_element_type=jnp.float32) + bp
        out_ref[...] = jax.nn.sigmoid(logits)

    return pl.pallas_call(
        kernel,
        out_shape=jax.ShapeDtypeStruct((S * N, A), jnp.float32),
        grid=(1,),
        in_specs=[
            pl.BlockSpec((S * N, E), lambda i: (0, 0)),        # embedded inputs
            pl.BlockSpec(w_blob.shape, lambda i: (0, 0)),      # packed weights
            pl.BlockSpec(b_blob.shape, lambda i: (0, 0)),      # packed biases
        ],
        out_specs=pl.BlockSpec((S * N, A), lambda i: (0, 0)),
        scratch_shapes=[
            pltpu.VMEM((S * N, 4 * H), jnp.float32),           # gi0 precompute
            pltpu.VMEM((S * N, H), jnp.float32),               # stacked layer-1 hiddens
        ],
        compiler_params=pltpu.CompilerParams(
            dimension_semantics=("arbitrary",)),
    )(emb_flat, w_blob, b_blob)


# ---------------------------------------------------------------------------
# Wrapper: embedding lookup + padding column (glue), Pallas GRU, final reshape
# ---------------------------------------------------------------------------
def bayes_rnn_forward(tokens, params, n_samples=N_SAMPLES):
    """tokens: (N, L) int32 with N = n_samples * batch. Returns
    (n_samples, batch, MAX_SEQ_LEN, ALPHABET) float32 probabilities."""
    N = tokens.shape[0]
    batch = N // n_samples
    S = MAX_SEQ_LEN
    # x = torch.cat([padding, x], 1); only the first S inputs influence the
    # first S outputs (the original module discards the rest), so run S steps.
    padded = jnp.concatenate(
        [jnp.zeros((N, 1), dtype=tokens.dtype), tokens], axis=1)[:, :S]  # (N, S)
    emb = params["embedding"][padded].astype(jnp.float32)                # (N, S, E)
    emb_flat = jnp.transpose(emb, (1, 0, 2)).reshape(S * N, EMBED)       # time-major

    w_blob, b_blob = _pack_kernel_params(params)
    probs = _run_pallas_gru(emb_flat, w_blob, b_blob, N)                 # (S*N, A)

    p = jnp.transpose(probs.reshape(S, N, ALPHABET), (1, 0, 2))          # (N, S, A)
    return p.reshape(n_samples, batch, S, ALPHABET)


# ---------------------------------------------------------------------------
# Pure-JAX reference (for correctness check of the kernel)
# ---------------------------------------------------------------------------
def _ref_forward(tokens, params, n_samples=N_SAMPLES):
    N = tokens.shape[0]
    batch = N // n_samples
    padded = jnp.concatenate(
        [jnp.zeros((N, 1), dtype=tokens.dtype), tokens], axis=1)
    emb = params["embedding"][padded].astype(jnp.float32)                # (N, T, E)
    seq = jnp.transpose(emb, (1, 0, 2))                                  # (T, N, E)

    def run_layer(inputs, wih, whh, bih, bhh):
        def step(h, x_t):
            gi = x_t @ wih + bih
            gh = h @ whh + bhh
            H = HIDDEN
            r = jax.nn.sigmoid(gi[:, :H] + gh[:, :H])
            z = jax.nn.sigmoid(gi[:, H:2 * H] + gh[:, H:2 * H])
            n = jnp.tanh(gi[:, 2 * H:] + r * gh[:, 2 * H:])
            h_new = (1.0 - z) * n + z * h
            return h_new, h_new
        h0 = jnp.zeros((N, HIDDEN), jnp.float32)
        _, outs = jax.lax.scan(step, h0, inputs)
        return outs                                                      # (T, N, H)

    out = run_layer(seq, params["wih0"], params["whh0"], params["bih0"], params["bhh0"])
    out = run_layer(out, params["wih1"], params["whh1"], params["bih1"], params["bhh1"])
    p = jax.nn.sigmoid(out @ params["wp"] + params["bp"])                # (T, N, A)
    p = jnp.transpose(p[:MAX_SEQ_LEN], (1, 0, 2))
    return p.reshape(n_samples, batch, MAX_SEQ_LEN, ALPHABET)


# ---------------------------------------------------------------------------
# Deterministic parameter construction (mirrors the PyTorch module shapes;
# weights stored pre-transposed as (in, out) for x @ W)
# ---------------------------------------------------------------------------
def make_params(key):
    ks = jax.random.split(key, 12)
    s = 0.1
    emb = s * jax.random.normal(ks[0], (ALPHABET, EMBED), jnp.float32)
    emb = emb.at[0].set(0.0)                                             # padding_idx=0
    params = {
        "embedding": emb,
        # layer 0: input EMBED
        "wih0": s * jax.random.normal(ks[1], (EMBED, 3 * HIDDEN), jnp.float32),
        "whh0": s * jax.random.normal(ks[2], (HIDDEN, 3 * HIDDEN), jnp.float32),
        "bih0": s * jax.random.normal(ks[3], (1, 3 * HIDDEN), jnp.float32),
        "bhh0": s * jax.random.normal(ks[4], (1, 3 * HIDDEN), jnp.float32),
        # layer 1: input HIDDEN
        "wih1": s * jax.random.normal(ks[5], (HIDDEN, 3 * HIDDEN), jnp.float32),
        "whh1": s * jax.random.normal(ks[6], (HIDDEN, 3 * HIDDEN), jnp.float32),
        "bih1": s * jax.random.normal(ks[7], (1, 3 * HIDDEN), jnp.float32),
        "bhh1": s * jax.random.normal(ks[8], (1, 3 * HIDDEN), jnp.float32),
        # projection Linear(HIDDEN -> ALPHABET)
        "wp": s * jax.random.normal(ks[9], (HIDDEN, ALPHABET), jnp.float32),
        "bp": s * jax.random.normal(ks[10], (1, ALPHABET), jnp.float32),
    }
    return params


if __name__ == "__main__":
    key = jax.random.PRNGKey(0)
    k_par, k_tok = jax.random.split(key)
    params = make_params(k_par)

    N_total = N_SAMPLES * BATCH                                          # 32
    seq_len = MAX_SEQ_LEN                                                # 8
    tokens = jax.random.randint(k_tok, (N_total, seq_len), 0, ALPHABET,
                                dtype=jnp.int32)

    forward = jax.jit(lambda toks, prm: bayes_rnn_forward(toks, prm))
    out = jax.block_until_ready(forward(tokens, params))

    ref = jax.block_until_ready(_ref_forward(tokens, params))

    assert out.shape == (N_SAMPLES, BATCH, MAX_SEQ_LEN, ALPHABET), out.shape
    assert out.dtype == jnp.float32
    if not jnp.allclose(out, ref, atol=5e-3, rtol=5e-3):
        raise AssertionError("Pallas kernel output mismatch vs JAX reference")

    print("KERNEL_OK")
</pallas_src>

<mosaic_0001>
module attributes {stable_mosaic.version = 11 : i64} {
  func.func @kernel(%arg0: i32, %arg1: memref<256x16xf32, #tpu.memory_space<vmem>>, %arg2: memref<144x128xf32, #tpu.memory_space<vmem>>, %arg3: memref<8x128xf32, #tpu.memory_space<vmem>>, %arg4: memref<256x8xf32, #tpu.memory_space<vmem>>, %arg5: memref<256x128xf32, #tpu.memory_space<vmem>>, %arg6: memref<256x32xf32, #tpu.memory_space<vmem>>) attributes {dimension_semantics = [#tpu.dimension_semantics<arbitrary>], iteration_bounds = array<i64: 1>, scalar_prefetch = 0 : i64, scratch_operands = 2 : i64, tpu.core_type = #tpu.core_type<tc>, window_params = [{pipeline_mode = #tpu.pipeline_mode<synchronous>, transform_indices = @transform_0, window_bounds = array<i64: 256, 16>}, {pipeline_mode = #tpu.pipeline_mode<synchronous>, transform_indices = @transform_1, window_bounds = array<i64: 144, 128>}, {pipeline_mode = #tpu.pipeline_mode<synchronous>, transform_indices = @transform_2, window_bounds = array<i64: 8, 128>}, {pipeline_mode = #tpu.pipeline_mode<synchronous>, transform_indices = @transform_3, window_bounds = array<i64: 256, 8>}]} {
    %c0 = arith.constant 0 : index
    %c0_0 = arith.constant 0 : index
    %0 = vector.load %arg2[%c0, %c0_0] : memref<144x128xf32, #tpu.memory_space<vmem>>, vector<16x128xf32>
    %c0_1 = arith.constant 0 : index
    %c0_2 = arith.constant 0 : index
    %1 = vector.load %arg1[%c0_1, %c0_2] : memref<256x16xf32, #tpu.memory_space<vmem>>, vector<256x16xf32>
    %cst = arith.constant dense<0.000000e+00> : vector<256x128xf32>
    %2 = tpu.matmul %1, %0, %cst {dimension_numbers = #tpu.dot_dimension_numbers<[1], [0], [0], [1], [0, 0, 1, 1], [], []>} : vector<256x16xf32>, vector<16x128xf32>, vector<256x128xf32> -> vector<256x128xf32>
    %c0_3 = arith.constant 0 : index
    %c0_4 = arith.constant 0 : index
    %3 = vector.load %arg3[%c0_3, %c0_4] : memref<8x128xf32, #tpu.memory_space<vmem>>, vector<1x128xf32>
    %4 = vector.broadcast %3 : vector<1x128xf32> to vector<256x128xf32>
    %5 = arith.addf %2, %4 : vector<256x128xf32>
    %c0_5 = arith.constant 0 : index
    %c0_6 = arith.constant 0 : index
    %6 = vector.load %arg5[%c0_5, %c0_6] : memref<256x128xf32, #tpu.memory_space<vmem>>, vector<256x128xf32>
    tpu.vector_store %arg5[%c0_5, %c0_6], %5 {strides = array<i32>} : memref<256x128xf32, #tpu.memory_space<vmem>>, vector<256x128xf32>,
    %c16 = arith.constant 16 : index
    %c0_7 = arith.constant 0 : index
    %7 = vector.load %arg2[%c16, %c0_7] : memref<144x128xf32, #tpu.memory_space<vmem>>, vector<32x128xf32>
    %c48 = arith.constant 48 : index
    %c0_8 = arith.constant 0 : index
    %8 = vector.load %arg2[%c48, %c0_8] : memref<144x128xf32, #tpu.memory_space<vmem>>, vector<64x128xf32>
    %c112 = arith.constant 112 : index
    %c0_9 = arith.constant 0 : index
    %9 = vector.load %arg2[%c112, %c0_9] : memref<144x128xf32, #tpu.memory_space<vmem>>, vector<32x8xf32>
    %c1 = arith.constant 1 : index
    %c0_10 = arith.constant 0 : index
    %10 = vector.load %arg3[%c1, %c0_10] : memref<8x128xf32, #tpu.memory_space<vmem>>, vector<1x128xf32>
    %11 = vector.shape_cast %10 : vector<1x128xf32> to vector<1x128xf32>
    %12 = vector.broadcast %11 : vector<1x128xf32> to vector<32x128xf32>
    %c2 = arith.constant 2 : index
    %c0_11 = arith.constant 0 : index
    %13 = vector.load %arg3[%c2, %c0_11] : memref<8x128xf32, #tpu.memory_space<vmem>>, vector<1x8xf32>
    %cst_12 = arith.constant 0.000000e+00 : f32
    %14 = vector.broadcast %cst_12 : f32 to vector<32x32xf32>
    %cst_13 = arith.constant 0.000000e+00 : f32
    %15 = vector.broadcast %cst_13 : f32 to vector<32x32xf32>
    %c0_14 = arith.constant 0 : index
    %c0_15 = arith.constant 0 : index
    %16 = vector.load %arg5[%c0_14, %c0_15] : memref<256x128xf32, #tpu.memory_space<vmem>>, vector<32x128xf32>
    %cst_16 = arith.constant dense<0.000000e+00> : vector<32x128xf32>
    %17 = tpu.matmul %14, %7, %cst_16 {dimension_numbers = #tpu.dot_dimension_numbers<[1], [0], [0], [1], [0, 0, 1, 1], [], []>} : vector<32x32xf32>, vector<32x128xf32>, vector<32x128xf32> -> vector<32x128xf32>
    %18 = arith.addf %16, %17 : vector<32x128xf32>
    %19 = vector.extract_strided_slice %18 {offsets = [0, 0], sizes = [32, 32], strides = [1, 1]} : vector<32x128xf32> to vector<32x32xf32>
    %20 = arith.negf %19 : vector<32x32xf32>
    %21 = math.exp %20 : vector<32x32xf32>
    %cst_17 = arith.constant 1.000000e+00 : f32
    %22 = vector.broadcast %cst_17 : f32 to vector<32x32xf32>
    %23 = arith.addf %22, %21 : vector<32x32xf32>
    %24 = arith.divf %22, %23 : vector<32x32xf32>
    %25 = vector.extract_strided_slice %18 {offsets = [0, 32], sizes = [32, 32], strides = [1, 1]} : vector<32x128xf32> to vector<32x32xf32>
    %26 = arith.negf %25 : vector<32x32xf32>
    %27 = math.exp %26 : vector<32x32xf32>
    %cst_18 = arith.constant 1.000000e+00 : f32
    %28 = vector.broadcast %cst_18 : f32 to vector<32x32xf32>
    %29 = arith.addf %28, %27 : vector<32x32xf32>
    %30 = arith.divf %28, %29 : vector<32x32xf32>
    %31 = vector.extract_strided_slice %18 {offsets = [0, 64], sizes = [32, 32], strides = [1, 1]} : vector<32x128xf32> to vector<32x32xf32>
    %32 = vector.extract_strided_slice %18 {offsets = [0, 96], sizes = [32, 32], strides = [1, 1]} : vector<32x128xf32> to vector<32x32xf32>
    %33 = arith.mulf %24, %32 : vector<32x32xf32>
    %34 = arith.addf %31, %33 : vector<32x32xf32>
    %35 = math.tanh %34 : vector<32x32xf32>
    %cst_19 = arith.constant 1.000000e+00 : f32
    %36 = vector.broadcast %cst_19 : f32 to vector<32x32xf32>
    %37 = arith.subf %36, %30 : vector<32x32xf32>
    %38 = arith.mulf %37, %35 : vector<32x32xf32>
    %39 = arith.mulf %30, %14 : vector<32x32xf32>
    %40 = arith.addf %38, %39 : vector<32x32xf32>
    %41 = tpu.concatenate %40, %15 in 1 : vector<32x32xf32>, vector<32x32xf32> -> vector<32x64xf32>
    %cst_20 = arith.constant dense<0.000000e+00> : vector<32x128xf32>
    %42 = tpu.matmul %41, %8, %cst_20 {dimension_numbers = #tpu.dot_dimension_numbers<[1], [0], [0], [1], [0, 0, 1, 1], [], []>} : vector<32x64xf32>, vector<64x128xf32>, vector<32x128xf32> -> vector<32x128xf32>
    %43 = arith.addf %42, %12 : vector<32x128xf32>
    %44 = vector.extract_strided_slice %43 {offsets = [0, 0], sizes = [32, 32], strides = [1, 1]} : vector<32x128xf32> to vector<32x32xf32>
    %45 = arith.negf %44 : vector<32x32xf32>
    %46 = math.exp %45 : vector<32x32xf32>
    %cst_21 = arith.constant 1.000000e+00 : f32
    %47 = vector.broadcast %cst_21 : f32 to vector<32x32xf32>
    %48 = arith.addf %47, %46 : vector<32x32xf32>
    %49 = arith.divf %47, %48 : vector<32x32xf32>
    %50 = vector.extract_strided_slice %43 {offsets = [0, 32], sizes = [32, 32], strides = [1, 1]} : vector<32x128xf32> to vector<32x32xf32>
    %51 = arith.negf %50 : vector<32x32xf32>
    %52 = math.exp %51 : vector<32x32xf32>
    %cst_22 = arith.constant 1.000000e+00 : f32
    %53 = vector.broadcast %cst_22 : f32 to vector<32x32xf32>
    %54 = arith.addf %53, %52 : vector<32x32xf32>
    %55 = arith.divf %53, %54 : vector<32x32xf32>
    %56 = vector.extract_strided_slice %43 {offsets = [0, 64], sizes = [32, 32], strides = [1, 1]} : vector<32x128xf32> to vector<32x32xf32>
    %57 = vector.extract_strided_slice %43 {offsets = [0, 96], sizes = [32, 32], strides = [1, 1]} : vector<32x128xf32> to vector<32x32xf32>
    %58 = arith.mulf %49, %57 : vector<32x32xf32>
    %59 = arith.addf %56, %58 : vector<32x32xf32>
    %60 = math.tanh %59 : vector<32x32xf32>
    %cst_23 = arith.constant 1.000000e+00 : f32
    %61 = vector.broadcast %cst_23 : f32 to vector<32x32xf32>
    %62 = arith.subf %61, %55 : vector<32x32xf32>
    %63 = arith.mulf %62, %60 : vector<32x32xf32>
    %64 = arith.mulf %55, %15 : vector<32x32xf32>
    %65 = arith.addf %63, %64 : vector<32x32xf32>
    %c0_24 = arith.constant 0 : index
    %c0_25 = arith.constant 0 : index
    %66 = vector.load %arg6[%c0_24, %c0_25] : memref<256x32xf32, #tpu.memory_space<vmem>>, vector<32x32xf32>
    tpu.vector_store %arg6[%c0_24, %c0_25], %65 {strides = array<i32>} : memref<256x32xf32, #tpu.memory_space<vmem>>, vector<32x32xf32>,
    %c32 = arith.constant 32 : index
    %c0_26 = arith.constant 0 : index
    %67 = vector.load %arg5[%c32, %c0_26] : memref<256x128xf32, #tpu.memory_space<vmem>>, vector<32x128xf32>
    %cst_27 = arith.constant dense<0.000000e+00> : vector<32x128xf32>
    %68 = tpu.matmul %40, %7, %cst_27 {dimension_numbers = #tpu.dot_dimension_numbers<[1], [0], [0], [1], [0, 0, 1, 1], [], []>} : vector<32x32xf32>, vector<32x128xf32>, vector<32x128xf32> -> vector<32x128xf32>
    %69 = arith.addf %67, %68 : vector<32x128xf32>
    %70 = vector.extract_strided_slice %69 {offsets = [0, 0], sizes = [32, 32], strides = [1, 1]} : vector<32x128xf32> to vector<32x32xf32>
    %71 = arith.negf %70 : vector<32x32xf32>
    %72 = math.exp %71 : vector<32x32xf32>
    %cst_28 = arith.constant 1.000000e+00 : f32
    %73 = vector.broadcast %cst_28 : f32 to vector<32x32xf32>
    %74 = arith.addf %73, %72 : vector<32x32xf32>
    %75 = arith.divf %73, %74 : vector<32x32xf32>
    %76 = vector.extract_strided_slice %69 {offsets = [0, 32], sizes = [32, 32], strides = [1, 1]} : vector<32x128xf32> to vector<32x32xf32>
    %77 = arith.negf %76 : vector<32x32xf32>
    %78 = math.exp %77 : vector<32x32xf32>
    %cst_29 = arith.constant 1.000000e+00 : f32
    %79 = vector.broadcast %cst_29 : f32 to vector<32x32xf32>
    %80 = arith.addf %79, %78 : vector<32x32xf32>
    %81 = arith.divf %79, %80 : vector<32x32xf32>
    %82 = vector.extract_strided_slice %69 {offsets = [0, 64], sizes = [32, 32], strides = [1, 1]} : vector<32x128xf32> to vector<32x32xf32>
    %83 = vector.extract_strided_slice %69 {offsets = [0, 96], sizes = [32, 32], strides = [1, 1]} : vector<32x128xf32> to vector<32x32xf32>
    %84 = arith.mulf %75, %83 : vector<32x32xf32>
    %85 = arith.addf %82, %84 : vector<32x32xf32>
    %86 = math.tanh %85 : vector<32x32xf32>
    %cst_30 = arith.constant 1.000000e+00 : f32
    %87 = vector.broadcast %cst_30 : f32 to vector<32x32xf32>
    %88 = arith.subf %87, %81 : vector<32x32xf32>
    %89 = arith.mulf %88, %86 : vector<32x32xf32>
    %90 = arith.mulf %81, %40 : vector<32x32xf32>
    %91 = arith.addf %89, %90 : vector<32x32xf32>
    %92 = tpu.concatenate %91, %65 in 1 : vector<32x32xf32>, vector<32x32xf32> -> vector<32x64xf32>
    %cst_31 = arith.constant dense<0.000000e+00> : vector<32x128xf32>
    %93 = tpu.matmul %92, %8, %cst_31 {dimension_numbers = #tpu.dot_dimension_numbers<[1], [0], [0], [1], [0, 0, 1, 1], [], []>} : vector<32x64xf32>, vector<64x128xf32>, vector<32x128xf32> -> vector<32x128xf32>
    %94 = arith.addf %93, %12 : vector<32x128xf32>
    %95 = vector.extract_strided_slice %94 {offsets = [0, 0], sizes = [32, 32], strides = [1, 1]} : vector<32x128xf32> to vector<32x32xf32>
    %96 = arith.negf %95 : vector<32x32xf32>
    %97 = math.exp %96 : vector<32x32xf32>
    %cst_32 = arith.constant 1.000000e+00 : f32
    %98 = vector.broadcast %cst_32 : f32 to vector<32x32xf32>
    %99 = arith.addf %98, %97 : vector<32x32xf32>
    %100 = arith.divf %98, %99 : vector<32x32xf32>
    %101 = vector.extract_strided_slice %94 {offsets = [0, 32], sizes = [32, 32], strides = [1, 1]} : vector<32x128xf32> to vector<32x32xf32>
    %102 = arith.negf %101 : vector<32x32xf32>
    %103 = math.exp %102 : vector<32x32xf32>
    %cst_33 = arith.constant 1.000000e+00 : f32
    %104 = vector.broadcast %cst_33 : f32 to vector<32x32xf32>
    %105 = arith.addf %104, %103 : vector<32x32xf32>
    %106 = arith.divf %104, %105 : vector<32x32xf32>
    %107 = vector.extract_strided_slice %94 {offsets = [0, 64], sizes = [32, 32], strides = [1, 1]} : vector<32x128xf32> to vector<32x32xf32>
    %108 = vector.extract_strided_slice %94 {offsets = [0, 96], sizes = [32, 32], strides = [1, 1]} : vector<32x128xf32> to vector<32x32xf32>
    %109 = arith.mulf %100, %108 : vector<32x32xf32>
    %110 = arith.addf %107, %109 : vector<32x32xf32>
    %111 = math.tanh %110 : vector<32x32xf32>
    %cst_34 = arith.constant 1.000000e+00 : f32
    %112 = vector.broadcast %cst_34 : f32 to vector<32x32xf32>
    %113 = arith.subf %112, %106 : vector<32x32xf32>
    %114 = arith.mulf %113, %111 : vector<32x32xf32>
    %115 = arith.mulf %106, %65 : vector<32x32xf32>
    %116 = arith.addf %114, %115 : vector<32x32xf32>
    %c32_35 = arith.constant 32 : index
    %c0_36 = arith.constant 0 : index
    %117 = vector.load %arg6[%c32_35, %c0_36] : memref<256x32xf32, #tpu.memory_space<vmem>>, vector<32x32xf32>
    tpu.vector_store %arg6[%c32_35, %c0_36], %116 {strides = array<i32>} : memref<256x32xf32, #tpu.memory_space<vmem>>, vector<32x32xf32>,
    %c64 = arith.constant 64 : index
    %c0_37 = arith.constant 0 : index
    %118 = vector.load %arg5[%c64, %c0_37] : memref<256x128xf32, #tpu.memory_space<vmem>>, vector<32x128xf32>
    %cst_38 = arith.constant dense<0.000000e+00> : vector<32x128xf32>
    %119 = tpu.matmul %91, %7, %cst_38 {dimension_numbers = #tpu.dot_dimension_numbers<[1], [0], [0], [1], [0, 0, 1, 1], [], []>} : vector<32x32xf32>, vector<32x128xf32>, vector<32x128xf32> -> vector<32x128xf32>
    %120 = arith.addf %118, %119 : vector<32x128xf32>
    %121 = vector.extract_strided_slice %120 {offsets = [0, 0], sizes = [32, 32], strides = [1, 1]} : vector<32x128xf32> to vector<32x32xf32>
    %122 = arith.negf %121 : vector<32x32xf32>
    %123 = math.exp %122 : vector<32x32xf32>
    %cst_39 = arith.constant 1.000000e+00 : f32
    %124 = vector.broadcast %cst_39 : f32 to vector<32x32xf32>
    %125 = arith.addf %124, %123 : vector<32x32xf32>
    %126 = arith.divf %124, %125 : vector<32x32xf32>
    %127 = vector.extract_strided_slice %120 {offsets = [0, 32], sizes = [32, 32], strides = [1, 1]} : vector<32x128xf32> to vector<32x32xf32>
    %128 = arith.negf %127 : vector<32x32xf32>
    %129 = math.exp %128 : vector<32x32xf32>
    %cst_40 = arith.constant 1.000000e+00 : f32
    %130 = vector.broadcast %cst_40 : f32 to vector<32x32xf32>
    %131 = arith.addf %130, %129 : vector<32x32xf32>
    %132 = arith.divf %130, %131 : vector<32x32xf32>
    %133 = vector.extract_strided_slice %120 {offsets = [0, 64], sizes = [32, 32], strides = [1, 1]} : vector<32x128xf32> to vector<32x32xf32>
    %134 = vector.extract_strided_slice %120 {offsets = [0, 96], sizes = [32, 32], strides = [1, 1]} : vector<32x128xf32> to vector<32x32xf32>
    %135 = arith.mulf %126, %134 : vector<32x32xf32>
    %136 = arith.addf %133, %135 : vector<32x32xf32>
    %137 = math.tanh %136 : vector<32x32xf32>
    %cst_41 = arith.constant 1.000000e+00 : f32
    %138 = vector.broadcast %cst_41 : f32 to vector<32x32xf32>
    %139 = arith.subf %138, %132 : vector<32x32xf32>
    %140 = arith.mulf %139, %137 : vector<32x32xf32>
    %141 = arith.mulf %132, %91 : vector<32x32xf32>
    %142 = arith.addf %140, %141 : vector<32x32xf32>
    %143 = tpu.concatenate %142, %116 in 1 : vector<32x32xf32>, vector<32x32xf32> -> vector<32x64xf32>
    %cst_42 = arith.constant dense<0.000000e+00> : vector<32x128xf32>
    %144 = tpu.matmul %143, %8, %cst_42 {dimension_numbers = #tpu.dot_dimension_numbers<[1], [0], [0], [1], [0, 0, 1, 1], [], []>} : vector<32x64xf32>, vector<64x128xf32>, vector<32x128xf32> -> vector<32x128xf32>
    %145 = arith.addf %144, %12 : vector<32x128xf32>
    %146 = vector.extract_strided_slice %145 {offsets = [0, 0], sizes = [32, 32], strides = [1, 1]} : vector<32x128xf32> to vector<32x32xf32>
    %147 = arith.negf %146 : vector<32x32xf32>
    %148 = math.exp %147 : vector<32x32xf32>
    %cst_43 = arith.constant 1.000000e+00 : f32
    %149 = vector.broadcast %cst_43 : f32 to vector<32x32xf32>
    %150 = arith.addf %149, %148 : vector<32x32xf32>
    %151 = arith.divf %149, %150 : vector<32x32xf32>
    %152 = vector.extract_strided_slice %145 {offsets = [0, 32], sizes = [32, 32], strides = [1, 1]} : vector<32x128xf32> to vector<32x32xf32>
    %153 = arith.negf %152 : vector<32x32xf32>
    %154 = math.exp %153 : vector<32x32xf32>
    %cst_44 = arith.constant 1.000000e+00 : f32
    %155 = vector.broadcast %cst_44 : f32 to vector<32x32xf32>
    %156 = arith.addf %155, %154 : vector<32x32xf32>
    %157 = arith.divf %155, %156 : vector<32x32xf32>
    %158 = vector.extract_strided_slice %145 {offsets = [0, 64], sizes = [32, 32], strides = [1, 1]} : vector<32x128xf32> to vector<32x32xf32>
    %159 = vector.extract_strided_slice %145 {offsets = [0, 96], sizes = [32, 32], strides = [1, 1]} : vector<32x128xf32> to vector<32x32xf32>
    %160 = arith.mulf %151, %159 : vector<32x32xf32>
    %161 = arith.addf %158, %160 : vector<32x32xf32>
    %162 = math.tanh %161 : vector<32x32xf32>
    %cst_45 = arith.constant 1.000000e+00 : f32
    %163 = vector.broadcast %cst_45 : f32 to vector<32x32xf32>
    %164 = arith.subf %163, %157 : vector<32x32xf32>
    %165 = arith.mulf %164, %162 : vector<32x32xf32>
    %166 = arith.mulf %157, %116 : vector<32x32xf32>
    %167 = arith.addf %165, %166 : vector<32x32xf32>
    %c64_46 = arith.constant 64 : index
    %c0_47 = arith.constant 0 : index
    %168 = vector.load %arg6[%c64_46, %c0_47] : memref<256x32xf32, #tpu.memory_space<vmem>>, vector<32x32xf32>
    tpu.vector_store %arg6[%c64_46, %c0_47], %167 {strides = array<i32>} : memref<256x32xf32, #tpu.memory_space<vmem>>, vector<32x32xf32>,
    %c96 = arith.constant 96 : index
    %c0_48 = arith.constant 0 : index
    %169 = vector.load %arg5[%c96, %c0_48] : memref<256x128xf32, #tpu.memory_space<vmem>>, vector<32x128xf32>
    %cst_49 = arith.constant dense<0.000000e+00> : vector<32x128xf32>
    %170 = tpu.matmul %142, %7, %cst_49 {dimension_numbers = #tpu.dot_dimension_numbers<[1], [0], [0], [1], [0, 0, 1, 1], [], []>} : vector<32x32xf32>, vector<32x128xf32>, vector<32x128xf32> -> vector<32x128xf32>
    %171 = arith.addf %169, %170 : vector<32x128xf32>
    %172 = vector.extract_strided_slice %171 {offsets = [0, 0], sizes = [32, 32], strides = [1, 1]} : vector<32x128xf32> to vector<32x32xf32>
    %173 = arith.negf %172 : vector<32x32xf32>
    %174 = math.exp %173 : vector<32x32xf32>
    %cst_50 = arith.constant 1.000000e+00 : f32
    %175 = vector.broadcast %cst_50 : f32 to vector<32x32xf32>
    %176 = arith.addf %175, %174 : vector<32x32xf32>
    %177 = arith.divf %175, %176 : vector<32x32xf32>
    %178 = vector.extract_strided_slice %171 {offsets = [0, 32], sizes = [32, 32], strides = [1, 1]} : vector<32x128xf32> to vector<32x32xf32>
    %179 = arith.negf %178 : vector<32x32xf32>
    %180 = math.exp %179 : vector<32x32xf32>
    %cst_51 = arith.constant 1.000000e+00 : f32
    %181 = vector.broadcast %cst_51 : f32 to vector<32x32xf32>
    %182 = arith.addf %181, %180 : vector<32x32xf32>
    %183 = arith.divf %181, %182 : vector<32x32xf32>
    %184 = vector.extract_strided_slice %171 {offsets = [0, 64], sizes = [32, 32], strides = [1, 1]} : vector<32x128xf32> to vector<32x32xf32>
    %185 = vector.extract_strided_slice %171 {offsets = [0, 96], sizes = [32, 32], strides = [1, 1]} : vector<32x128xf32> to vector<32x32xf32>
    %186 = arith.mulf %177, %185 : vector<32x32xf32>
    %187 = arith.addf %184, %186 : vector<32x32xf32>
    %188 = math.tanh %187 : vector<32x32xf32>
    %cst_52 = arith.constant 1.000000e+00 : f32
    %189 = vector.broadcast %cst_52 : f32 to vector<32x32xf32>
    %190 = arith.subf %189, %183 : vector<32x32xf32>
    %191 = arith.mulf %190, %188 : vector<32x32xf32>
    %192 = arith.mulf %183, %142 : vector<32x32xf32>
    %193 = arith.addf %191, %192 : vector<32x32xf32>
    %194 = tpu.concatenate %193, %167 in 1 : vector<32x32xf32>, vector<32x32xf32> -> vector<32x64xf32>
    %cst_53 = arith.constant dense<0.000000e+00> : vector<32x128xf32>
    %195 = tpu.matmul %194, %8, %cst_53 {dimension_numbers = #tpu.dot_dimension_numbers<[1], [0], [0], [1], [0, 0, 1, 1], [], []>} : vector<32x64xf32>, vector<64x128xf32>, vector<32x128xf32> -> vector<32x128xf32>
    %196 = arith.addf %195, %12 : vector<32x128xf32>
    %197 = vector.extract_strided_slice %196 {offsets = [0, 0], sizes = [32, 32], strides = [1, 1]} : vector<32x128xf32> to vector<32x32xf32>
    %198 = arith.negf %197 : vector<32x32xf32>
    %199 = math.exp %198 : vector<32x32xf32>
    %cst_54 = arith.constant 1.000000e+00 : f32
    %200 = vector.broadcast %cst_54 : f32 to vector<32x32xf32>
    %201 = arith.addf %200, %199 : vector<32x32xf32>
    %202 = arith.divf %200, %201 : vector<32x32xf32>
    %203 = vector.extract_strided_slice %196 {offsets = [0, 32], sizes = [32, 32], strides = [1, 1]} : vector<32x128xf32> to vector<32x32xf32>
    %204 = arith.negf %203 : vector<32x32xf32>
    %205 = math.exp %204 : vector<32x32xf32>
    %cst_55 = arith.constant 1.000000e+00 : f32
    %206 = vector.broadcast %cst_55 : f32 to vector<32x32xf32>
    %207 = arith.addf %206, %205 : vector<32x32xf32>
    %208 = arith.divf %206, %207 : vector<32x32xf32>
    %209 = vector.extract_strided_slice %196 {offsets = [0, 64], sizes = [32, 32], strides = [1, 1]} : vector<32x128xf32> to vector<32x32xf32>
    %210 = vector.extract_strided_slice %196 {offsets = [0, 96], sizes = [32, 32], strides = [1, 1]} : vector<32x128xf32> to vector<32x32xf32>
    %211 = arith.mulf %202, %210 : vector<32x32xf32>
    %212 = arith.addf %209, %211 : vector<32x32xf32>
    %213 = math.tanh %212 : vector<32x32xf32>
    %cst_56 = arith.constant 1.000000e+00 : f32
    %214 = vector.broadcast %cst_56 : f32 to vector<32x32xf32>
    %215 = arith.subf %214, %208 : vector<32x32xf32>
    %216 = arith.mulf %215, %213 : vector<32x32xf32>
    %217 = arith.mulf %208, %167 : vector<32x32xf32>
    %218 = arith.addf %216, %217 : vector<32x32xf32>
    %c96_57 = arith.constant 96 : index
    %c0_58 = arith.constant 0 : index
    %219 = vector.load %arg6[%c96_57, %c0_58] : memref<256x32xf32, #tpu.memory_space<vmem>>, vector<32x32xf32>
    tpu.vector_store %arg6[%c96_57, %c0_58], %218 {strides = array<i32>} : memref<256x32xf32, #tpu.memory_space<vmem>>, vector<32x32xf32>,
    %c128 = arith.constant 128 : index
    %c0_59 = arith.constant 0 : index
    %220 = vector.load %arg5[%c128, %c0_59] : memref<256x128xf32, #tpu.memory_space<vmem>>, vector<32x128xf32>
    %cst_60 = arith.constant dense<0.000000e+00> : vector<32x128xf32>
    %221 = tpu.matmul %193, %7, %cst_60 {dimension_numbers = #tpu.dot_dimension_numbers<[1], [0], [0], [1], [0, 0, 1, 1], [], []>} : vector<32x32xf32>, vector<32x128xf32>, vector<32x128xf32> -> vector<32x128xf32>
    %222 = arith.addf %220, %221 : vector<32x128xf32>
    %223 = vector.extract_strided_slice %222 {offsets = [0, 0], sizes = [32, 32], strides = [1, 1]} : vector<32x128xf32> to vector<32x32xf32>
    %224 = arith.negf %223 : vector<32x32xf32>
    %225 = math.exp %224 : vector<32x32xf32>
    %cst_61 = arith.constant 1.000000e+00 : f32
    %226 = vector.broadcast %cst_61 : f32 to vector<32x32xf32>
    %227 = arith.addf %226, %225 : vector<32x32xf32>
    %228 = arith.divf %226, %227 : vector<32x32xf32>
    %229 = vector.extract_strided_slice %222 {offsets = [0, 32], sizes = [32, 32], strides = [1, 1]} : vector<32x128xf32> to vector<32x32xf32>
    %230 = arith.negf %229 : vector<32x32xf32>
    %231 = math.exp %230 : vector<32x32xf32>
    %cst_62 = arith.constant 1.000000e+00 : f32
    %232 = vector.broadcast %cst_62 : f32 to vector<32x32xf32>
    %233 = arith.addf %232, %231 : vector<32x32xf32>
    %234 = arith.divf %232, %233 : vector<32x32xf32>
    %235 = vector.extract_strided_slice %222 {offsets = [0, 64], sizes = [32, 32], strides = [1, 1]} : vector<32x128xf32> to vector<32x32xf32>
    %236 = vector.extract_strided_slice %222 {offsets = [0, 96], sizes = [32, 32], strides = [1, 1]} : vector<32x128xf32> to vector<32x32xf32>
    %237 = arith.mulf %228, %236 : vector<32x32xf32>
    %238 = arith.addf %235, %237 : vector<32x32xf32>
    %239 = math.tanh %238 : vector<32x32xf32>
    %cst_63 = arith.constant 1.000000e+00 : f32
    %240 = vector.broadcast %cst_63 : f32 to vector<32x32xf32>
    %241 = arith.subf %240, %234 : vector<32x32xf32>
    %242 = arith.mulf %241, %239 : vector<32x32xf32>
    %243 = arith.mulf %234, %193 : vector<32x32xf32>
    %244 = arith.addf %242, %243 : vector<32x32xf32>
    %245 = tpu.concatenate %244, %218 in 1 : vector<32x32xf32>, vector<32x32xf32> -> vector<32x64xf32>
    %cst_64 = arith.constant dense<0.000000e+00> : vector<32x128xf32>
    %246 = tpu.matmul %245, %8, %cst_64 {dimension_numbers = #tpu.dot_dimension_numbers<[1], [0], [0], [1], [0, 0, 1, 1], [], []>} : vector<32x64xf32>, vector<64x128xf32>, vector<32x128xf32> -> vector<32x128xf32>
    %247 = arith.addf %246, %12 : vector<32x128xf32>
    %248 = vector.extract_strided_slice %247 {offsets = [0, 0], sizes = [32, 32], strides = [1, 1]} : vector<32x128xf32> to vector<32x32xf32>
    %249 = arith.negf %248 : vector<32x32xf32>
    %250 = math.exp %249 : vector<32x32xf32>
    %cst_65 = arith.constant 1.000000e+00 : f32
    %251 = vector.broadcast %cst_65 : f32 to vector<32x32xf32>
    %252 = arith.addf %251, %250 : vector<32x32xf32>
    %253 = arith.divf %251, %252 : vector<32x32xf32>
    %254 = vector.extract_strided_slice %247 {offsets = [0, 32], sizes = [32, 32], strides = [1, 1]} : vector<32x128xf32> to vector<32x32xf32>
    %255 = arith.negf %254 : vector<32x32xf32>
    %256 = math.exp %255 : vector<32x32xf32>
    %cst_66 = arith.constant 1.000000e+00 : f32
    %257 = vector.broadcast %cst_66 : f32 to vector<32x32xf32>
    %258 = arith.addf %257, %256 : vector<32x32xf32>
    %259 = arith.divf %257, %258 : vector<32x32xf32>
    %260 = vector.extract_strided_slice %247 {offsets = [0, 64], sizes = [32, 32], strides = [1, 1]} : vector<32x128xf32> to vector<32x32xf32>
    %261 = vector.extract_strided_slice %247 {offsets = [0, 96], sizes = [32, 32], strides = [1, 1]} : vector<32x128xf32> to vector<32x32xf32>
    %262 = arith.mulf %253, %261 : vector<32x32xf32>
    %263 = arith.addf %260, %262 : vector<32x32xf32>
    %264 = math.tanh %263 : vector<32x32xf32>
    %cst_67 = arith.constant 1.000000e+00 : f32
    %265 = vector.broadcast %cst_67 : f32 to vector<32x32xf32>
    %266 = arith.subf %265, %259 : vector<32x32xf32>
    %267 = arith.mulf %266, %264 : vector<32x32xf32>
    %268 = arith.mulf %259, %218 : vector<32x32xf32>
    %269 = arith.addf %267, %268 : vector<32x32xf32>
    %c128_68 = arith.constant 128 : index
    %c0_69 = arith.constant 0 : index
    %270 = vector.load %arg6[%c128_68, %c0_69] : memref<256x32xf32, #tpu.memory_space<vmem>>, vector<32x32xf32>
    tpu.vector_store %arg6[%c128_68, %c0_69], %269 {strides = array<i32>} : memref<256x32xf32, #tpu.memory_space<vmem>>, vector<32x32xf32>,
    %c160 = arith.constant 160 : index
    %c0_70 = arith.constant 0 : index
    %271 = vector.load %arg5[%c160, %c0_70] : memref<256x128xf32, #tpu.memory_space<vmem>>, vector<32x128xf32>
    %cst_71 = arith.constant dense<0.000000e+00> : vector<32x128xf32>
    %272 = tpu.matmul %244, %7, %cst_71 {dimension_numbers = #tpu.dot_dimension_numbers<[1], [0], [0], [1], [0, 0, 1, 1], [], []>} : vector<32x32xf32>, vector<32x128xf32>, vector<32x128xf32> -> vector<32x128xf32>
    %273 = arith.addf %271, %272 : vector<32x128xf32>
    %274 = vector.extract_strided_slice %273 {offsets = [0, 0], sizes = [32, 32], strides = [1, 1]} : vector<32x128xf32> to vector<32x32xf32>
    %275 = arith.negf %274 : vector<32x32xf32>
    %276 = math.exp %275 : vector<32x32xf32>
    %cst_72 = arith.constant 1.000000e+00 : f32
    %277 = vector.broadcast %cst_72 : f32 to vector<32x32xf32>
    %278 = arith.addf %277, %276 : vector<32x32xf32>
    %279 = arith.divf %277, %278 : vector<32x32xf32>
    %280 = vector.extract_strided_slice %273 {offsets = [0, 32], sizes = [32, 32], strides = [1, 1]} : vector<32x128xf32> to vector<32x32xf32>
    %281 = arith.negf %280 : vector<32x32xf32>
    %282 = math.exp %281 : vector<32x32xf32>
    %cst_73 = arith.constant 1.000000e+00 : f32
    %283 = vector.broadcast %cst_73 : f32 to vector<32x32xf32>
    %284 = arith.addf %283, %282 : vector<32x32xf32>
    %285 = arith.divf %283, %284 : vector<32x32xf32>
    %286 = vector.extract_strided_slice %273 {offsets = [0, 64], sizes = [32, 32], strides = [1, 1]} : vector<32x128xf32> to vector<32x32xf32>
    %287 = vector.extract_strided_slice %273 {offsets = [0, 96], sizes = [32, 32], strides = [1, 1]} : vector<32x128xf32> to vector<32x32xf32>
    %288 = arith.mulf %279, %287 : vector<32x32xf32>
    %289 = arith.addf %286, %288 : vector<32x32xf32>
    %290 = math.tanh %289 : vector<32x32xf32>
    %cst_74 = arith.constant 1.000000e+00 : f32
    %291 = vector.broadcast %cst_74 : f32 to vector<32x32xf32>
    %292 = arith.subf %291, %285 : vector<32x32xf32>
    %293 = arith.mulf %292, %290 : vector<32x32xf32>
    %294 = arith.mulf %285, %244 : vector<32x32xf32>
    %295 = arith.addf %293, %294 : vector<32x32xf32>
    %296 = tpu.concatenate %295, %269 in 1 : vector<32x32xf32>, vector<32x32xf32> -> vector<32x64xf32>
    %cst_75 = arith.constant dense<0.000000e+00> : vector<32x128xf32>
    %297 = tpu.matmul %296, %8, %cst_75 {dimension_numbers = #tpu.dot_dimension_numbers<[1], [0], [0], [1], [0, 0, 1, 1], [], []>} : vector<32x64xf32>, vector<64x128xf32>, vector<32x128xf32> -> vector<32x128xf32>
    %298 = arith.addf %297, %12 : vector<32x128xf32>
    %299 = vector.extract_strided_slice %298 {offsets = [0, 0], sizes = [32, 32], strides = [1, 1]} : vector<32x128xf32> to vector<32x32xf32>
    %300 = arith.negf %299 : vector<32x32xf32>
    %301 = math.exp %300 : vector<32x32xf32>
    %cst_76 = arith.constant 1.000000e+00 : f32
    %302 = vector.broadcast %cst_76 : f32 to vector<32x32xf32>
    %303 = arith.addf %302, %301 : vector<32x32xf32>
    %304 = arith.divf %302, %303 : vector<32x32xf32>
    %305 = vector.extract_strided_slice %298 {offsets = [0, 32], sizes = [32, 32], strides = [1, 1]} : vector<32x128xf32> to vector<32x32xf32>
    %306 = arith.negf %305 : vector<32x32xf32>
    %307 = math.exp %306 : vector<32x32xf32>
    %cst_77 = arith.constant 1.000000e+00 : f32
    %308 = vector.broadcast %cst_77 : f32 to vector<32x32xf32>
    %309 = arith.addf %308, %307 : vector<32x32xf32>
    %310 = arith.divf %308, %309 : vector<32x32xf32>
    %311 = vector.extract_strided_slice %298 {offsets = [0, 64], sizes = [32, 32], strides = [1, 1]} : vector<32x128xf32> to vector<32x32xf32>
    %312 = vector.extract_strided_slice %298 {offsets = [0, 96], sizes = [32, 32], strides = [1, 1]} : vector<32x128xf32> to vector<32x32xf32>
    %313 = arith.mulf %304, %312 : vector<32x32xf32>
    %314 = arith.addf %311, %313 : vector<32x32xf32>
    %315 = math.tanh %314 : vector<32x32xf32>
    %cst_78 = arith.constant 1.000000e+00 : f32
    %316 = vector.broadcast %cst_78 : f32 to vector<32x32xf32>
    %317 = arith.subf %316, %310 : vector<32x32xf32>
    %318 = arith.mulf %317, %315 : vector<32x32xf32>
    %319 = arith.mulf %310, %269 : vector<32x32xf32>
    %320 = arith.addf %318, %319 : vector<32x32xf32>
    %c160_79 = arith.constant 160 : index
    %c0_80 = arith.constant 0 : index
    %321 = vector.load %arg6[%c160_79, %c0_80] : memref<256x32xf32, #tpu.memory_space<vmem>>, vector<32x32xf32>
    tpu.vector_store %arg6[%c160_79, %c0_80], %320 {strides = array<i32>} : memref<256x32xf32, #tpu.memory_space<vmem>>, vector<32x32xf32>,
    %c192 = arith.constant 192 : index
    %c0_81 = arith.constant 0 : index
    %322 = vector.load %arg5[%c192, %c0_81] : memref<256x128xf32, #tpu.memory_space<vmem>>, vector<32x128xf32>
    %cst_82 = arith.constant dense<0.000000e+00> : vector<32x128xf32>
    %323 = tpu.matmul %295, %7, %cst_82 {dimension_numbers = #tpu.dot_dimension_numbers<[1], [0], [0], [1], [0, 0, 1, 1], [], []>} : vector<32x32xf32>, vector<32x128xf32>, vector<32x128xf32> -> vector<32x128xf32>
    %324 = arith.addf %322, %323 : vector<32x128xf32>
    %325 = vector.extract_strided_slice %324 {offsets = [0, 0], sizes = [32, 32], strides = [1, 1]} : vector<32x128xf32> to vector<32x32xf32>
    %326 = arith.negf %325 : vector<32x32xf32>
    %327 = math.exp %326 : vector<32x32xf32>
    %cst_83 = arith.constant 1.000000e+00 : f32
    %328 = vector.broadcast %cst_83 : f32 to vector<32x32xf32>
    %329 = arith.addf %328, %327 : vector<32x32xf32>
    %330 = arith.divf %328, %329 : vector<32x32xf32>
    %331 = vector.extract_strided_slice %324 {offsets = [0, 32], sizes = [32, 32], strides = [1, 1]} : vector<32x128xf32> to vector<32x32xf32>
    %332 = arith.negf %331 : vector<32x32xf32>
    %333 = math.exp %332 : vector<32x32xf32>
    %cst_84 = arith.constant 1.000000e+00 : f32
    %334 = vector.broadcast %cst_84 : f32 to vector<32x32xf32>
    %335 = arith.addf %334, %333 : vector<32x32xf32>
    %336 = arith.divf %334, %335 : vector<32x32xf32>
    %337 = vector.extract_strided_slice %324 {offsets = [0, 64], sizes = [32, 32], strides = [1, 1]} : vector<32x128xf32> to vector<32x32xf32>
    %338 = vector.extract_strided_slice %324 {offsets = [0, 96], sizes = [32, 32], strides = [1, 1]} : vector<32x128xf32> to vector<32x32xf32>
    %339 = arith.mulf %330, %338 : vector<32x32xf32>
    %340 = arith.addf %337, %339 : vector<32x32xf32>
    %341 = math.tanh %340 : vector<32x32xf32>
    %cst_85 = arith.constant 1.000000e+00 : f32
    %342 = vector.broadcast %cst_85 : f32 to vector<32x32xf32>
    %343 = arith.subf %342, %336 : vector<32x32xf32>
    %344 = arith.mulf %343, %341 : vector<32x32xf32>
    %345 = arith.mulf %336, %295 : vector<32x32xf32>
    %346 = arith.addf %344, %345 : vector<32x32xf32>
    %347 = tpu.concatenate %346, %320 in 1 : vector<32x32xf32>, vector<32x32xf32> -> vector<32x64xf32>
    %cst_86 = arith.constant dense<0.000000e+00> : vector<32x128xf32>
    %348 = tpu.matmul %347, %8, %cst_86 {dimension_numbers = #tpu.dot_dimension_numbers<[1], [0], [0], [1], [0, 0, 1, 1], [], []>} : vector<32x64xf32>, vector<64x128xf32>, vector<32x128xf32> -> vector<32x128xf32>
    %349 = arith.addf %348, %12 : vector<32x128xf32>
    %350 = vector.extract_strided_slice %349 {offsets = [0, 0], sizes = [32, 32], strides = [1, 1]} : vector<32x128xf32> to vector<32x32xf32>
    %351 = arith.negf %350 : vector<32x32xf32>
    %352 = math.exp %351 : vector<32x32xf32>
    %cst_87 = arith.constant 1.000000e+00 : f32
    %353 = vector.broadcast %cst_87 : f32 to vector<32x32xf32>
    %354 = arith.addf %353, %352 : vector<32x32xf32>
    %355 = arith.divf %353, %354 : vector<32x32xf32>
    %356 = vector.extract_strided_slice %349 {offsets = [0, 32], sizes = [32, 32], strides = [1, 1]} : vector<32x128xf32> to vector<32x32xf32>
    %357 = arith.negf %356 : vector<32x32xf32>
    %358 = math.exp %357 : vector<32x32xf32>
    %cst_88 = arith.constant 1.000000e+00 : f32
    %359 = vector.broadcast %cst_88 : f32 to vector<32x32xf32>
    %360 = arith.addf %359, %358 : vector<32x32xf32>
    %361 = arith.divf %359, %360 : vector<32x32xf32>
    %362 = vector.extract_strided_slice %349 {offsets = [0, 64], sizes = [32, 32], strides = [1, 1]} : vector<32x128xf32> to vector<32x32xf32>
    %363 = vector.extract_strided_slice %349 {offsets = [0, 96], sizes = [32, 32], strides = [1, 1]} : vector<32x128xf32> to vector<32x32xf32>
    %364 = arith.mulf %355, %363 : vector<32x32xf32>
    %365 = arith.addf %362, %364 : vector<32x32xf32>
    %366 = math.tanh %365 : vector<32x32xf32>
    %cst_89 = arith.constant 1.000000e+00 : f32
    %367 = vector.broadcast %cst_89 : f32 to vector<32x32xf32>
    %368 = arith.subf %367, %361 : vector<32x32xf32>
    %369 = arith.mulf %368, %366 : vector<32x32xf32>
    %370 = arith.mulf %361, %320 : vector<32x32xf32>
    %371 = arith.addf %369, %370 : vector<32x32xf32>
    %c192_90 = arith.constant 192 : index
    %c0_91 = arith.constant 0 : index
    %372 = vector.load %arg6[%c192_90, %c0_91] : memref<256x32xf32, #tpu.memory_space<vmem>>, vector<32x32xf32>
    tpu.vector_store %arg6[%c192_90, %c0_91], %371 {strides = array<i32>} : memref<256x32xf32, #tpu.memory_space<vmem>>, vector<32x32xf32>,
    %c224 = arith.constant 224 : index
    %c0_92 = arith.constant 0 : index
    %373 = vector.load %arg5[%c224, %c0_92] : memref<256x128xf32, #tpu.memory_space<vmem>>, vector<32x128xf32>
    %cst_93 = arith.constant dense<0.000000e+00> : vector<32x128xf32>
    %374 = tpu.matmul %346, %7, %cst_93 {dimension_numbers = #tpu.dot_dimension_numbers<[1], [0], [0], [1], [0, 0, 1, 1], [], []>} : vector<32x32xf32>, vector<32x128xf32>, vector<32x128xf32> -> vector<32x128xf32>
    %375 = arith.addf %373, %374 : vector<32x128xf32>
    %376 = vector.extract_strided_slice %375 {offsets = [0, 0], sizes = [32, 32], strides = [1, 1]} : vector<32x128xf32> to vector<32x32xf32>
    %377 = arith.negf %376 : vector<32x32xf32>
    %378 = math.exp %377 : vector<32x32xf32>
    %cst_94 = arith.constant 1.000000e+00 : f32
    %379 = vector.broadcast %cst_94 : f32 to vector<32x32xf32>
    %380 = arith.addf %379, %378 : vector<32x32xf32>
    %381 = arith.divf %379, %380 : vector<32x32xf32>
    %382 = vector.extract_strided_slice %375 {offsets = [0, 32], sizes = [32, 32], strides = [1, 1]} : vector<32x128xf32> to vector<32x32xf32>
    %383 = arith.negf %382 : vector<32x32xf32>
    %384 = math.exp %383 : vector<32x32xf32>
    %cst_95 = arith.constant 1.000000e+00 : f32
    %385 = vector.broadcast %cst_95 : f32 to vector<32x32xf32>
    %386 = arith.addf %385, %384 : vector<32x32xf32>
    %387 = arith.divf %385, %386 : vector<32x32xf32>
    %388 = vector.extract_strided_slice %375 {offsets = [0, 64], sizes = [32, 32], strides = [1, 1]} : vector<32x128xf32> to vector<32x32xf32>
    %389 = vector.extract_strided_slice %375 {offsets = [0, 96], sizes = [32, 32], strides = [1, 1]} : vector<32x128xf32> to vector<32x32xf32>
    %390 = arith.mulf %381, %389 : vector<32x32xf32>
    %391 = arith.addf %388, %390 : vector<32x32xf32>
    %392 = math.tanh %391 : vector<32x32xf32>
    %cst_96 = arith.constant 1.000000e+00 : f32
    %393 = vector.broadcast %cst_96 : f32 to vector<32x32xf32>
    %394 = arith.subf %393, %387 : vector<32x32xf32>
    %395 = arith.mulf %394, %392 : vector<32x32xf32>
    %396 = arith.mulf %387, %346 : vector<32x32xf32>
    %397 = arith.addf %395, %396 : vector<32x32xf32>
    %398 = tpu.concatenate %397, %371 in 1 : vector<32x32xf32>, vector<32x32xf32> -> vector<32x64xf32>
    %cst_97 = arith.constant dense<0.000000e+00> : vector<32x128xf32>
    %399 = tpu.matmul %398, %8, %cst_97 {dimension_numbers = #tpu.dot_dimension_numbers<[1], [0], [0], [1], [0, 0, 1, 1], [], []>} : vector<32x64xf32>, vector<64x128xf32>, vector<32x128xf32> -> vector<32x128xf32>
    %400 = arith.addf %399, %12 : vector<32x128xf32>
    %401 = vector.extract_strided_slice %400 {offsets = [0, 0], sizes = [32, 32], strides = [1, 1]} : vector<32x128xf32> to vector<32x32xf32>
    %402 = arith.negf %401 : vector<32x32xf32>
    %403 = math.exp %402 : vector<32x32xf32>
    %cst_98 = arith.constant 1.000000e+00 : f32
    %404 = vector.broadcast %cst_98 : f32 to vector<32x32xf32>
    %405 = arith.addf %404, %403 : vector<32x32xf32>
    %406 = arith.divf %404, %405 : vector<32x32xf32>
    %407 = vector.extract_strided_slice %400 {offsets = [0, 32], sizes = [32, 32], strides = [1, 1]} : vector<32x128xf32> to vector<32x32xf32>
    %408 = arith.negf %407 : vector<32x32xf32>
    %409 = math.exp %408 : vector<32x32xf32>
    %cst_99 = arith.constant 1.000000e+00 : f32
    %410 = vector.broadcast %cst_99 : f32 to vector<32x32xf32>
    %411 = arith.addf %410, %409 : vector<32x32xf32>
    %412 = arith.divf %410, %411 : vector<32x32xf32>
    %413 = vector.extract_strided_slice %400 {offsets = [0, 64], sizes = [32, 32], strides = [1, 1]} : vector<32x128xf32> to vector<32x32xf32>
    %414 = vector.extract_strided_slice %400 {offsets = [0, 96], sizes = [32, 32], strides = [1, 1]} : vector<32x128xf32> to vector<32x32xf32>
    %415 = arith.mulf %406, %414 : vector<32x32xf32>
    %416 = arith.addf %413, %415 : vector<32x32xf32>
    %417 = math.tanh %416 : vector<32x32xf32>
    %cst_100 = arith.constant 1.000000e+00 : f32
    %418 = vector.broadcast %cst_100 : f32 to vector<32x32xf32>
    %419 = arith.subf %418, %412 : vector<32x32xf32>
    %420 = arith.mulf %419, %417 : vector<32x32xf32>
    %421 = arith.mulf %412, %371 : vector<32x32xf32>
    %422 = arith.addf %420, %421 : vector<32x32xf32>
    %c224_101 = arith.constant 224 : index
    %c0_102 = arith.constant 0 : index
    %423 = vector.load %arg6[%c224_101, %c0_102] : memref<256x32xf32, #tpu.memory_space<vmem>>, vector<32x32xf32>
    tpu.vector_store %arg6[%c224_101, %c0_102], %422 {strides = array<i32>} : memref<256x32xf32, #tpu.memory_space<vmem>>, vector<32x32xf32>,
    %c0_103 = arith.constant 0 : index
    %c0_104 = arith.constant 0 : index
    %424 = vector.load %arg6[%c0_103, %c0_104] : memref<256x32xf32, #tpu.memory_space<vmem>>, vector<256x32xf32>
    %cst_105 = arith.constant dense<0.000000e+00> : vector<256x8xf32>
    %425 = tpu.matmul %424, %9, %cst_105 {dimension_numbers = #tpu.dot_dimension_numbers<[1], [0], [0], [1], [0, 0, 1, 1], [], []>} : vector<256x32xf32>, vector<32x8xf32>, vector<256x8xf32> -> vector<256x8xf32>
    %426 = vector.broadcast %13 : vector<1x8xf32> to vector<256x8xf32>
    %427 = arith.addf %425, %426 : vector<256x8xf32>
    %428 = arith.negf %427 : vector<256x8xf32>
    %429 = math.exp %428 : vector<256x8xf32>
    %cst_106 = arith.constant 1.000000e+00 : f32
    %430 = vector.broadcast %cst_106 : f32 to vector<256x8xf32>
    %431 = arith.addf %430, %429 : vector<256x8xf32>
    %432 = arith.divf %430, %431 : vector<256x8xf32>
    %c0_107 = arith.constant 0 : index
    %c0_108 = arith.constant 0 : index
    %433 = vector.load %arg4[%c0_107, %c0_108] : memref<256x8xf32, #tpu.memory_space<vmem>>, vector<256x8xf32>
    tpu.vector_store %arg4[%c0_107, %c0_108], %432 {strides = array<i32>} : memref<256x8xf32, #tpu.memory_space<vmem>>, vector<256x8xf32>,
    return
  }
  func.func @transform_0(%arg0: i32) -> (i32, i32) {
    %c0_i32 = arith.constant 0 : i32
    %c0_i32_0 = arith.constant 0 : i32
    %c0_i32_1 = arith.constant 0 : i32
    return %c0_i32, %c0_i32_0 : i32, i32
  }
  func.func @transform_1(%arg0: i32) -> (i32, i32) {
    %c0_i32 = arith.constant 0 : i32
    %c0_i32_0 = arith.constant 0 : i32
    %c0_i32_1 = arith.constant 0 : i32
    return %c0_i32, %c0_i32_0 : i32, i32
  }
  func.func @transform_2(%arg0: i32) -> (i32, i32) {
    %c0_i32 = arith.constant 0 : i32
    %c0_i32_0 = arith.constant 0 : i32
    %c0_i32_1 = arith.constant 0 : i32
    return %c0_i32, %c0_i32_0 : i32, i32
  }
  func.func @transform_3(%arg0: i32) -> (i32, i32) {
    %c0_i32 = arith.constant 0 : i32
    %c0_i32_0 = arith.constant 0 : i32
    %c0_i32_1 = arith.constant 0 : i32
    return %c0_i32, %c0_i32_0 : i32, i32
  }
}

</mosaic_0001>

<bundles_post_ra>
// kernel: _lambda_.1
= control target key start
LH: loop header
LB: loop body
LE: loop exit
PB: predicated region body
PF: predicated region fallthrough
CT: control target
= control target key end

     0   :  { %vm53_vm0 = vcmask 130048   ;;  %v6155_v23 = vmov 0.0   ;;  %s6156_s27 = smov 32   ;;  %s6157_s28 = smov 64   ;;  %vm433_vm1 = vcmask 261120   ;;  %vm646_vm2 = vcmask 523264   ;;  %s7947_s1 = inlined_call_operand.vmem [shape: f32[144,128], index: 1, kind: input, shape index: {}]   ;;  %s7948_s0 = inlined_call_operand.vmem [shape: f32[256,16], index: 0, kind: input, shape index: {}]   ;;  %s7949_s2 = inlined_call_operand.vmem [shape: f32[8,128], index: 2, kind: input, shape index: {}]   ;;  %s7950_s3 = inlined_call_operand.vmem [shape: f32[256,8], index: 3, kind: output, shape index: {}]  }
   0x1   :  { %v14_v0 = vld [vmem:[%s7947_s1] sm:$0xff]  ;;  %v15_v1 = vld [vmem:[%s7947_s1 + $0x8] sm:$0xff]  ;;  %v407_v4 = vld [vmem:[%s7947_s1 + $0x10] sm:$0xff]  ;;  %s6158_s8 = smov 96   ;;  %vm4479_vm3 = vcmask 64512  }
   0x2   :  { %v16_v2 = vld [vmem:[%s7948_s0] sm:$0xff]  ;;  %v5365_v3 = vpack.c.bf16 %v15_v1, %v14_v0  ;;  %v408_v5 = vld [vmem:[%s7947_s1 + $0x18] sm:$0xff]  ;;  %v17_v7 = vld [vmem:[%s7948_s0 + $0x8] sm:$0xff] }
   0x3   :  { %4973 = vmatprep.mubr.msk.f32.mxu0 %vm53_vm0, %v16_v2  ;;  %v6195_v6 = vpack.c.bf16 %v408_v5, %v407_v4  ;;  %v409_v8 = vld [vmem:[%s7947_s1 + $0x20] sm:$0xff]  ;;  %v410_v9 = vld [vmem:[%s7947_s1 + $0x28] sm:$0xff]  ;;  %v18_v10 = vld [vmem:[%s7948_s0 + $0x10] sm:$0xff] }
   0x4   :  { %5366 = vmatprep.subr.bf16.mxu0 %v5365_v3  ;;  %5569 = vmatprep.subr.bf16.mxu1 %v5365_v3  ;;  %v6210_v11 = vpack.c.bf16 %v410_v9, %v409_v8  ;;  %v19_v12 = vld [vmem:[%s7948_s0 + $0x18] sm:$0xff]  ;;  %v20_v13 = vld [vmem:[%s7948_s0 + $0x20] sm:$0xff]  ;;  %v21_v14 = vld [vmem:[%s7948_s0 + $0x28] sm:$0xff] }
   0x5   :  { %5368 = vmatpush3.bf16.msra.mxu0 %v5365_v3  ;;  %5570 = vmatpush3.bf16.msra.mxu1 %v5365_v3  ;;  %v22_v15 = vld [vmem:[%s7948_s0 + $0x30] sm:$0xff]  ;;  %v23_v16 = vld [vmem:[%s7948_s0 + $0x38] sm:$0xff]  ;;  %v24_v17 = vld [vmem:[%s7948_s0 + $0x40] sm:$0xff] }
   0x6   :  { %5370 = vmatprep.subr.bf16.mxu0 %v6195_v6  ;;  %v25_v18 = vld [vmem:[%s7948_s0 + $0x48] sm:$0xff]  ;;  %v26_v19 = vld [vmem:[%s7948_s0 + $0x50] sm:$0xff]  ;;  %v27_v20 = vld [vmem:[%s7948_s0 + $0x58] sm:$0xff] }
   0x7   :  { %v28_v21 = vld [vmem:[%s7948_s0 + $0x60] sm:$0xff]  ;;  %v29_v22 = vld [vmem:[%s7948_s0 + $0x68] sm:$0xff]  ;;  %v30_v2 = vld [vmem:[%s7948_s0 + $0x70] sm:$0xff] }
   0x8   :  { %4974 = vmatmul.mubr.msk.f32.vlgmr.msra.gmra.mrb[0].mxu0 %vm53_vm0, %v17_v7  ;;  %v6269_v24 = vld [vmem:[%s7949_s2] ss:$0 sm:$0xff]  ;;  %v31_v3 = vld [vmem:[%s7948_s0 + $0x78] sm:$0xff]  ;;  %4994 = vmatprep.mubr.msk.f32.mxu1 %vm53_vm0, %v30_v2  ;;  %v33_v5 = vld [vmem:[%s7948_s0 + $0x88] sm:$0xff] }
   0x9   :  { %5372 = vmatpush3.bf16.msra.mxu0 %v6195_v6  ;;  %4976 = vmatprep.mubr.msk.f32.mxu0 %vm53_vm0, %v18_v10  ;;  %v32_v4 = vld [vmem:[%s7948_s0 + $0x80] sm:$0xff]  ;;  %v34_v8 = vld [vmem:[%s7948_s0 + $0x90] sm:$0xff]  ;;  %v412_v10 = vld [vmem:[%s7947_s1 + $0x38] sm:$0xff] }
   0xa   :  { %5374 = vmatprep.subr.bf16.mxu0 %v6210_v11  ;;  %4995 = vmatmul.mubr.msk.f32.vlgmr.msra.gmra.mrb[0].mxu1 %vm53_vm0, %v31_v3  ;;  %v411_v9 = vld [vmem:[%s7947_s1 + $0x30] sm:$0xff] }
   0xb   :  { %4997 = vmatprep.mubr.msk.f32.mxu1 %vm53_vm0, %v32_v4 }
   0xc   :  { %4977 = vmatmul.mubr.msk.f32.gmra.mrb[2].mxu0 %vm53_vm0, %v19_v12 }
   0xd   :  { %4979 = vmatprep.mubr.msk.f32.mxu0 %vm53_vm0, %v20_v13  ;;  %5376 = vmatpush3.bf16.msra.mxu0 %v6210_v11  ;;  %v6321_v13 = vpack.c.bf16 %v412_v10, %v411_v9 }
   0xe   :  { %5394 = vmatprep.subr.bf16.mxu0 %v6195_v6  ;;  %4998 = vmatmul.mubr.msk.f32.gmra.mrb[2].mxu1 %vm53_vm0, %v33_v5 }
   0xf   :  { %5000 = vmatprep.mubr.msk.f32.mxu1 %vm53_vm0, %v34_v8  ;;  %5378 = vmatprep.subr.bf16.mxu1 %v6321_v13 }
  0x10   :  { %4980 = vmatmul.mubr.msk.f32.gmra.mrb[4].mxu0 %vm53_vm0, %v21_v14  ;;  %v413_v14 = vld [vmem:[%s7947_s1 + $0x40] sm:$0xff]  ;;  %5380 = vmatpush3.bf16.msra.mxu1 %v6321_v13 }
  0x11   :  { %4982 = vmatprep.mubr.msk.f32.mxu0 %vm53_vm0, %v22_v15  ;;  %v414_v15 = vld [vmem:[%s7947_s1 + $0x48] sm:$0xff] }
  0x14   :  { %4983 = vmatmul.mubr.msk.f32.gmra.mrb[6].mxu0 %vm53_vm0, %v23_v16  ;;  %v6331_v16 = vpack.c.bf16 %v414_v15, %v413_v14 }
  0x15   :  { %4985 = vmatprep.mubr.msk.f32.mxu0 %vm53_vm0, %v24_v17  ;;  %v415_v17 = vld [vmem:[%s7947_s1 + $0x50] sm:$0xff] }
  0x16   :  { %5382 = vmatprep.subr.bf16.mxu1 %v6331_v16 }
  0x17   :  { %5384 = vmatpush3.bf16.msra.mxu1 %v6331_v16 }
  0x18   :  { %4986 = vmatmul.mubr.msk.f32.gmra.mrb[8].mxu0 %vm53_vm0, %v25_v18  ;;  %v35_v18 = vld [vmem:[%s7948_s0 + $0x98] sm:$0xff] }
  0x19   :  { %4988 = vmatprep.mubr.msk.f32.mxu0 %vm53_vm0, %v26_v19  ;;  %v416_v19 = vld [vmem:[%s7947_s1 + $0x58] sm:$0xff]  ;;  %5001 = vmatmul.mubr.msk.f32.gmra.mrb[4].mxu1 %vm53_vm0, %v35_v18 }
  0x1c   :  { %4989 = vmatmul.mubr.msk.f32.gmra.mrb[10].mxu0 %vm53_vm0, %v27_v20 }
  0x1d   :  { %4991 = vmatprep.mubr.msk.f32.mxu0 %vm53_vm0, %v28_v21  ;;  %v36_v21 = vld [vmem:[%s7948_s0 + $0xa0] sm:$0xff] }
  0x1e   :  { %5003 = vmatprep.mubr.msk.f32.mxu1 %vm53_vm0, %v36_v21 }
  0x20   :  { %4992 = vmatmul.mubr.msk.f32.gmra.mrb[12].mxu0 %vm53_vm0, %v29_v22  ;;  %v6350_v22 = vpack.c.bf16 %v416_v19, %v415_v17 }
  0x21   :  { %5029 = vmatprep.mubr.f32.mxu0 %v6155_v23 }
  0x22   :  { %5386 = vmatprep.subr.bf16.mxu1 %v6350_v22 }
  0x23   :  { %5388 = vmatpush3.bf16.msra.mxu1 %v6350_v22 }
  0x24   :  { %5030 = vmatmul.mubr.f32.vlgmr.msra.gmra.mrb[0].mxu0 %v6155_v23 }
  0x25   :  { %5032 = vmatprep.mubr.f32.mxu0 %v6155_v23  ;;  %5396 = vmatpush3.bf16.msra.mxu0 %v6195_v6 }
  0x26   :  { %5398 = vmatprep.subr.bf16.mxu0 %v6210_v11 }
  0x28   :  { %5033 = vmatmul.mubr.f32.gmra.mrb[2].mxu0 %v6155_v23  ;;  %v37_v23 = vld [vmem:[%s7948_s0 + $0xa8] sm:$0xff] }
  0x29   :  { %5400 = vmatpush3.bf16.msra.mxu0 %v6210_v11  ;;  %5004 = vmatmul.mubr.msk.f32.gmra.mrb[6].mxu1 %vm53_vm0, %v37_v23 }
  0x2a   :  { %5418 = vmatprep.subr.bf16.mxu0 %v6195_v6 }
  0xf7   :  { %v5031_v25 = vpop.f32.mrb[0].mxu0 }
  0xf8   :  { %v503_v26 = vpop.f32.mrb[1].mxu0  ;;  %v5571_v30 = vadd.f32 %v5031_v25, %v6269_v24  ;;  %v38_v25 = vld [vmem:[%s7948_s0 + $0xb0] sm:$0xff] }
  0xf9   :  { %v5572_v27 = vadd.f32 %v6269_v24, %v503_v26  ;;  %5006 = vmatprep.mubr.msk.f32.mxu1 %vm53_vm0, %v38_v25  ;;  %v39_v26 = vld [vmem:[%s7948_s0 + $0xb8] sm:$0xff] }
  0xfa   :  { %v4551_v34 = vmul.f32 -1.442695, %v5571_v30  ;;  %5007 = vmatmul.mubr.msk.f32.gmra.mrb[8].mxu1 %vm53_vm0, %v39_v26 }
  0xfb   :  { %554 = vrot.lane.b32.xlu0 %v5572_v27, %s6156_s27  ;;  %v5034_v28 = vpop.f32.mrb[2].mxu0  ;;  %v4550_v33 = vmul.f32 -1.442695, %v5572_v27 }
  0xfc   :  { %v513_v29 = vpop.f32.mrb[3].mxu0  ;;  %v5573_v32 = vadd.f32 %v5034_v28, %v6269_v24  ;;  %v41_v28 = vld [vmem:[%s7948_s0 + $0xc8] sm:$0xff] }
  0xfd   :  { %v5574_v31 = vadd.f32 %v6269_v24, %v513_v29  ;;  %5639 = vpow2.f32 %v4550_v33  ;;  %v42_v29 = vld [vmem:[%s7948_s0 + $0xd0] sm:$0xff] }
  0xfe   :  { %5641 = vpow2.f32 %v4551_v34  ;;  %v4553_v36 = vmul.f32 -1.442695, %v5573_v32  ;;  %v46_v33 = vld [vmem:[%s7948_s0 + $0xf0] sm:$0xff]  ;;  %v47_v34 = vld [vmem:[%s7948_s0 + $0xf8] sm:$0xff] }
  0xff   :  { %556 = vrot.lane.b32.xlu0 %v5571_v30, %s6156_s27  ;;  %558 = vrot.lane.b32.xlu1 %v5574_v31, %s6156_s27  ;;  %v4552_v35 = vmul.f32 -1.442695, %v5574_v31 }
 0x101   :  { %5643 = vpow2.f32 %v4552_v35  ;;  %v417_v35 = vld [vmem:[%s7947_s1 + $0x60] sm:$0xff] }
 0x102   :  { %5645 = vpow2.f32 %v4553_v36  ;;  %v418_v36 = vld [vmem:[%s7947_s1 + $0x68] sm:$0xff] }
 0x103   :  { %560 = vrot.lane.b32.xlu1 %v5573_v32, %s6156_s27 }
 0x107   :  { %v5640_v37 = vpop.eup %5639 }
 0x108   :  { %v5642_v38 = vpop.eup %5641  ;;  %v538_v39 = vadd.f32 1.0, %v5640_v37  ;;  %v6407_v37 = vpack.c.bf16 %v418_v36, %v417_v35 }
 0x109   :  { %v539_v41 = vadd.f32 1.0, %v5642_v38 }
 0x10a   :  { %5647 = vrcp.f32 %v538_v39  ;;  %5390 = vmatprep.subr.bf16.mxu1 %v6407_v37 }
 0x10b   :  { %v5644_v40 = vpop.eup %5643  ;;  %5649 = vrcp.f32 %v539_v41  ;;  %5392 = vmatpush3.bf16.msra.mxu1 %v6407_v37 }
 0x10c   :  { %v540_v42 = vadd.f32 1.0, %v5644_v40  ;;  %v5646_v43 = vpop.eup %5645  ;;  %5402 = vmatprep.subr.bf16.mxu1 %v6321_v13 }
 0x10d   :  { %v541_v44 = vadd.f32 1.0, %v5646_v43 }
 0x10e   :  { %5651 = vrcp.f32 %v540_v42 }
 0x10f   :  { %5653 = vrcp.f32 %v541_v44 }
 0x114   :  { %v6279_v45 = vpop.eup %5647 }
 0x115   :  { %v6282_v48 = vpop.eup %5649  ;;  %v594_v38 = vsub.f32 1.0, %v6279_v45  ;;  %v618_v40 = vmul.f32 0.0, %v6279_v45 }
 0x116   :  { %v595_v43 = vsub.f32 1.0, %v6282_v48 }
 0x118   :  { %v6285_v49 = vpop.eup %5651 }
 0x119   :  { %v6291_v54 = vpop.eup %5653 }
 0x16d   :  { %v555_v46 = vpop.permute.xlu0 %554 }
 0x16e   :  { %v566_v47 = vmul.f32 %v6279_v45, %v555_v46  ;;  %v596_v46 = vsub.f32 1.0, %v6285_v49  ;;  %v597_v45 = vsub.f32 1.0, %v6291_v54 }
 0x170   :  { %574 = vrot.lane.b32.xlu0 %v566_v47, %s6157_s28  ;;  %v619_v47 = vmul.f32 0.0, %v6282_v48 }
 0x171   :  { %v557_v50 = vpop.permute.xlu0 %556  ;;  %v559_v51 = vpop.permute.xlu1 %558 }
 0x172   :  { %v567_v52 = vmul.f32 %v6282_v48, %v557_v50  ;;  %v568_v53 = vmul.f32 %v6285_v49, %v559_v51 }
 0x174   :  { %576 = vrot.lane.b32.xlu1 %v567_v52, %s6157_s28  ;;  %578 = vrot.lane.b32.xlu0 %v568_v53, %s6157_s28  ;;  %v620_v52 = vmul.f32 0.0, %v6285_v49  ;;  %v6436_v49 = vpop.f32.mrb[0].mxu1 }
 0x175   :  { %v561_v55 = vpop.permute.xlu1 %560 }
 0x176   :  { %v569_v56 = vmul.f32 %v6291_v54, %v561_v55 }
 0x178   :  { %580 = vrot.lane.b32.xlu1 %v569_v56, %s6157_s28 }
 0x1e2   :  { %v575_v57 = vpop.permute.xlu0 %574 }
 0x1e3   :  { %v586_v58 = vadd.f32 %v5572_v27, %v575_v57  ;;  %v40_v27 = vld [vmem:[%s7948_s0 + $0xc0] sm:$0xff] }
 0x1e4   :  { %5009 = vmatprep.mubr.msk.f32.mxu1 %vm53_vm0, %v40_v27 }
 0x1e5   :  { %5655 = vtanh.f32 %v586_v58  ;;  %5010 = vmatmul.mubr.msk.f32.gmra.mrb[10].mxu1 %vm53_vm0, %v41_v28  ;;  %v621_v58 = vmul.f32 0.0, %v6291_v54 }
 0x1e6   :  { %v577_v59 = vpop.permute.xlu1 %576  ;;  %v579_v60 = vpop.permute.xlu0 %578  ;;  %5012 = vmatprep.mubr.msk.f32.mxu1 %vm53_vm0, %v42_v29 }
 0x1e7   :  { %v587_v61 = vadd.f32 %v5571_v30, %v577_v59  ;;  %v588_v62 = vadd.f32 %v5574_v31, %v579_v60  ;;  %v43_v30 = vld [vmem:[%s7948_s0 + $0xd8] sm:$0xff]  ;;  %v44_v31 = vld [vmem:[%s7948_s0 + $0xe0] sm:$0xff]  ;;  %v6438_v60 = vpop.f32.mrb[1].mxu1 }
 0x1e9   :  { %5657 = vtanh.f32 %v587_v61  ;;  %5013 = vmatmul.mubr.msk.f32.gmra.mrb[12].mxu1 %vm53_vm0, %v43_v30  ;;  %v6440_v61 = vpop.f32.mrb[2].mxu1 }
 0x1ea   :  { %5659 = vtanh.f32 %v588_v62  ;;  %v581_v63 = vpop.permute.xlu1 %580  ;;  %5015 = vmatprep.mubr.msk.f32.mxu1 %vm53_vm0, %v44_v31  ;;  %v6442_v62 = vpop.f32.mrb[3].mxu1 }
 0x1eb   :  { %v589_v0 = vadd.f32 %v5573_v32, %v581_v63  ;;  %v45_v32 = vld [vmem:[%s7948_s0 + $0xe8] sm:$0xff]  ;;  %v6444_v54 = vpop.f32.mrb[4].mxu1 }
 0x1ec   :  { %v6446_v63 = vpop.f32.mrb[5].mxu1 }
 0x1ed   :  { %5661 = vtanh.f32 %v589_v0  ;;  %5016 = vmatmul.mubr.msk.f32.gmra.mrb[14].mxu1 %vm53_vm0, %v45_v32  ;;  %v6448_v0 = vpop.f32.mrb[6].mxu1 }
 0x1ee   :  { %5018 = vmatprep.mubr.msk.f32.mxu1 %vm53_vm0, %v46_v33 }
 0x1ef   :  { %v5656_v1 = vpop.eup %5655 }
 0x1f0   :  { %602 = vrot.lane.b32.xlu0 %v5656_v1, %s6158_s8  ;;  %v6450_v1 = vpop.f32.mrb[7].mxu1 }
 0x1f1   :  { %5019 = vmatmul.mubr.msk.f32.gmra.mrb[16].mxu1 %vm53_vm0, %v47_v34  ;;  %v6452_v2 = vpop.f32.mrb[8].mxu1 }
 0x1f2   :  { %v6454_v3 = vpop.f32.mrb[9].mxu1 }
 0x1f3   :  { %v5658_v7 = vpop.eup %5657 }
 0x1f4   :  { %v5660_v12 = vpop.eup %5659  ;;  %604 = vrot.lane.b32.xlu1 %v5658_v7, %s6158_s8 }
 0x1f5   :  { %606 = vrot.lane.b32.xlu0 %v5660_v12, %s6158_s8 }
 0x1f7   :  { %v5662_v20 = vpop.eup %5661 }
 0x1f8   :  { %608 = vrot.lane.b32.xlu1 %v5662_v20, %s6158_s8 }
 0x262   :  { %v603_v39 = vpop.permute.xlu0 %602 }
 0x263   :  { %v614_v41 = vmul.f32 %v603_v39, %v594_v38 }
 0x265   :  { %v6414_v42 = vadd.f32 %v618_v40, %v614_v41 }
 0x266   :  { %v605_v44 = vpop.permute.xlu1 %604 }
 0x267   :  { %v615_v50 = vmul.f32 %v605_v44, %v595_v43  ;;  %v607_v51 = vpop.permute.xlu0 %606  ;;  %630 = vrot.lane.b32.xlu0 %v6414_v42, %s6158_s8 }
 0x268   :  { %v616_v53 = vmul.f32 %v607_v51, %v596_v46 }
 0x269   :  { %v6422_v55 = vadd.f32 %v619_v47, %v615_v50 }
 0x26a   :  { %v6425_v56 = vadd.f32 %v620_v52, %v616_v53  ;;  %v609_v57 = vpop.permute.xlu1 %608 }
 0x26b   :  { %v617_v59 = vmul.f32 %v609_v57, %v597_v45  ;;  %632 = vrot.lane.b32.xlu1 %v6422_v55, %s6158_s8 }
 0x26c   :  { %634 = vrot.lane.b32.xlu0 %v6425_v56, %s6158_s8 }
 0x26d   :  { %v6432_v48 = vadd.f32 %v621_v58, %v617_v59 }
 0x26f   :  { %636 = vrot.lane.b32.xlu1 %v6432_v48, %s6158_s8 }
 0x2b8   :  { %v6456_v4 = vpop.f32.mrb[10].mxu1 }
 0x2b9   :  { %v6458_v7 = vpop.f32.mrb[11].mxu1 }
 0x2bc   :  { %v6463_v9 = vpop.f32.mrb[12].mxu1 }
 0x2bd   :  { %v6465_v12 = vpop.f32.mrb[13].mxu1 }
 0x2c0   :  { %v6473_v18 = vpop.f32.mrb[14].mxu1 }
 0x2c1   :  { %v6476_v20 = vpop.f32.mrb[15].mxu1 }
 0x2c4   :  { %v6492_v23 = vpop.f32.mrb[16].mxu1 }
 0x2c5   :  { %v6494_v25 = vpop.f32.mrb[17].mxu1 }
 0x2d9   :  { %v631_v5 = vpop.permute.xlu0 %630 }
 0x2da   :  { %5065 = vmatprep.mubr.msk.f32.mxu0 %vm433_vm1, %v631_v5  ;;  %v642_v8 = vsel %vm433_vm1, %v631_v5, 0.0 }
 0x2db   :  { %5051 = vmatprep.mubr.msk.f32.mxu1 %vm646_vm2, %v642_v8 }
 0x2dd   :  { %v633_v10 = vpop.permute.xlu1 %632 }
 0x2de   :  { %v643_v14 = vsel %vm433_vm1, %v633_v10, 0.0  ;;  %v635_v15 = vpop.permute.xlu0 %634  ;;  %5066 = vmatmul.mubr.msk.f32.vlgmr.msra.gmra.mrb[4].mxu0 %vm433_vm1, %v633_v10 }
 0x2df   :  { %5052 = vmatmul.mubr.msk.f32.vlgmr.msra.gmra.mrb[18].mxu1 %vm646_vm2, %v643_v14  ;;  %5068 = vmatprep.mubr.msk.f32.mxu0 %vm433_vm1, %v635_v15  ;;  %v644_v17 = vsel %vm433_vm1, %v635_v15, 0.0 }
 0x2e0   :  { %5054 = vmatprep.mubr.msk.f32.mxu1 %vm646_vm2, %v644_v17  ;;  %5420 = vmatpush3.bf16.msra.mxu0 %v6195_v6 }
 0x2e1   :  { %v637_v19 = vpop.permute.xlu1 %636  ;;  %5422 = vmatprep.subr.bf16.mxu0 %v6210_v11  ;;  %5404 = vmatpush3.bf16.msra.mxu1 %v6321_v13 }
 0x2e2   :  { %5069 = vmatmul.mubr.msk.f32.gmra.mrb[6].mxu0 %vm433_vm1, %v637_v19  ;;  %v645_v21 = vsel %vm433_vm1, %v637_v19, 0.0  ;;  %5406 = vmatprep.subr.bf16.mxu1 %v6331_v16 }
 0x2e3   :  { %5055 = vmatmul.mubr.msk.f32.gmra.mrb[20].mxu1 %vm646_vm2, %v645_v21 }
 0x2e4   :  { %5424 = vmatpush3.bf16.msra.mxu0 %v6210_v11 }
 0x2e5   :  { %5408 = vmatpush3.bf16.msra.mxu1 %v6331_v16  ;;  %5442 = vmatprep.subr.bf16.mxu0 %v6195_v6 }
 0x2e6   :  { %5410 = vmatprep.subr.bf16.mxu1 %v6350_v22 }
 0x2e9   :  { %5412 = vmatpush3.bf16.msra.mxu1 %v6350_v22 }
 0x2ea   :  { %5414 = vmatprep.subr.bf16.mxu1 %v6407_v37 }
 0x2ed   :  { %5416 = vmatpush3.bf16.msra.mxu1 %v6407_v37 }
 0x2ee   :  { %5426 = vmatprep.subr.bf16.mxu1 %v6321_v13 }
 0x3b1   :  { %v5067_v26 = vpop.f32.mrb[4].mxu0 }
 0x3b2   :  { %v5575_v27 = vadd.f32 %v5067_v26, %v6269_v24  ;;  %v6497_v28 = vpop.f32.mrb[18].mxu1  ;;  %v942_v29 = vpop.f32.mrb[5].mxu0 }
 0x3b3   :  { %v5576_v30 = vadd.f32 %v6269_v24, %v942_v29  ;;  %v6500_v31 = vpop.f32.mrb[19].mxu1 }
 0x3b4   :  { %995 = vrot.lane.b32.xlu1 %v5575_v27, %s6156_s27  ;;  %v4567_v39 = vmul.f32 -1.442695, %v5575_v27 }
 0x3b5   :  { %993 = vrot.lane.b32.xlu0 %v5576_v30, %s6156_s27  ;;  %v5070_v32 = vpop.f32.mrb[6].mxu0  ;;  %v4566_v40 = vmul.f32 -1.442695, %v5576_v30 }
 0x3b6   :  { %v5577_v33 = vadd.f32 %v5070_v32, %v6269_v24  ;;  %v6505_v34 = vpop.f32.mrb[20].mxu1  ;;  %v952_v35 = vpop.f32.mrb[7].mxu0  ;;  %5663 = vpow2.f32 %v4567_v39 }
 0x3b7   :  { %v5578_v36 = vadd.f32 %v6269_v24, %v952_v35  ;;  %v6508_v38 = vpop.f32.mrb[21].mxu1  ;;  %5665 = vpow2.f32 %v4566_v40 }
 0x3b8   :  { %999 = vrot.lane.b32.xlu1 %v5577_v33, %s6156_s27  ;;  %v4569_v41 = vmul.f32 -1.442695, %v5577_v33 }
 0x3b9   :  { %997 = vrot.lane.b32.xlu0 %v5578_v36, %s6156_s27  ;;  %v4568_v43 = vmul.f32 -1.442695, %v5578_v36 }
 0x3ba   :  { %5667 = vpow2.f32 %v4569_v41 }
 0x3bb   :  { %5669 = vpow2.f32 %v4568_v43 }
 0x3c0   :  { %v5664_v44 = vpop.eup %5663 }
 0x3c1   :  { %v5666_v46 = vpop.eup %5665  ;;  %v978_v47 = vadd.f32 1.0, %v5664_v44 }
 0x3c2   :  { %v977_v51 = vadd.f32 1.0, %v5666_v46 }
 0x3c3   :  { %5671 = vrcp.f32 %v978_v47 }
 0x3c4   :  { %v5668_v50 = vpop.eup %5667  ;;  %5673 = vrcp.f32 %v977_v51 }
 0x3c5   :  { %v5670_v52 = vpop.eup %5669  ;;  %v980_v53 = vadd.f32 1.0, %v5668_v50 }
 0x3c6   :  { %v979_v45 = vadd.f32 1.0, %v5670_v52 }
 0x3c7   :  { %5675 = vrcp.f32 %v980_v53 }
 0x3c8   :  { %5677 = vrcp.f32 %v979_v45 }
 0x3cd   :  { %v5672_v57 = vpop.eup %5671 }
 0x3ce   :  { %v5674_v59 = vpop.eup %5673 }
 0x3cf   :  { %v1033_v52 = vsub.f32 1.0, %v5674_v59  ;;  %v1057_v45 = vmul.f32 %v5674_v59, %v6414_v42 }
 0x3d1   :  { %v5676_v14 = vpop.eup %5675 }
 0x3d2   :  { %v5678_v17 = vpop.eup %5677 }
 0x426   :  { %v996_v58 = vpop.permute.xlu1 %995 }
 0x427   :  { %v1006_v5 = vmul.f32 %v5672_v57, %v996_v58  ;;  %v994_v8 = vpop.permute.xlu0 %993 }
 0x428   :  { %v1005_v10 = vmul.f32 %v5674_v59, %v994_v8  ;;  %v1036_v8 = vsub.f32 1.0, %v5676_v14  ;;  %v6537_v59 = vld [vmem:[%s7949_s2 + $0x1] ss:$0 sm:$0xff] }
 0x429   :  { %1015 = vrot.lane.b32.xlu1 %v1006_v5, %s6157_s28 }
 0x42a   :  { %v1000_v15 = vpop.permute.xlu1 %999  ;;  %1013 = vrot.lane.b32.xlu0 %v1005_v10, %s6157_s28 }
 0x42b   :  { %v1008_v19 = vmul.f32 %v5676_v14, %v1000_v15  ;;  %v998_v21 = vpop.permute.xlu0 %997 }
 0x42c   :  { %v1007_v26 = vmul.f32 %v5678_v17, %v998_v21  ;;  %v1060_v21 = vmul.f32 %v5676_v14, %v6432_v48  ;;  %v726_v48 = vadd.f32 %v6537_v59, %v6500_v31  ;;  %v6556_v14 = vadd.f32 %v6505_v34, %v6537_v59 }
 0x42d   :  { %1019 = vrot.lane.b32.xlu1 %v1008_v19, %s6157_s28  ;;  %v1035_v19 = vsub.f32 1.0, %v5678_v17 }
 0x42e   :  { %1017 = vrot.lane.b32.xlu0 %v1007_v26, %s6157_s28  ;;  %v4558_v31 = vmul.f32 -1.442695, %v726_v48 }
 0x49b   :  { %v1016_v29 = vpop.permute.xlu1 %1015 }
 0x49c   :  { %v1026_v32 = vadd.f32 %v5575_v27, %v1016_v29  ;;  %v1014_v35 = vpop.permute.xlu0 %1013  ;;  %v1034_v27 = vsub.f32 1.0, %v5672_v57 }
 0x49d   :  { %v1025_v39 = vadd.f32 %v5576_v30, %v1014_v35  ;;  %v4561_v35 = vmul.f32 -1.442695, %v6556_v14 }
 0x49e   :  { %5679 = vtanh.f32 %v1026_v32 }
 0x49f   :  { %5681 = vtanh.f32 %v1025_v39  ;;  %v1020_v40 = vpop.permute.xlu1 %1019 }
 0x4a0   :  { %v1028_v41 = vadd.f32 %v5577_v33, %v1020_v40  ;;  %v1018_v43 = vpop.permute.xlu0 %1017  ;;  %v1058_v33 = vmul.f32 %v5672_v57, %v6422_v55  ;;  %v1059_v55 = vmul.f32 %v5678_v17, %v6425_v56  ;;  %v6547_v56 = vadd.f32 %v6497_v28, %v6537_v59 }
 0x4a1   :  { %v1027_v44 = vadd.f32 %v5578_v36, %v1018_v43  ;;  %v6560_v17 = vadd.f32 %v6537_v59, %v6508_v38 }
 0x4a2   :  { %5683 = vtanh.f32 %v1028_v41  ;;  %v4559_v28 = vmul.f32 -1.442695, %v6547_v56 }
 0x4a3   :  { %5685 = vtanh.f32 %v1027_v44  ;;  %v4560_v34 = vmul.f32 -1.442695, %v6560_v17 }
 0x4a4   :  { %5687 = vpow2.f32 %v4559_v28 }
 0x4a5   :  { %5689 = vpow2.f32 %v4558_v31 }
 0x4a6   :  { %5691 = vpow2.f32 %v4561_v35 }
 0x4a7   :  { %5693 = vpow2.f32 %v4560_v34 }
 0x4a8   :  { %v5680_v46 = vpop.eup %5679 }
 0x4a9   :  { %v5682_v47 = vpop.eup %5681  ;;  %1043 = vrot.lane.b32.xlu1 %v5680_v46, %s6158_s8 }
 0x4aa   :  { %1041 = vrot.lane.b32.xlu0 %v5682_v47, %s6158_s8 }
 0x4ac   :  { %v5684_v50 = vpop.eup %5683 }
 0x4ad   :  { %v5686_v51 = vpop.eup %5685  ;;  %1047 = vrot.lane.b32.xlu1 %v5684_v50, %s6158_s8 }
 0x4ae   :  { %1045 = vrot.lane.b32.xlu0 %v5686_v51, %s6158_s8  ;;  %v5688_v39 = vpop.eup %5687 }
 0x4af   :  { %v5690_v38 = vpop.eup %5689  ;;  %v757_v40 = vadd.f32 1.0, %v5688_v39 }
 0x4b0   :  { %v5692_v41 = vpop.eup %5691  ;;  %v756_v43 = vadd.f32 1.0, %v5690_v38 }
 0x4b1   :  { %v5694_v44 = vpop.eup %5693  ;;  %5695 = vrcp.f32 %v757_v40  ;;  %v759_v46 = vadd.f32 1.0, %v5692_v41 }
 0x4b2   :  { %5697 = vrcp.f32 %v756_v43  ;;  %v758_v47 = vadd.f32 1.0, %v5694_v44 }
 0x4b3   :  { %5699 = vrcp.f32 %v759_v46 }
 0x4b4   :  { %5701 = vrcp.f32 %v758_v47 }
 0x51b   :  { %v1044_v30 = vpop.permute.xlu1 %1043 }
 0x51c   :  { %v1054_v36 = vmul.f32 %v1044_v30, %v1034_v27  ;;  %v1042_v53 = vpop.permute.xlu0 %1041 }
 0x51d   :  { %v1053_v58 = vmul.f32 %v1042_v53, %v1033_v52  ;;  %v6587_v52 = vpop.eup %5695 }
 0x51e   :  { %v6522_v5 = vadd.f32 %v1058_v33, %v1054_v36  ;;  %v6590_v36 = vpop.eup %5697 }
 0x51f   :  { %v6524_v10 = vadd.f32 %v1057_v45, %v1053_v58  ;;  %v1048_v15 = vpop.permute.xlu1 %1047 }
 0x520   :  { %v1056_v26 = vmul.f32 %v1048_v15, %v1036_v8  ;;  %1071 = vrot.lane.b32.xlu1 %v6522_v5, %s6158_s8  ;;  %v1046_v29 = vpop.permute.xlu0 %1045  ;;  %v6596_v8 = vpop.eup %5699 }
 0x521   :  { %v1055_v57 = vmul.f32 %v1046_v29, %v1035_v19  ;;  %1069 = vrot.lane.b32.xlu0 %v6524_v10, %s6158_s8  ;;  %v6599_v19 = vpop.eup %5701 }
 0x522   :  { %v6532_v42 = vadd.f32 %v1060_v21, %v1056_v26 }
 0x523   :  { %v6539_v32 = vadd.f32 %v1059_v55, %v1055_v57 }
 0x524   :  { %1075 = vrot.lane.b32.xlu1 %v6532_v42, %s6158_s8 }
 0x525   :  { %1073 = vrot.lane.b32.xlu0 %v6539_v32, %s6158_s8 }
 0x528   :  { %774 = vrot.lane.b32.xlu1 %v6547_v56, %s6156_s27 }
 0x529   :  { %772 = vrot.lane.b32.xlu0 %v726_v48, %s6156_s27 }
 0x52c   :  { %778 = vrot.lane.b32.xlu1 %v6556_v14, %s6156_s27 }
 0x52d   :  { %776 = vrot.lane.b32.xlu0 %v6560_v17, %s6156_s27 }
 0x592   :  { %v6569_v50 = vpop.permute.xlu1 %1071 }
 0x593   :  { %v6571_v51 = vpop.permute.xlu0 %1069 }
 0x594   :  { %5101 = vmatprep.mubr.msk.f32.mxu0 %vm433_vm1, %v6571_v51 }
 0x595   :  { %5102 = vmatmul.mubr.msk.f32.vlgmr.msra.gmra.mrb[8].mxu0 %vm433_vm1, %v6569_v50 }
 0x596   :  { %v6577_v27 = vpop.permute.xlu1 %1075  ;;  %5444 = vmatpush3.bf16.msra.mxu0 %v6195_v6 }
 0x597   :  { %v6580_v30 = vpop.permute.xlu0 %1073  ;;  %5446 = vmatprep.subr.bf16.mxu0 %v6210_v11 }
 0x598   :  { %5104 = vmatprep.mubr.msk.f32.mxu0 %vm433_vm1, %v6580_v30 }
 0x599   :  { %5105 = vmatmul.mubr.msk.f32.gmra.mrb[10].mxu0 %vm433_vm1, %v6577_v27 }
 0x59a   :  { %v775_v33 = vpop.permute.xlu1 %774  ;;  %5448 = vmatpush3.bf16.msra.mxu0 %v6210_v11 }
 0x59b   :  { %v785_v53 = vmul.f32 %v6587_v52, %v775_v33  ;;  %v773_v45 = vpop.permute.xlu0 %772  ;;  %5466 = vmatprep.subr.bf16.mxu0 %v6195_v6 }
 0x59c   :  { %v784_v58 = vmul.f32 %v6590_v36, %v773_v45 }
 0x59d   :  { %794 = vrot.lane.b32.xlu1 %v785_v53, %s6157_s28 }
 0x59e   :  { %v779_v15 = vpop.permute.xlu1 %778  ;;  %792 = vrot.lane.b32.xlu0 %v784_v58, %s6157_s28 }
 0x59f   :  { %v787_v21 = vmul.f32 %v6596_v8, %v779_v15  ;;  %v777_v26 = vpop.permute.xlu0 %776 }
 0x5a0   :  { %v786_v29 = vmul.f32 %v6599_v19, %v777_v26 }
 0x5a1   :  { %798 = vrot.lane.b32.xlu1 %v787_v21, %s6157_s28 }
 0x5a2   :  { %796 = vrot.lane.b32.xlu0 %v786_v29, %s6157_s28 }
 0x60f   :  { %v795_v15 = vpop.permute.xlu1 %794 }
 0x610   :  { %v793_v55 = vpop.permute.xlu0 %792  ;;  %v805_v29 = vadd.f32 %v795_v15, %v6547_v56 }
 0x611   :  { %v804_v57 = vadd.f32 %v793_v55, %v726_v48 }
 0x613   :  { %5703 = vtanh.f32 %v804_v57 }
 0x614   :  { %v797_v55 = vpop.permute.xlu0 %796 }
 0x61d   :  { %v5704_v41 = vpop.eup %5703 }
 0x668   :  { %v5103_v28 = vpop.f32.mrb[8].mxu0 }
 0x669   :  { %v6606_v31 = vadd.f32 %v5103_v28, %v6269_v24  ;;  %v1380_v35 = vpop.f32.mrb[9].mxu0  ;;  %v799_v28 = vpop.permute.xlu1 %798 }
 0x66a   :  { %v6609_v34 = vadd.f32 %v6269_v24, %v1380_v35  ;;  %v806_v35 = vadd.f32 %v797_v55, %v6560_v17 }
 0x66b   :  { %1433 = vrot.lane.b32.xlu1 %v6606_v31, %s6156_s27  ;;  %v4583_v43 = vmul.f32 -1.442695, %v6606_v31 }
 0x66c   :  { %v5106_v39 = vpop.f32.mrb[10].mxu0  ;;  %1431 = vrot.lane.b32.xlu0 %v6609_v34, %s6156_s27  ;;  %v4582_v44 = vmul.f32 -1.442695, %v6609_v34 }
 0x66d   :  { %v6616_v38 = vadd.f32 %v5106_v39, %v6269_v24  ;;  %v1390_v48 = vpop.f32.mrb[11].mxu0  ;;  %5705 = vpow2.f32 %v4583_v43  ;;  %v807_v43 = vadd.f32 %v799_v28, %v6556_v14  ;;  %v812_v14 = vsub.f32 1.0, %v6590_v36 }
 0x66e   :  { %v6619_v40 = vadd.f32 %v6269_v24, %v1390_v48  ;;  %5707 = vpow2.f32 %v4582_v44 }
 0x66f   :  { %1437 = vrot.lane.b32.xlu1 %v6616_v38, %s6156_s27  ;;  %v4585_v24 = vmul.f32 -1.442695, %v6616_v38 }
 0x670   :  { %1435 = vrot.lane.b32.xlu0 %v6619_v40, %s6156_s27  ;;  %v4584_v46 = vmul.f32 -1.442695, %v6619_v40 }
 0x672   :  { %5709 = vpow2.f32 %v4584_v46 }
 0x673   :  { %5711 = vpow2.f32 %v4585_v24 }
 0x674   :  { %820 = vrot.lane.b32.xlu0 %v5704_v41, %s6158_s8 }
 0x677   :  { %v5706_v47 = vpop.eup %5705 }
 0x678   :  { %v5708_v33 = vpop.eup %5707  ;;  %v1416_v53 = vadd.f32 1.0, %v5706_v47 }
 0x679   :  { %v1415_v45 = vadd.f32 1.0, %v5708_v33 }
 0x67a   :  { %5713 = vrcp.f32 %v1416_v53 }
 0x67b   :  { %5715 = vrcp.f32 %v1415_v45 }
 0x67c   :  { %v5710_v58 = vpop.eup %5709 }
 0x67d   :  { %v1417_v21 = vadd.f32 1.0, %v5710_v58  ;;  %v5712_v26 = vpop.eup %5711 }
 0x67e   :  { %v1418_v57 = vadd.f32 1.0, %v5712_v26 }
 0x67f   :  { %5717 = vrcp.f32 %v1417_v21  ;;  %v836_v21 = vmul.f32 0.0, %v6590_v36 }
 0x680   :  { %5719 = vtanh.f32 %v805_v29 }
 0x681   :  { %5721 = vrcp.f32 %v1418_v57 }
 0x682   :  { %5723 = vtanh.f32 %v806_v35 }
 0x683   :  { %5725 = vtanh.f32 %v807_v43 }
 0x684   :  { %v6632_v39 = vpop.eup %5713 }
 0x685   :  { %v6634_v41 = vpop.eup %5715 }
 0x689   :  { %v6641_v24 = vpop.eup %5717 }
 0x68a   :  { %v5720_v33 = vpop.eup %5719 }
 0x68b   :  { %v6647_v45 = vpop.eup %5721 }
 0x68c   :  { %v5724_v29 = vpop.eup %5723 }
 0x68d   :  { %v5726_v28 = vpop.eup %5725 }
 0x6dd   :  { %v1434_v48 = vpop.permute.xlu1 %1433 }
 0x6de   :  { %v1444_v44 = vmul.f32 %v6632_v39, %v1434_v48  ;;  %v1432_v46 = vpop.permute.xlu0 %1431 }
 0x6df   :  { %v1443_v56 = vmul.f32 %v6634_v41, %v1432_v46 }
 0x6e0   :  { %1453 = vrot.lane.b32.xlu1 %v1444_v44, %s6157_s28  ;;  %v813_v44 = vsub.f32 1.0, %v6587_v52 }
 0x6e1   :  { %1451 = vrot.lane.b32.xlu0 %v1443_v56, %s6157_s28  ;;  %v1438_v53 = vpop.permute.xlu1 %1437 }
 0x6e2   :  { %v1436_v17 = vpop.permute.xlu0 %1435  ;;  %v1446_v15 = vmul.f32 %v6647_v45, %v1438_v53  ;;  %v814_v53 = vsub.f32 1.0, %v6599_v19 }
 0x6e3   :  { %v1445_v47 = vmul.f32 %v6641_v24, %v1436_v17 }
 0x6e5   :  { %822 = vrot.lane.b32.xlu0 %v5720_v33, %s6158_s8  ;;  %1455 = vrot.lane.b32.xlu1 %v1445_v47, %s6157_s28 }
 0x6e6   :  { %v821_v58 = vpop.permute.xlu0 %820 }
 0x6e7   :  { %v832_v26 = vmul.f32 %v821_v58, %v812_v14 }
 0x6e9   :  { %v6651_v55 = vadd.f32 %v836_v21, %v832_v26  ;;  %824 = vrot.lane.b32.xlu0 %v5724_v29, %s6158_s8  ;;  %1457 = vrot.lane.b32.xlu1 %v1446_v15, %s6157_s28  ;;  %v838_v15 = vmul.f32 0.0, %v6599_v19 }
 0x6eb   :  { %v1081_v57 = vsel %vm433_vm1, %v6571_v51, %v6651_v55  ;;  %v837_v51 = vmul.f32 0.0, %v6587_v52 }
 0x6ec   :  { %5087 = vmatprep.mubr.msk.f32.mxu1 %vm646_vm2, %v1081_v57 }
 0x6ed   :  { %826 = vrot.lane.b32.xlu1 %v5726_v28, %s6158_s8 }
 0x752   :  { %v1454_v35 = vpop.permute.xlu1 %1453 }
 0x753   :  { %v1464_v36 = vadd.f32 %v6606_v31, %v1454_v35  ;;  %v1452_v48 = vpop.permute.xlu0 %1451 }
 0x754   :  { %v1463_v43 = vadd.f32 %v6609_v34, %v1452_v48 }
 0x755   :  { %5727 = vtanh.f32 %v1464_v36  ;;  %v1472_v36 = vsub.f32 1.0, %v6632_v39 }
 0x756   :  { %5729 = vtanh.f32 %v1463_v43  ;;  %v1496_v43 = vmul.f32 %v6632_v39, %v6522_v5 }
 0x757   :  { %v1456_v46 = vpop.permute.xlu1 %1455  ;;  %v823_v56 = vpop.permute.xlu0 %822 }
 0x758   :  { %v1465_v17 = vadd.f32 %v6619_v40, %v1456_v46  ;;  %v833_v47 = vmul.f32 %v823_v56, %v813_v44  ;;  %v815_v40 = vsub.f32 1.0, %v6596_v8  ;;  %v1495_v56 = vmul.f32 %v6634_v41, %v6524_v10 }
 0x759   :  { %v1474_v10 = vsub.f32 1.0, %v6647_v45 }
 0x75a   :  { %5731 = vtanh.f32 %v1465_v17  ;;  %v6665_v33 = vadd.f32 %v837_v51, %v833_v47 }
 0x75b   :  { %v1458_v31 = vpop.permute.xlu1 %1457  ;;  %v825_v14 = vpop.permute.xlu0 %824 }
 0x75c   :  { %v1082_v34 = vsel %vm433_vm1, %v6569_v50, %v6665_v33  ;;  %v1466_v58 = vadd.f32 %v6616_v38, %v1458_v31  ;;  %v834_v21 = vmul.f32 %v825_v14, %v814_v53  ;;  %v839_v50 = vmul.f32 0.0, %v6596_v8 }
 0x75d   :  { %5088 = vmatmul.mubr.msk.f32.vlgmr.msra.gmra.mrb[22].mxu1 %vm646_vm2, %v1082_v34  ;;  %v1473_v53 = vsub.f32 1.0, %v6641_v24  ;;  %v1497_v14 = vmul.f32 %v6641_v24, %v6539_v32  ;;  %v1498_v34 = vmul.f32 %v6647_v45, %v6532_v42 }
 0x75e   :  { %5733 = vtanh.f32 %v1466_v58  ;;  %v6674_v52 = vadd.f32 %v838_v15, %v834_v21  ;;  %5428 = vmatpush3.bf16.msra.mxu1 %v6321_v13 }
 0x75f   :  { %v5728_v26 = vpop.eup %5727  ;;  %v827_v29 = vpop.permute.xlu1 %826  ;;  %5430 = vmatprep.subr.bf16.mxu1 %v6331_v16 }
 0x760   :  { %v5730_v57 = vpop.eup %5729  ;;  %v835_v38 = vmul.f32 %v827_v29, %v815_v40  ;;  %1481 = vrot.lane.b32.xlu1 %v5728_v26, %s6158_s8  ;;  %v1083_v19 = vsel %vm433_vm1, %v6580_v30, %v6674_v52 }
 0x761   :  { %1479 = vrot.lane.b32.xlu0 %v5730_v57, %s6158_s8  ;;  %5090 = vmatprep.mubr.msk.f32.mxu1 %vm646_vm2, %v1083_v19 }
 0x762   :  { %v6686_v28 = vadd.f32 %v839_v50, %v835_v38  ;;  %5432 = vmatpush3.bf16.msra.mxu1 %v6331_v16 }
 0x763   :  { %5434 = vmatprep.subr.bf16.mxu1 %v6350_v22 }
 0x764   :  { %v5732_v35 = vpop.eup %5731  ;;  %v1084_v8 = vsel %vm433_vm1, %v6577_v27, %v6686_v28  ;;  %v1471_v27 = vsub.f32 1.0, %v6634_v41 }
 0x765   :  { %1483 = vrot.lane.b32.xlu0 %v5732_v35, %s6158_s8  ;;  %5091 = vmatmul.mubr.msk.f32.gmra.mrb[24].mxu1 %vm646_vm2, %v1084_v8 }
 0x766   :  { %5436 = vmatpush3.bf16.msra.mxu1 %v6350_v22 }
 0x767   :  { %5438 = vmatprep.subr.bf16.mxu1 %v6407_v37 }
 0x768   :  { %v5734_v30 = vpop.eup %5733 }
 0x769   :  { %1485 = vrot.lane.b32.xlu1 %v5734_v30, %s6158_s8 }
 0x76a   :  { %5440 = vmatpush3.bf16.msra.mxu1 %v6407_v37 }
 0x76b   :  { %5450 = vmatprep.subr.bf16.mxu1 %v6321_v13 }
 0x7d2   :  { %v1482_v48 = vpop.permute.xlu1 %1481 }
 0x7d3   :  { %v1492_v44 = vmul.f32 %v1482_v48, %v1472_v36  ;;  %v1480_v46 = vpop.permute.xlu0 %1479 }
 0x7d4   :  { %v1491_v17 = vmul.f32 %v1480_v46, %v1471_v27 }
 0x7d5   :  { %v6706_v51 = vadd.f32 %v1496_v43, %v1492_v44 }
 0x7d6   :  { %v6708_v47 = vadd.f32 %v1495_v56, %v1491_v17 }
 0x7d7   :  { %1509 = vrot.lane.b32.xlu1 %v6706_v51, %s6158_s8  ;;  %v1484_v31 = vpop.permute.xlu0 %1483 }
 0x7d8   :  { %v1493_v5 = vmul.f32 %v1484_v31, %v1473_v53  ;;  %1507 = vrot.lane.b32.xlu0 %v6708_v47, %s6158_s8 }
 0x7da   :  { %v6717_v39 = vadd.f32 %v1497_v14, %v1493_v5 }
 0x7db   :  { %v1486_v41 = vpop.permute.xlu1 %1485 }
 0x7dc   :  { %v1494_v58 = vmul.f32 %v1486_v41, %v1474_v10  ;;  %1511 = vrot.lane.b32.xlu0 %v6717_v39, %s6158_s8 }
 0x7de   :  { %v6724_v15 = vadd.f32 %v1498_v34, %v1494_v58 }
 0x7e0   :  { %1513 = vrot.lane.b32.xlu1 %v6724_v15, %s6158_s8 }
 0x830   :  { %v5089_v32 = vpop.f32.mrb[22].mxu1 }
 0x831   :  { %v1169_v24 = vadd.f32 %v5089_v32, %v6537_v59  ;;  %v1163_v21 = vpop.f32.mrb[23].mxu1 }
 0x832   :  { %v1164_v40 = vadd.f32 %v6537_v59, %v1163_v21 }
 0x833   :  { %1212 = vrot.lane.b32.xlu1 %v1169_v24, %s6156_s27  ;;  %v4575_v35 = vmul.f32 -1.442695, %v1169_v24 }
 0x834   :  { %1210 = vrot.lane.b32.xlu0 %v1164_v40, %s6156_s27  ;;  %v4574_v8 = vmul.f32 -1.442695, %v1164_v40 }
 0x835   :  { %5735 = vpow2.f32 %v4575_v35 }
 0x836   :  { %5737 = vpow2.f32 %v4574_v8 }
 0x838   :  { %v5092_v42 = vpop.f32.mrb[24].mxu1 }
 0x839   :  { %v6733_v45 = vadd.f32 %v5092_v42, %v6537_v59  ;;  %v1173_v26 = vpop.f32.mrb[25].mxu1 }
 0x83a   :  { %v6736_v29 = vadd.f32 %v6537_v59, %v1173_v26 }
 0x83b   :  { %1216 = vrot.lane.b32.xlu1 %v6733_v45, %s6156_s27  ;;  %v4577_v30 = vmul.f32 -1.442695, %v6733_v45 }
 0x83c   :  { %1214 = vrot.lane.b32.xlu0 %v6736_v29, %s6156_s27  ;;  %v4576_v36 = vmul.f32 -1.442695, %v6736_v29 }
 0x83d   :  { %5739 = vpow2.f32 %v4577_v30 }
 0x83e   :  { %5741 = vpow2.f32 %v4576_v36 }
 0x83f   :  { %v5736_v48 = vpop.eup %5735 }
 0x840   :  { %v5738_v27 = vpop.eup %5737  ;;  %v1195_v43 = vadd.f32 1.0, %v5736_v48 }
 0x841   :  { %v1194_v44 = vadd.f32 1.0, %v5738_v27 }
 0x842   :  { %5743 = vrcp.f32 %v1195_v43  ;;  %v6783_v43 = vld [vmem:[%s7949_s2] ss:$0 sm:$0xff] }
 0x843   :  { %5745 = vrcp.f32 %v1194_v44 }
 0x847   :  { %v5740_v46 = vpop.eup %5739 }
 0x848   :  { %v5742_v56 = vpop.eup %5741  ;;  %v1197_v17 = vadd.f32 1.0, %v5740_v46 }
 0x849   :  { %v6744_v50 = vpop.permute.xlu1 %1509  ;;  %v1196_v53 = vadd.f32 1.0, %v5742_v56 }
 0x84a   :  { %v6742_v57 = vpop.permute.xlu0 %1507  ;;  %5747 = vrcp.f32 %v1197_v17 }
 0x84b   :  { %5137 = vmatprep.mubr.msk.f32.mxu0 %vm433_vm1, %v6742_v57  ;;  %5749 = vrcp.f32 %v1196_v53 }
 0x84c   :  { %5138 = vmatmul.mubr.msk.f32.vlgmr.msra.gmra.mrb[12].mxu0 %vm433_vm1, %v6744_v50  ;;  %v6764_v31 = vpop.eup %5743 }
 0x84d   :  { %5468 = vmatpush3.bf16.msra.mxu0 %v6195_v6  ;;  %v6766_v5 = vpop.eup %5745 }
 0x84e   :  { %v6751_v38 = vpop.permute.xlu0 %1511  ;;  %5470 = vmatprep.subr.bf16.mxu0 %v6210_v11 }
 0x84f   :  { %5140 = vmatprep.mubr.msk.f32.mxu0 %vm433_vm1, %v6751_v38 }
 0x851   :  { %5472 = vmatpush3.bf16.msra.mxu0 %v6210_v11 }
 0x852   :  { %v6757_v19 = vpop.permute.xlu1 %1513  ;;  %5490 = vmatprep.subr.bf16.mxu0 %v6195_v6 }
 0x853   :  { %5141 = vmatmul.mubr.msk.f32.gmra.mrb[14].mxu0 %vm433_vm1, %v6757_v19 }
 0x854   :  { %v6772_v58 = vpop.eup %5747 }
 0x855   :  { %v6774_v21 = vpop.eup %5749 }
 0x8a5   :  { %v1213_v14 = vpop.permute.xlu1 %1212 }
 0x8a6   :  { %v1223_v10 = vmul.f32 %v6764_v31, %v1213_v14  ;;  %v1211_v41 = vpop.permute.xlu0 %1210  ;;  %v292_v14 = vadd.f32 %v6783_v43, %v6436_v49 }
 0x8a7   :  { %v1222_v34 = vmul.f32 %v6766_v5, %v1211_v41 }
 0x8a8   :  { %1232 = vrot.lane.b32.xlu1 %v1223_v10, %s6157_s28  ;;  %v287_v10 = vadd.f32 %v6783_v43, %v6438_v60 }
 0x8a9   :  { %1230 = vrot.lane.b32.xlu0 %v1222_v34, %s6157_s28 }
 0x8ad   :  { %v1217_v32 = vpop.permute.xlu1 %1216 }
 0x8ae   :  { %v1225_v42 = vmul.f32 %v6772_v58, %v1217_v32  ;;  %v1215_v26 = vpop.permute.xlu0 %1214 }
 0x8af   :  { %v1224_v35 = vmul.f32 %v6774_v21, %v1215_v26 }
 0x8b0   :  { %1236 = vrot.lane.b32.xlu1 %v1225_v42, %s6157_s28 }
 0x8b1   :  { %1234 = vrot.lane.b32.xlu0 %v1224_v35, %s6157_s28 }
 0x91a   :  { %v1233_v8 = vpop.permute.xlu1 %1232 }
 0x91b   :  { %v1231_v30 = vpop.permute.xlu0 %1230  ;;  %v1243_v36 = vadd.f32 %v1233_v8, %v1169_v24 }
 0x91c   :  { %v1242_v48 = vadd.f32 %v1231_v30, %v1164_v40 }
 0x91d   :  { %5751 = vtanh.f32 %v1243_v36 }
 0x91e   :  { %5753 = vtanh.f32 %v1242_v48 }
 0x91f   :  { %v5139_v27 = vpop.f32.mrb[12].mxu0 }
 0x920   :  { %v6786_v44 = vadd.f32 %v6783_v43, %v5139_v27  ;;  %v1818_v46 = vpop.f32.mrb[13].mxu0 }
 0x921   :  { %v6789_v56 = vadd.f32 %v6783_v43, %v1818_v46 }
 0x922   :  { %v1237_v17 = vpop.permute.xlu1 %1236  ;;  %1871 = vrot.lane.b32.xlu1 %v6786_v44, %s6156_s27  ;;  %v4599_v26 = vmul.f32 -1.442695, %v6786_v44 }
 0x923   :  { %v1245_v24 = vadd.f32 %v1237_v17, %v6733_v45  ;;  %1869 = vrot.lane.b32.xlu0 %v6789_v56, %s6156_s27  ;;  %v1235_v40 = vpop.permute.xlu0 %1234  ;;  %v4598_v35 = vmul.f32 -1.442695, %v6789_v56 }
 0x924   :  { %v1244_v53 = vadd.f32 %v1235_v40, %v6736_v29 }
 0x925   :  { %5755 = vtanh.f32 %v1245_v24 }
 0x926   :  { %v5142_v41 = vpop.f32.mrb[14].mxu0  ;;  %5757 = vtanh.f32 %v1244_v53 }
 0x927   :  { %v6801_v34 = vadd.f32 %v5142_v41, %v292_v14  ;;  %v1828_v32 = vpop.f32.mrb[15].mxu0  ;;  %v5752_v45 = vpop.eup %5751  ;;  %5759 = vpow2.f32 %v4599_v26 }
 0x928   :  { %v6803_v42 = vadd.f32 %v1828_v32, %v287_v10  ;;  %v5754_v29 = vpop.eup %5753  ;;  %5761 = vpow2.f32 %v4598_v35 }
 0x929   :  { %1875 = vrot.lane.b32.xlu1 %v6801_v34, %s6156_s27  ;;  %v4601_v8 = vmul.f32 -1.442695, %v6801_v34 }
 0x92a   :  { %1873 = vrot.lane.b32.xlu0 %v6803_v42, %s6156_s27  ;;  %v4600_v30 = vmul.f32 -1.442695, %v6803_v42 }
 0x92b   :  { %5763 = vpow2.f32 %v4601_v8 }
 0x92c   :  { %5765 = vpow2.f32 %v4600_v30 }
 0x92d   :  { %1260 = vrot.lane.b32.xlu1 %v5752_v45, %s6158_s8 }
 0x92e   :  { %1258 = vrot.lane.b32.xlu0 %v5754_v29, %s6158_s8 }
 0x92f   :  { %v5756_v49 = vpop.eup %5755 }
 0x930   :  { %v5758_v60 = vpop.eup %5757 }
 0x931   :  { %1264 = vrot.lane.b32.xlu1 %v5756_v49, %s6158_s8  ;;  %v5760_v36 = vpop.eup %5759 }
 0x932   :  { %1262 = vrot.lane.b32.xlu0 %v5758_v60, %s6158_s8  ;;  %v5762_v48 = vpop.eup %5761  ;;  %v1854_v27 = vadd.f32 1.0, %v5760_v36  ;;  %v1251_v36 = vsub.f32 1.0, %v6764_v31 }
 0x933   :  { %v1853_v46 = vadd.f32 1.0, %v5762_v48 }
 0x934   :  { %5767 = vrcp.f32 %v1854_v27  ;;  %v1250_v27 = vsub.f32 1.0, %v6766_v5 }
 0x935   :  { %v5764_v17 = vpop.eup %5763  ;;  %5769 = vrcp.f32 %v1853_v46  ;;  %v1275_v46 = vmul.f32 %v6764_v31, %v6665_v33 }
 0x936   :  { %v5766_v24 = vpop.eup %5765  ;;  %v1856_v40 = vadd.f32 1.0, %v5764_v17 }
 0x937   :  { %v1855_v53 = vadd.f32 1.0, %v5766_v24 }
 0x938   :  { %5771 = vrcp.f32 %v1856_v40  ;;  %v1274_v40 = vmul.f32 %v6766_v5, %v6651_v55 }
 0x939   :  { %5773 = vrcp.f32 %v1855_v53 }
 0x93e   :  { %v6817_v14 = vpop.eup %5767 }
 0x93f   :  { %v6819_v41 = vpop.eup %5769 }
 0x942   :  { %v6825_v49 = vpop.eup %5771 }
 0x943   :  { %v6827_v26 = vpop.eup %5773 }
 0x994   :  { %v1872_v10 = vpop.permute.xlu1 %1871 }
 0x995   :  { %v1882_v32 = vmul.f32 %v6817_v14, %v1872_v10  ;;  %v1870_v45 = vpop.permute.xlu0 %1869 }
 0x996   :  { %v1881_v29 = vmul.f32 %v6819_v41, %v1870_v45 }
 0x997   :  { %1891 = vrot.lane.b32.xlu1 %v1882_v32, %s6157_s28  ;;  %v1253_v32 = vsub.f32 1.0, %v6772_v58 }
 0x998   :  { %1889 = vrot.lane.b32.xlu0 %v1881_v29, %s6157_s28 }
 0x99b   :  { %v1876_v60 = vpop.permute.xlu1 %1875 }
 0x99c   :  { %v1884_v35 = vmul.f32 %v6825_v49, %v1876_v60  ;;  %v1874_v8 = vpop.permute.xlu0 %1873  ;;  %v1252_v60 = vsub.f32 1.0, %v6774_v21 }
 0x99d   :  { %v1883_v30 = vmul.f32 %v6827_v26, %v1874_v8 }
 0x99e   :  { %1895 = vrot.lane.b32.xlu1 %v1884_v35, %s6157_s28  ;;  %v1277_v35 = vmul.f32 %v6772_v58, %v6686_v28 }
 0x99f   :  { %v1261_v48 = vpop.permute.xlu1 %1260  ;;  %1893 = vrot.lane.b32.xlu0 %v1883_v30, %s6157_s28  ;;  %v1276_v30 = vmul.f32 %v6774_v21, %v6674_v52 }
 0x9a0   :  { %v1271_v17 = vmul.f32 %v1261_v48, %v1251_v36  ;;  %v1259_v24 = vpop.permute.xlu0 %1258 }
 0x9a1   :  { %v1270_v53 = vmul.f32 %v1259_v24, %v1250_v27 }
 0x9a2   :  { %v6839_v10 = vadd.f32 %v1275_v46, %v1271_v17 }
 0x9a3   :  { %v6842_v45 = vadd.f32 %v1274_v40, %v1270_v53  ;;  %v1265_v29 = vpop.permute.xlu1 %1264 }
 0x9a4   :  { %v1273_v8 = vmul.f32 %v1265_v29, %v1253_v32  ;;  %v1263_v31 = vpop.permute.xlu0 %1262  ;;  %v1520_v48 = vsel %vm433_vm1, %v6744_v50, %v6839_v10 }
 0x9a5   :  { %v1272_v36 = vmul.f32 %v1263_v31, %v1252_v60  ;;  %v1519_v5 = vsel %vm433_vm1, %v6742_v57, %v6842_v45 }
 0x9a6   :  { %v6855_v27 = vadd.f32 %v1277_v35, %v1273_v8  ;;  %5123 = vmatprep.mubr.msk.f32.mxu1 %vm646_vm2, %v1519_v5 }
 0x9a7   :  { %v6858_v46 = vadd.f32 %v1276_v30, %v1272_v36  ;;  %5124 = vmatmul.mubr.msk.f32.vlgmr.msra.gmra.mrb[26].mxu1 %vm646_vm2, %v1520_v48  ;;  %v1909_v30 = vsub.f32 1.0, %v6819_v41  ;;  %v1934_v36 = vmul.f32 %v6817_v14, %v6706_v51  ;;  %v1911_v51 = vsub.f32 1.0, %v6827_v26 }
 0x9a8   :  { %5452 = vmatpush3.bf16.msra.mxu1 %v6321_v13  ;;  %v1522_v57 = vsel %vm433_vm1, %v6757_v19, %v6855_v27 }
 0x9a9   :  { %v1521_v58 = vsel %vm433_vm1, %v6751_v38, %v6858_v46  ;;  %5454 = vmatprep.subr.bf16.mxu1 %v6331_v16 }
 0x9aa   :  { %5126 = vmatprep.mubr.msk.f32.mxu1 %vm646_vm2, %v1521_v58  ;;  %v1933_v58 = vmul.f32 %v6819_v41, %v6708_v47 }
 0x9ab   :  { %5127 = vmatmul.mubr.msk.f32.gmra.mrb[28].mxu1 %vm646_vm2, %v1522_v57 }
 0x9ac   :  { %5456 = vmatpush3.bf16.msra.mxu1 %v6331_v16 }
 0x9ad   :  { %5458 = vmatprep.subr.bf16.mxu1 %v6350_v22 }
 0x9b0   :  { %5460 = vmatpush3.bf16.msra.mxu1 %v6350_v22 }
 0x9b1   :  { %5462 = vmatprep.subr.bf16.mxu1 %v6407_v37 }
 0x9b4   :  { %5464 = vmatpush3.bf16.msra.mxu1 %v6407_v37 }
 0x9b5   :  { %5474 = vmatprep.subr.bf16.mxu1 %v6321_v13 }
 0xa09   :  { %v1892_v50 = vpop.permute.xlu1 %1891 }
 0xa0a   :  { %v1902_v38 = vadd.f32 %v6786_v44, %v1892_v50  ;;  %v1890_v21 = vpop.permute.xlu0 %1889 }
 0xa0b   :  { %v1901_v19 = vadd.f32 %v6789_v56, %v1890_v21  ;;  %v1912_v21 = vsub.f32 1.0, %v6825_v49 }
 0xa0c   :  { %5775 = vtanh.f32 %v1902_v38 }
 0xa0d   :  { %5777 = vtanh.f32 %v1901_v19 }
 0xa10   :  { %v1896_v17 = vpop.permute.xlu1 %1895 }
 0xa11   :  { %v1904_v24 = vadd.f32 %v1896_v17, %v6801_v34  ;;  %v1894_v40 = vpop.permute.xlu0 %1893  ;;  %v1935_v17 = vmul.f32 %v6827_v26, %v6717_v39 }
 0xa12   :  { %v1903_v53 = vadd.f32 %v1894_v40, %v6803_v42  ;;  %v1910_v42 = vsub.f32 1.0, %v6817_v14  ;;  %v1936_v14 = vmul.f32 %v6825_v49, %v6724_v15 }
 0xa13   :  { %5779 = vtanh.f32 %v1904_v24 }
 0xa14   :  { %5781 = vtanh.f32 %v1903_v53 }
 0xa16   :  { %v5776_v32 = vpop.eup %5775 }
 0xa17   :  { %v5778_v29 = vpop.eup %5777  ;;  %1919 = vrot.lane.b32.xlu1 %v5776_v32, %s6158_s8 }
 0xa18   :  { %1917 = vrot.lane.b32.xlu0 %v5778_v29, %s6158_s8 }
 0xa1d   :  { %v5780_v44 = vpop.eup %5779 }
 0xa1e   :  { %v5782_v60 = vpop.eup %5781  ;;  %1923 = vrot.lane.b32.xlu1 %v5780_v44, %s6158_s8 }
 0xa1f   :  { %1921 = vrot.lane.b32.xlu0 %v5782_v60, %s6158_s8 }
 0xa7a   :  { %v5125_v56 = vpop.f32.mrb[26].mxu1 }
 0xa7b   :  { %v1601_v35 = vpop.f32.mrb[27].mxu1  ;;  %v1607_v32 = vadd.f32 %v5125_v56, %v6537_v59 }
 0xa7c   :  { %v1602_v15 = vadd.f32 %v6537_v59, %v1601_v35 }
 0xa7d   :  { %v4591_v26 = vmul.f32 -1.442695, %v1607_v32 }
 0xa7e   :  { %v5128_v34 = vpop.f32.mrb[28].mxu1  ;;  %v4590_v29 = vmul.f32 -1.442695, %v1602_v15 }
 0xa7f   :  { %v1611_v8 = vpop.f32.mrb[29].mxu1  ;;  %v1617_v39 = vadd.f32 %v5128_v34, %v6537_v59  ;;  %5783 = vpow2.f32 %v4591_v26 }
 0xa80   :  { %v1612_v49 = vadd.f32 %v6537_v59, %v1611_v8  ;;  %5785 = vpow2.f32 %v4590_v29 }
 0xa81   :  { %v4593_v44 = vmul.f32 -1.442695, %v1617_v39 }
 0xa82   :  { %v4592_v60 = vmul.f32 -1.442695, %v1612_v49 }
 0xa83   :  { %5787 = vpow2.f32 %v4593_v44 }
 0xa84   :  { %5789 = vpow2.f32 %v4592_v60 }
 0xa89   :  { %v1920_v31 = vpop.permute.xlu1 %1919  ;;  %v5784_v56 = vpop.eup %5783 }
 0xa8a   :  { %v1930_v5 = vmul.f32 %v1920_v31, %v1910_v42  ;;  %v1918_v48 = vpop.permute.xlu0 %1917  ;;  %v5786_v35 = vpop.eup %5785  ;;  %v1633_v42 = vadd.f32 1.0, %v5784_v56 }
 0xa8b   :  { %v1929_v57 = vmul.f32 %v1918_v48, %v1909_v30  ;;  %v1632_v30 = vadd.f32 1.0, %v5786_v35 }
 0xa8c   :  { %v6891_v50 = vadd.f32 %v1934_v36, %v1930_v5  ;;  %5791 = vrcp.f32 %v1633_v42 }
 0xa8d   :  { %v6893_v38 = vadd.f32 %v1933_v58, %v1929_v57  ;;  %v5788_v31 = vpop.eup %5787  ;;  %5793 = vrcp.f32 %v1632_v30 }
 0xa8e   :  { %1947 = vrot.lane.b32.xlu1 %v6891_v50, %s6158_s8  ;;  %v5790_v34 = vpop.eup %5789  ;;  %v1635_v59 = vadd.f32 1.0, %v5788_v31 }
 0xa8f   :  { %1945 = vrot.lane.b32.xlu0 %v6893_v38, %s6158_s8  ;;  %v1634_v36 = vadd.f32 1.0, %v5790_v34 }
 0xa90   :  { %v1924_v19 = vpop.permute.xlu1 %1923  ;;  %5795 = vrcp.f32 %v1635_v59 }
 0xa91   :  { %v1932_v47 = vmul.f32 %v1924_v19, %v1912_v21  ;;  %v1922_v41 = vpop.permute.xlu0 %1921  ;;  %5797 = vrcp.f32 %v1634_v36 }
 0xa92   :  { %v1931_v24 = vmul.f32 %v1922_v41, %v1911_v51 }
 0xa93   :  { %v6905_v40 = vadd.f32 %v1936_v14, %v1932_v47 }
 0xa94   :  { %v6907_v53 = vadd.f32 %v1935_v17, %v1931_v24 }
 0xa95   :  { %1951 = vrot.lane.b32.xlu1 %v6905_v40, %s6158_s8 }
 0xa96   :  { %1949 = vrot.lane.b32.xlu0 %v6907_v53, %s6158_s8  ;;  %v5792_v57 = vpop.eup %5791 }
 0xa97   :  { %v5794_v19 = vpop.eup %5793 }
 0xa99   :  { %1650 = vrot.lane.b32.xlu1 %v1607_v32, %s6156_s27 }
 0xa9a   :  { %1648 = vrot.lane.b32.xlu0 %v1602_v15, %s6156_s27  ;;  %v5796_v41 = vpop.eup %5795 }
 0xa9b   :  { %v5798_v24 = vpop.eup %5797 }
 0xa9d   :  { %1654 = vrot.lane.b32.xlu1 %v1617_v39, %s6156_s27 }
 0xa9e   :  { %1652 = vrot.lane.b32.xlu0 %v1612_v49, %s6156_s27 }
 0xb00   :  { %v6923_v5 = vpop.permute.xlu1 %1947 }
 0xb01   :  { %v6921_v8 = vpop.permute.xlu0 %1945 }
 0xb02   :  { %5173 = vmatprep.mubr.msk.f32.mxu0 %vm433_vm1, %v6921_v8 }
 0xb03   :  { %5174 = vmatmul.mubr.msk.f32.vlgmr.msra.gmra.mrb[16].mxu0 %vm433_vm1, %v6923_v5 }
 0xb04   :  { %5492 = vmatpush3.bf16.msra.mxu0 %v6195_v6 }
 0xb05   :  { %5494 = vmatprep.subr.bf16.mxu0 %v6210_v11 }
 0xb07   :  { %v6931_v48 = vpop.permute.xlu1 %1951 }
 0xb08   :  { %v6933_v58 = vpop.permute.xlu0 %1949  ;;  %5496 = vmatpush3.bf16.msra.mxu0 %v6210_v11 }
 0xb09   :  { %5176 = vmatprep.mubr.msk.f32.mxu0 %vm433_vm1, %v6933_v58  ;;  %5514 = vmatprep.subr.bf16.mxu0 %v6195_v6 }
 0xb0a   :  { %5177 = vmatmul.mubr.msk.f32.gmra.mrb[18].mxu0 %vm433_vm1, %v6931_v48 }
 0xb0b   :  { %v1651_v21 = vpop.permute.xlu1 %1650 }
 0xb0c   :  { %v1661_v51 = vmul.f32 %v5792_v57, %v1651_v21  ;;  %v1649_v14 = vpop.permute.xlu0 %1648 }
 0xb0d   :  { %v1660_v47 = vmul.f32 %v5794_v19, %v1649_v14 }
 0xb0e   :  { %1670 = vrot.lane.b32.xlu1 %v1661_v51, %s6157_s28 }
 0xb0f   :  { %v1655_v17 = vpop.permute.xlu1 %1654  ;;  %1668 = vrot.lane.b32.xlu0 %v1660_v47, %s6157_s28 }
 0xb10   :  { %v1663_v26 = vmul.f32 %v5796_v41, %v1655_v17  ;;  %v1653_v29 = vpop.permute.xlu0 %1652 }
 0xb11   :  { %v1662_v44 = vmul.f32 %v5798_v24, %v1653_v29 }
 0xb12   :  { %1674 = vrot.lane.b32.xlu1 %v1663_v26, %s6157_s28  ;;  %v312_v26 = vadd.f32 %v6783_v43, %v6444_v54  ;;  %v1713_v54 = vmul.f32 %v5792_v57, %v6839_v10 }
 0xb13   :  { %1672 = vrot.lane.b32.xlu0 %v1662_v44, %s6157_s28 }
 0xb80   :  { %v1671_v60 = vpop.permute.xlu1 %1670 }
 0xb81   :  { %v1681_v56 = vadd.f32 %v1671_v60, %v1607_v32  ;;  %v1669_v35 = vpop.permute.xlu0 %1668  ;;  %v302_v32 = vadd.f32 %v6783_v43, %v6440_v61  ;;  %v307_v61 = vadd.f32 %v6783_v43, %v6446_v63  ;;  %v1712_v63 = vmul.f32 %v5794_v19, %v6842_v45 }
 0xb82   :  { %v1680_v42 = vadd.f32 %v1669_v35, %v1602_v15  ;;  %v297_v15 = vadd.f32 %v6783_v43, %v6442_v62 }
 0xb83   :  { %5799 = vtanh.f32 %v1681_v56  ;;  %v1689_v56 = vsub.f32 1.0, %v5792_v57 }
 0xb84   :  { %5801 = vtanh.f32 %v1680_v42  ;;  %v1675_v31 = vpop.permute.xlu1 %1674  ;;  %v1688_v42 = vsub.f32 1.0, %v5794_v19 }
 0xb85   :  { %v1683_v30 = vadd.f32 %v1675_v31, %v1617_v39  ;;  %v1673_v34 = vpop.permute.xlu0 %1672 }
 0xb86   :  { %v1682_v59 = vadd.f32 %v1673_v34, %v1612_v49 }
 0xb87   :  { %5803 = vtanh.f32 %v1683_v30 }
 0xb88   :  { %5805 = vtanh.f32 %v1682_v59 }
 0xb8d   :  { %v5800_v36 = vpop.eup %5799 }
 0xb8e   :  { %v5802_v21 = vpop.eup %5801  ;;  %1698 = vrot.lane.b32.xlu1 %v5800_v36, %s6158_s8  ;;  %v1691_v36 = vsub.f32 1.0, %v5796_v41 }
 0xb8f   :  { %1696 = vrot.lane.b32.xlu0 %v5802_v21, %s6158_s8 }
 0xb91   :  { %v5804_v51 = vpop.eup %5803 }
 0xb92   :  { %v5806_v14 = vpop.eup %5805  ;;  %1702 = vrot.lane.b32.xlu1 %v5804_v51, %s6158_s8 }
 0xb93   :  { %1700 = vrot.lane.b32.xlu0 %v5806_v14, %s6158_s8  ;;  %v1690_v14 = vsub.f32 1.0, %v5798_v24 }
 0xbd6   :  { %v5175_v39 = vpop.f32.mrb[16].mxu0 }
 0xbd7   :  { %v6953_v49 = vadd.f32 %v5175_v39, %v302_v32  ;;  %v2256_v47 = vpop.f32.mrb[17].mxu0  ;;  %v1715_v32 = vmul.f32 %v5796_v41, %v6855_v27 }
 0xbd8   :  { %v6955_v17 = vadd.f32 %v2256_v47, %v297_v15  ;;  %v1714_v47 = vmul.f32 %v5798_v24, %v6858_v46 }
 0xbd9   :  { %2309 = vrot.lane.b32.xlu1 %v6953_v49, %s6156_s27 }
 0xbda   :  { %2307 = vrot.lane.b32.xlu0 %v6955_v17, %s6156_s27 }
 0xbdd   :  { %v5178_v29 = vpop.f32.mrb[18].mxu0 }
 0xbde   :  { %v6965_v62 = vadd.f32 %v5178_v29, %v312_v26  ;;  %v2266_v44 = vpop.f32.mrb[19].mxu0 }
 0xbdf   :  { %v6967_v60 = vadd.f32 %v2266_v44, %v307_v61 }
 0xbe0   :  { %2313 = vrot.lane.b32.xlu1 %v6965_v62, %s6156_s27 }
 0xbe1   :  { %2311 = vrot.lane.b32.xlu0 %v6967_v60, %s6156_s27  ;;  %v4616_v24 = vmul.f32 -1.442695, %v6967_v60 }
 0xc00   :  { %v1699_v35 = vpop.permute.xlu1 %1698 }
 0xc01   :  { %v1709_v31 = vmul.f32 %v1699_v35, %v1689_v56  ;;  %v1697_v30 = vpop.permute.xlu0 %1696 }
 0xc02   :  { %v1708_v34 = vmul.f32 %v1697_v30, %v1688_v42 }
 0xc03   :  { %v6975_v59 = vadd.f32 %v1713_v54, %v1709_v31 }
 0xc04   :  { %v6977_v21 = vadd.f32 %v1712_v63, %v1708_v34  ;;  %v1703_v51 = vpop.permute.xlu1 %1702 }
 0xc05   :  { %v1711_v15 = vmul.f32 %v1703_v51, %v1691_v36  ;;  %v1701_v39 = vpop.permute.xlu0 %1700  ;;  %v1958_v19 = vsel %vm433_vm1, %v6923_v5, %v6975_v59  ;;  %v4615_v5 = vmul.f32 -1.442695, %v6953_v49 }
 0xc06   :  { %v1710_v26 = vmul.f32 %v1701_v39, %v1690_v14  ;;  %v1957_v57 = vsel %vm433_vm1, %v6921_v8, %v6977_v21 }
 0xc07   :  { %v6987_v61 = vadd.f32 %v1715_v32, %v1711_v15  ;;  %5159 = vmatprep.mubr.msk.f32.mxu1 %vm646_vm2, %v1957_v57  ;;  %5807 = vpow2.f32 %v4615_v5 }
 0xc08   :  { %v6990_v29 = vadd.f32 %v1714_v47, %v1710_v26  ;;  %5160 = vmatmul.mubr.msk.f32.vlgmr.msra.gmra.mrb[30].mxu1 %vm646_vm2, %v1958_v19 }
 0xc09   :  { %5476 = vmatpush3.bf16.msra.mxu1 %v6321_v13  ;;  %v1960_v8 = vsel %vm433_vm1, %v6931_v48, %v6987_v61  ;;  %v4617_v48 = vmul.f32 -1.442695, %v6965_v62 }
 0xc0a   :  { %v1959_v41 = vsel %vm433_vm1, %v6933_v58, %v6990_v29  ;;  %5478 = vmatprep.subr.bf16.mxu1 %v6331_v16  ;;  %v4614_v58 = vmul.f32 -1.442695, %v6955_v17 }
 0xc0b   :  { %5162 = vmatprep.mubr.msk.f32.mxu1 %vm646_vm2, %v1959_v41 }
 0xc0c   :  { %5163 = vmatmul.mubr.msk.f32.gmra.mrb[32].mxu1 %vm646_vm2, %v1960_v8  ;;  %5809 = vpow2.f32 %v4614_v58 }
 0xc0d   :  { %5480 = vmatpush3.bf16.msra.mxu1 %v6331_v16  ;;  %5811 = vpow2.f32 %v4617_v48 }
 0xc0e   :  { %5482 = vmatprep.subr.bf16.mxu1 %v6350_v22  ;;  %5813 = vpow2.f32 %v4616_v24 }
 0xc11   :  { %5484 = vmatpush3.bf16.msra.mxu1 %v6350_v22  ;;  %v5808_v44 = vpop.eup %5807 }
 0xc12   :  { %5486 = vmatprep.subr.bf16.mxu1 %v6407_v37  ;;  %v2292_v35 = vadd.f32 1.0, %v5808_v44 }
 0xc14   :  { %5815 = vrcp.f32 %v2292_v35 }
 0xc15   :  { %5488 = vmatpush3.bf16.msra.mxu1 %v6407_v37 }
 0xc16   :  { %5498 = vmatprep.subr.bf16.mxu1 %v6321_v13  ;;  %v5810_v56 = vpop.eup %5809 }
 0xc17   :  { %v2291_v42 = vadd.f32 1.0, %v5810_v56  ;;  %v5812_v54 = vpop.eup %5811 }
 0xc18   :  { %v5814_v31 = vpop.eup %5813  ;;  %v2294_v30 = vadd.f32 1.0, %v5812_v54 }
 0xc19   :  { %5817 = vrcp.f32 %v2291_v42  ;;  %v2293_v63 = vadd.f32 1.0, %v5814_v31 }
 0xc1a   :  { %5819 = vrcp.f32 %v2294_v30 }
 0xc1b   :  { %5821 = vrcp.f32 %v2293_v63 }
 0xc1e   :  { %v5816_v34 = vpop.eup %5815 }
 0xc23   :  { %v5818_v51 = vpop.eup %5817 }
 0xc24   :  { %v5820_v39 = vpop.eup %5819 }
 0xc25   :  { %v5822_v26 = vpop.eup %5821 }
 0xc4b   :  { %v2310_v36 = vpop.permute.xlu1 %2309 }
 0xc4c   :  { %v2320_v14 = vmul.f32 %v5816_v34, %v2310_v36  ;;  %v2308_v32 = vpop.permute.xlu0 %2307  ;;  %v2348_v36 = vsub.f32 1.0, %v5816_v34 }
 0xc4d   :  { %v2319_v15 = vmul.f32 %v5818_v51, %v2308_v32  ;;  %v2372_v32 = vmul.f32 %v5816_v34, %v6891_v50  ;;  %v2374_v50 = vmul.f32 %v5820_v39, %v6905_v40 }
 0xc4e   :  { %2329 = vrot.lane.b32.xlu1 %v2320_v14, %s6157_s28  ;;  %v2347_v14 = vsub.f32 1.0, %v5818_v51 }
 0xc4f   :  { %2327 = vrot.lane.b32.xlu0 %v2319_v15, %s6157_s28 }
 0xc52   :  { %v2314_v47 = vpop.permute.xlu1 %2313 }
 0xc53   :  { %v2322_v57 = vmul.f32 %v5820_v39, %v2314_v47  ;;  %v2312_v19 = vpop.permute.xlu0 %2311 }
 0xc54   :  { %v2321_v41 = vmul.f32 %v5822_v26, %v2312_v19 }
 0xc55   :  { %2333 = vrot.lane.b32.xlu1 %v2322_v57, %s6157_s28  ;;  %v2371_v57 = vmul.f32 %v5818_v51, %v6893_v38  ;;  %v2373_v38 = vmul.f32 %v5822_v26, %v6907_v53 }
 0xc56   :  { %2331 = vrot.lane.b32.xlu0 %v2321_v41, %s6157_s28 }
 0xcc0   :  { %v2330_v8 = vpop.permute.xlu1 %2329 }
 0xcc1   :  { %v2340_v5 = vadd.f32 %v2330_v8, %v6953_v49  ;;  %v2328_v58 = vpop.permute.xlu0 %2327 }
 0xcc2   :  { %v2339_v48 = vadd.f32 %v2328_v58, %v6955_v17 }
 0xcc3   :  { %5823 = vtanh.f32 %v2340_v5  ;;  %v2350_v5 = vsub.f32 1.0, %v5820_v39 }
 0xcc4   :  { %5825 = vtanh.f32 %v2339_v48  ;;  %v2349_v48 = vsub.f32 1.0, %v5822_v26 }
 0xcc7   :  { %v2334_v24 = vpop.permute.xlu1 %2333 }
 0xcc8   :  { %v2342_v44 = vadd.f32 %v2334_v24, %v6965_v62  ;;  %v2332_v56 = vpop.permute.xlu0 %2331 }
 0xcc9   :  { %v2341_v35 = vadd.f32 %v2332_v56, %v6967_v60 }
 0xcca   :  { %5827 = vtanh.f32 %v2342_v44 }
 0xccb   :  { %5829 = vtanh.f32 %v2341_v35  ;;  %v7048_v35 = vld [vmem:[%s7949_s2 + $0x1] ss:$0 sm:$0xff] }
 0xccd   :  { %v5824_v42 = vpop.eup %5823 }
 0xcce   :  { %v5826_v54 = vpop.eup %5825  ;;  %2357 = vrot.lane.b32.xlu1 %v5824_v42, %s6158_s8 }
 0xccf   :  { %2355 = vrot.lane.b32.xlu0 %v5826_v54, %s6158_s8 }
 0xcd4   :  { %v5828_v49 = vpop.eup %5827 }
 0xcd5   :  { %v5830_v31 = vpop.eup %5829  ;;  %2361 = vrot.lane.b32.xlu1 %v5828_v49, %s6158_s8 }
 0xcd6   :  { %2359 = vrot.lane.b32.xlu0 %v5830_v31, %s6158_s8 }
 0xcdb   :  { %v5161_v17 = vpop.f32.mrb[30].mxu1 }
 0xcdc   :  { %v2039_v30 = vpop.f32.mrb[31].mxu1  ;;  %v2045_v40 = vadd.f32 %v7048_v35, %v5161_v17 }
 0xcdd   :  { %v2040_v53 = vadd.f32 %v7048_v35, %v2039_v30 }
 0xcde   :  { %v4607_v42 = vmul.f32 -1.442695, %v2045_v40 }
 0xcdf   :  { %v5164_v62 = vpop.f32.mrb[32].mxu1  ;;  %v4606_v54 = vmul.f32 -1.442695, %v2040_v53 }
 0xce0   :  { %v2049_v63 = vpop.f32.mrb[33].mxu1  ;;  %v2055_v39 = vadd.f32 %v7048_v35, %v5164_v62  ;;  %5831 = vpow2.f32 %v4607_v42 }
 0xce1   :  { %v2050_v26 = vadd.f32 %v7048_v35, %v2049_v63  ;;  %5833 = vpow2.f32 %v4606_v54 }
 0xce2   :  { %v4609_v49 = vmul.f32 -1.442695, %v2055_v39 }
 0xce3   :  { %v4608_v31 = vmul.f32 -1.442695, %v2050_v26 }
 0xce4   :  { %5835 = vpow2.f32 %v4609_v49 }
 0xce5   :  { %5837 = vpow2.f32 %v4608_v31 }
 0xcea   :  { %v5832_v17 = vpop.eup %5831 }
 0xceb   :  { %v5834_v30 = vpop.eup %5833 }
 0xd40   :  { %v2358_v60 = vpop.permute.xlu1 %2357 }
 0xd41   :  { %v2368_v15 = vmul.f32 %v2358_v60, %v2348_v36  ;;  %v2356_v47 = vpop.permute.xlu0 %2355  ;;  %v2071_v36 = vadd.f32 1.0, %v5832_v17  ;;  %v5836_v60 = vpop.eup %5835 }
 0xd42   :  { %v2367_v19 = vmul.f32 %v2356_v47, %v2347_v14  ;;  %v2070_v14 = vadd.f32 1.0, %v5834_v30  ;;  %v5838_v62 = vpop.eup %5837  ;;  %v2073_v63 = vadd.f32 1.0, %v5836_v60 }
 0xd43   :  { %v7027_v41 = vadd.f32 %v2372_v32, %v2368_v15  ;;  %5839 = vrcp.f32 %v2071_v36  ;;  %v2072_v15 = vadd.f32 1.0, %v5838_v62 }
 0xd44   :  { %v7029_v8 = vadd.f32 %v2371_v57, %v2367_v19  ;;  %5841 = vrcp.f32 %v2070_v14 }
 0xd45   :  { %2385 = vrot.lane.b32.xlu1 %v7027_v41, %s6158_s8  ;;  %5843 = vrcp.f32 %v2073_v63 }
 0xd46   :  { %2383 = vrot.lane.b32.xlu0 %v7029_v8, %s6158_s8  ;;  %5845 = vrcp.f32 %v2072_v15 }
 0xd47   :  { %v2362_v58 = vpop.permute.xlu1 %2361 }
 0xd48   :  { %v2370_v34 = vmul.f32 %v2362_v58, %v2350_v5  ;;  %v2360_v24 = vpop.permute.xlu0 %2359 }
 0xd49   :  { %v2369_v51 = vmul.f32 %v2360_v24, %v2349_v48 }
 0xd4a   :  { %v7037_v44 = vadd.f32 %v2374_v50, %v2370_v34 }
 0xd4b   :  { %v7039_v56 = vadd.f32 %v2373_v38, %v2369_v51 }
 0xd4c   :  { %2389 = vrot.lane.b32.xlu1 %v7037_v44, %s6158_s8 }
 0xd4d   :  { %2387 = vrot.lane.b32.xlu0 %v7039_v56, %s6158_s8  ;;  %v5840_v5 = vpop.eup %5839 }
 0xd4e   :  { %v5842_v48 = vpop.eup %5841 }
 0xd4f   :  { %v5844_v38 = vpop.eup %5843 }
 0xd50   :  { %2088 = vrot.lane.b32.xlu1 %v2045_v40, %s6156_s27  ;;  %v5846_v42 = vpop.eup %5845 }
 0xd51   :  { %2086 = vrot.lane.b32.xlu0 %v2040_v53, %s6156_s27 }
 0xd54   :  { %2092 = vrot.lane.b32.xlu1 %v2055_v39, %s6156_s27 }
 0xd55   :  { %2090 = vrot.lane.b32.xlu0 %v2050_v26, %s6156_s27 }
 0xdb7   :  { %v7060_v47 = vpop.permute.xlu1 %2385 }
 0xdb8   :  { %v7058_v32 = vpop.permute.xlu0 %2383 }
 0xdb9   :  { %5209 = vmatprep.mubr.msk.f32.mxu0 %vm433_vm1, %v7058_v32 }
 0xdba   :  { %5210 = vmatmul.mubr.msk.f32.vlgmr.msra.gmra.mrb[20].mxu0 %vm433_vm1, %v7060_v47 }
 0xdbb   :  { %5516 = vmatpush3.bf16.msra.mxu0 %v6195_v6 }
 0xdbc   :  { %5518 = vmatprep.subr.bf16.mxu0 %v6210_v11 }
 0xdbe   :  { %v7068_v57 = vpop.permute.xlu1 %2389 }
 0xdbf   :  { %v7070_v19 = vpop.permute.xlu0 %2387  ;;  %5520 = vmatpush3.bf16.msra.mxu0 %v6210_v11 }
 0xdc0   :  { %5212 = vmatprep.mubr.msk.f32.mxu0 %vm433_vm1, %v7070_v19  ;;  %5538 = vmatprep.subr.bf16.mxu0 %v6195_v6 }
 0xdc1   :  { %5213 = vmatmul.mubr.msk.f32.gmra.mrb[22].mxu0 %vm433_vm1, %v7068_v57 }
 0xdc2   :  { %v2089_v58 = vpop.permute.xlu1 %2088 }
 0xdc3   :  { %v2099_v50 = vmul.f32 %v5840_v5, %v2089_v58  ;;  %v2087_v34 = vpop.permute.xlu0 %2086 }
 0xdc4   :  { %v2098_v24 = vmul.f32 %v5842_v48, %v2087_v34 }
 0xdc5   :  { %2108 = vrot.lane.b32.xlu1 %v2099_v50, %s6157_s28 }
 0xdc6   :  { %v2093_v51 = vpop.permute.xlu1 %2092  ;;  %2106 = vrot.lane.b32.xlu0 %v2098_v24, %s6157_s28 }
 0xdc7   :  { %v2101_v54 = vmul.f32 %v5844_v38, %v2093_v51  ;;  %v2091_v49 = vpop.permute.xlu0 %2090 }
 0xdc8   :  { %v2100_v31 = vmul.f32 %v5846_v42, %v2091_v49  ;;  %v332_v49 = vadd.f32 %v6783_v43, %v6452_v2  ;;  %v2151_v2 = vmul.f32 %v5840_v5, %v6975_v59 }
 0xdc9   :  { %2112 = vrot.lane.b32.xlu1 %v2101_v54, %s6157_s28 }
 0xdca   :  { %2110 = vrot.lane.b32.xlu0 %v2100_v31, %s6157_s28 }
 0xe37   :  { %v2109_v17 = vpop.permute.xlu1 %2108 }
 0xe38   :  { %v2119_v30 = vadd.f32 %v2109_v17, %v2045_v40  ;;  %v2107_v36 = vpop.permute.xlu0 %2106  ;;  %v322_v40 = vadd.f32 %v6783_v43, %v6448_v0  ;;  %v327_v0 = vadd.f32 %v6783_v43, %v6454_v3  ;;  %v2150_v3 = vmul.f32 %v5842_v48, %v6977_v21 }
 0xe39   :  { %v2118_v60 = vadd.f32 %v2107_v36, %v2040_v53  ;;  %v317_v53 = vadd.f32 %v6783_v43, %v6450_v1  ;;  %v2127_v36 = vsub.f32 1.0, %v5840_v5 }
 0xe3a   :  { %5847 = vtanh.f32 %v2119_v30 }
 0xe3b   :  { %5849 = vtanh.f32 %v2118_v60  ;;  %v2113_v14 = vpop.permute.xlu1 %2112 }
 0xe3c   :  { %v2121_v62 = vadd.f32 %v2113_v14, %v2055_v39  ;;  %v2111_v63 = vpop.permute.xlu0 %2110  ;;  %v2126_v14 = vsub.f32 1.0, %v5842_v48 }
 0xe3d   :  { %v2120_v15 = vadd.f32 %v2111_v63, %v2050_v26 }
 0xe3e   :  { %5851 = vtanh.f32 %v2121_v62 }
 0xe3f   :  { %5853 = vtanh.f32 %v2120_v15 }
 0xe44   :  { %v5848_v58 = vpop.eup %5847 }
 0xe45   :  { %v5850_v50 = vpop.eup %5849  ;;  %2136 = vrot.lane.b32.xlu1 %v5848_v58, %s6158_s8  ;;  %v2129_v58 = vsub.f32 1.0, %v5844_v38 }
 0xe46   :  { %2134 = vrot.lane.b32.xlu0 %v5850_v50, %s6158_s8 }
 0xe48   :  { %v5852_v34 = vpop.eup %5851 }
 0xe49   :  { %v5854_v24 = vpop.eup %5853  ;;  %2140 = vrot.lane.b32.xlu1 %v5852_v34, %s6158_s8 }
 0xe4a   :  { %2138 = vrot.lane.b32.xlu0 %v5854_v24, %s6158_s8  ;;  %v2128_v24 = vsub.f32 1.0, %v5846_v42 }
 0xe8d   :  { %v5211_v39 = vpop.f32.mrb[20].mxu0 }
 0xe8e   :  { %v7090_v26 = vadd.f32 %v5211_v39, %v322_v40  ;;  %v2694_v51 = vpop.f32.mrb[21].mxu0  ;;  %v2153_v40 = vmul.f32 %v5844_v38, %v6987_v61 }
 0xe8f   :  { %v7092_v54 = vadd.f32 %v2694_v51, %v317_v53  ;;  %v2152_v51 = vmul.f32 %v5846_v42, %v6990_v29 }
 0xe90   :  { %2747 = vrot.lane.b32.xlu1 %v7090_v26, %s6156_s27 }
 0xe91   :  { %2745 = vrot.lane.b32.xlu0 %v7092_v54, %s6156_s27 }
 0xe94   :  { %v5214_v31 = vpop.f32.mrb[22].mxu0 }
 0xe95   :  { %v7102_v1 = vadd.f32 %v5214_v31, %v332_v49  ;;  %v2704_v17 = vpop.f32.mrb[23].mxu0 }
 0xe96   :  { %v7104_v30 = vadd.f32 %v2704_v17, %v327_v0 }
 0xe97   :  { %2751 = vrot.lane.b32.xlu1 %v7102_v1, %s6156_s27 }
 0xe98   :  { %2749 = vrot.lane.b32.xlu0 %v7104_v30, %s6156_s27  ;;  %v4632_v42 = vmul.f32 -1.442695, %v7104_v30 }
 0xeb7   :  { %v2137_v60 = vpop.permute.xlu1 %2136 }
 0xeb8   :  { %v2147_v62 = vmul.f32 %v2137_v60, %v2127_v36  ;;  %v2135_v63 = vpop.permute.xlu0 %2134 }
 0xeb9   :  { %v2146_v43 = vmul.f32 %v2135_v63, %v2126_v14 }
 0xeba   :  { %v7112_v15 = vadd.f32 %v2151_v2, %v2147_v62 }
 0xebb   :  { %v7114_v50 = vadd.f32 %v2150_v3, %v2146_v43  ;;  %v2141_v34 = vpop.permute.xlu1 %2140 }
 0xebc   :  { %v2149_v53 = vmul.f32 %v2141_v34, %v2129_v58  ;;  %v2139_v39 = vpop.permute.xlu0 %2138  ;;  %v2396_v48 = vsel %vm433_vm1, %v7060_v47, %v7112_v15  ;;  %v4631_v47 = vmul.f32 -1.442695, %v7090_v26 }
 0xebd   :  { %v2148_v49 = vmul.f32 %v2139_v39, %v2128_v24  ;;  %v2395_v5 = vsel %vm433_vm1, %v7058_v32, %v7114_v50 }
 0xebe   :  { %v7124_v0 = vadd.f32 %v2153_v40, %v2149_v53  ;;  %5195 = vmatprep.mubr.msk.f32.mxu1 %vm646_vm2, %v2395_v5  ;;  %5855 = vpow2.f32 %v4631_v47 }
 0xebf   :  { %v7127_v31 = vadd.f32 %v2152_v51, %v2148_v49  ;;  %5196 = vmatmul.mubr.msk.f32.vlgmr.msra.gmra.mrb[34].mxu1 %vm646_vm2, %v2396_v48 }
 0xec0   :  { %5500 = vmatpush3.bf16.msra.mxu1 %v6321_v13  ;;  %v2398_v32 = vsel %vm433_vm1, %v7068_v57, %v7124_v0  ;;  %v4633_v57 = vmul.f32 -1.442695, %v7102_v1 }
 0xec1   :  { %v2397_v38 = vsel %vm433_vm1, %v7070_v19, %v7127_v31  ;;  %5502 = vmatprep.subr.bf16.mxu1 %v6331_v16  ;;  %v4630_v19 = vmul.f32 -1.442695, %v7092_v54 }
 0xec2   :  { %5198 = vmatprep.mubr.msk.f32.mxu1 %vm646_vm2, %v2397_v38 }
 0xec3   :  { %5199 = vmatmul.mubr.msk.f32.gmra.mrb[36].mxu1 %vm646_vm2, %v2398_v32  ;;  %5857 = vpow2.f32 %v4630_v19 }
 0xec4   :  { %5504 = vmatpush3.bf16.msra.mxu1 %v6331_v16  ;;  %5859 = vpow2.f32 %v4633_v57 }
 0xec5   :  { %5506 = vmatprep.subr.bf16.mxu1 %v6350_v22  ;;  %5861 = vpow2.f32 %v4632_v42 }
 0xec8   :  { %5508 = vmatpush3.bf16.msra.mxu1 %v6350_v22  ;;  %v5856_v17 = vpop.eup %5855 }
 0xec9   :  { %5510 = vmatprep.subr.bf16.mxu1 %v6407_v37  ;;  %v2730_v60 = vadd.f32 1.0, %v5856_v17 }
 0xecb   :  { %5863 = vrcp.f32 %v2730_v60 }
 0xecc   :  { %5512 = vmatpush3.bf16.msra.mxu1 %v6407_v37 }
 0xecd   :  { %5522 = vmatprep.subr.bf16.mxu1 %v6321_v13  ;;  %v5858_v36 = vpop.eup %5857 }
 0xece   :  { %v2729_v14 = vadd.f32 1.0, %v5858_v36  ;;  %v5860_v2 = vpop.eup %5859 }
 0xecf   :  { %v5862_v62 = vpop.eup %5861  ;;  %v2732_v63 = vadd.f32 1.0, %v5860_v2 }
 0xed0   :  { %5865 = vrcp.f32 %v2729_v14  ;;  %v2731_v3 = vadd.f32 1.0, %v5862_v62 }
 0xed1   :  { %5867 = vrcp.f32 %v2732_v63 }
 0xed2   :  { %5869 = vrcp.f32 %v2731_v3 }
 0xed5   :  { %v7150_v43 = vpop.eup %5863 }
 0xeda   :  { %v7152_v34 = vpop.eup %5865 }
 0xedb   :  { %v7158_v39 = vpop.eup %5867 }
 0xedc   :  { %v7160_v49 = vpop.eup %5869 }
 0xf02   :  { %v2748_v58 = vpop.permute.xlu1 %2747 }
 0xf03   :  { %v2758_v24 = vmul.f32 %v7150_v43, %v2748_v58  ;;  %v2746_v40 = vpop.permute.xlu0 %2745 }
 0xf04   :  { %v2757_v53 = vmul.f32 %v7152_v34, %v2746_v40 }
 0xf05   :  { %2767 = vrot.lane.b32.xlu1 %v2758_v24, %s6157_s28 }
 0xf06   :  { %2765 = vrot.lane.b32.xlu0 %v2757_v53, %s6157_s28 }
 0xf09   :  { %v2752_v51 = vpop.permute.xlu1 %2751 }
 0xf0a   :  { %v2760_v5 = vmul.f32 %v7158_v39, %v2752_v51  ;;  %v2750_v48 = vpop.permute.xlu0 %2749 }
 0xf0b   :  { %v2759_v38 = vmul.f32 %v7160_v49, %v2750_v48 }
 0xf0c   :  { %2771 = vrot.lane.b32.xlu1 %v2760_v5, %s6157_s28 }
 0xf0d   :  { %2769 = vrot.lane.b32.xlu0 %v2759_v38, %s6157_s28 }
 0xf77   :  { %v2768_v32 = vpop.permute.xlu1 %2767 }
 0xf78   :  { %v2778_v47 = vadd.f32 %v2768_v32, %v7090_v26  ;;  %v2766_v19 = vpop.permute.xlu0 %2765  ;;  %v2786_v32 = vsub.f32 1.0, %v7150_v43 }
 0xf79   :  { %v2777_v57 = vadd.f32 %v2766_v19, %v7092_v54 }
 0xf7a   :  { %5871 = vtanh.f32 %v2778_v47 }
 0xf7b   :  { %5873 = vtanh.f32 %v2777_v57  ;;  %v2785_v57 = vsub.f32 1.0, %v7152_v34 }
 0xf7e   :  { %v2772_v42 = vpop.permute.xlu1 %2771 }
 0xf7f   :  { %v2780_v17 = vadd.f32 %v2772_v42, %v7102_v1  ;;  %v2770_v36 = vpop.permute.xlu0 %2769  ;;  %v2810_v42 = vmul.f32 %v7150_v43, %v7027_v41  ;;  %v2788_v41 = vsub.f32 1.0, %v7158_v39 }
 0xf80   :  { %v2779_v60 = vadd.f32 %v2770_v36, %v7104_v30 }
 0xf81   :  { %5875 = vtanh.f32 %v2780_v17 }
 0xf82   :  { %5877 = vtanh.f32 %v2779_v60 }
 0xf84   :  { %v5872_v14 = vpop.eup %5871 }
 0xf85   :  { %v5874_v2 = vpop.eup %5873  ;;  %2795 = vrot.lane.b32.xlu1 %v5872_v14, %s6158_s8  ;;  %v2809_v14 = vmul.f32 %v7152_v34, %v7029_v8  ;;  %v2787_v34 = vsub.f32 1.0, %v7160_v49 }
 0xf86   :  { %2793 = vrot.lane.b32.xlu0 %v5874_v2, %s6158_s8 }
 0xf8b   :  { %v5876_v26 = vpop.eup %5875 }
 0xf8c   :  { %v5878_v62 = vpop.eup %5877  ;;  %2799 = vrot.lane.b32.xlu1 %v5876_v26, %s6158_s8 }
 0xf8d   :  { %2797 = vrot.lane.b32.xlu0 %v5878_v62, %s6158_s8 }
 0xf92   :  { %v5197_v54 = vpop.f32.mrb[34].mxu1 }
 0xf93   :  { %v7175_v1 = vadd.f32 %v7048_v35, %v5197_v54  ;;  %v2477_v63 = vpop.f32.mrb[35].mxu1 }
 0xf94   :  { %v7178_v30 = vadd.f32 %v7048_v35, %v2477_v63 }
 0xf95   :  { %2526 = vrot.lane.b32.xlu1 %v7175_v1, %s6156_s27  ;;  %v4623_v53 = vmul.f32 -1.442695, %v7175_v1 }
 0xf96   :  { %v5200_v3 = vpop.f32.mrb[36].mxu1  ;;  %2524 = vrot.lane.b32.xlu0 %v7178_v30, %s6156_s27  ;;  %v4622_v51 = vmul.f32 -1.442695, %v7178_v30 }
 0xf97   :  { %v7185_v58 = vadd.f32 %v7048_v35, %v5200_v3  ;;  %v2487_v24 = vpop.f32.mrb[37].mxu1  ;;  %5879 = vpow2.f32 %v4623_v53  ;;  %v2812_v53 = vmul.f32 %v7158_v39, %v7037_v44 }
 0xf98   :  { %v7188_v40 = vadd.f32 %v7048_v35, %v2487_v24  ;;  %5881 = vpow2.f32 %v4622_v51 }
 0xf99   :  { %2530 = vrot.lane.b32.xlu1 %v7185_v58, %s6156_s27  ;;  %v4625_v5 = vmul.f32 -1.442695, %v7185_v58 }
 0xf9a   :  { %2528 = vrot.lane.b32.xlu0 %v7188_v40, %s6156_s27  ;;  %v4624_v48 = vmul.f32 -1.442695, %v7188_v40 }
 0xf9b   :  { %5883 = vpow2.f32 %v4625_v5 }
 0xf9c   :  { %5885 = vpow2.f32 %v4624_v48  ;;  %v2811_v48 = vmul.f32 %v7160_v49, %v7039_v56 }
 0xfa1   :  { %v5880_v38 = vpop.eup %5879 }
 0xfa2   :  { %v5882_v47 = vpop.eup %5881  ;;  %v2509_v60 = vadd.f32 1.0, %v5880_v38 }
 0xfa3   :  { %v2508_v62 = vadd.f32 1.0, %v5882_v47 }
 0xfa4   :  { %5887 = vrcp.f32 %v2509_v60 }
 0xfa5   :  { %v5884_v26 = vpop.eup %5883  ;;  %5889 = vrcp.f32 %v2508_v62 }
 0xfa6   :  { %v5886_v63 = vpop.eup %5885  ;;  %v2511_v24 = vadd.f32 1.0, %v5884_v26 }
 0xfa7   :  { %v2510_v8 = vadd.f32 1.0, %v5886_v63 }
 0xfa8   :  { %5891 = vrcp.f32 %v2511_v24 }
 0xfa9   :  { %5893 = vrcp.f32 %v2510_v8 }
 0xff7   :  { %v2796_v19 = vpop.permute.xlu1 %2795 }
 0xff8   :  { %v2806_v17 = vmul.f32 %v2796_v19, %v2786_v32  ;;  %v2794_v36 = vpop.permute.xlu0 %2793  ;;  %v5888_v19 = vpop.eup %5887 }
 0xff9   :  { %v2805_v2 = vmul.f32 %v2794_v36, %v2785_v57  ;;  %v5890_v39 = vpop.eup %5889 }
 0xffa   :  { %v7204_v54 = vadd.f32 %v2810_v42, %v2806_v17  ;;  %v5892_v56 = vpop.eup %5891 }
 0xffb   :  { %v7206_v3 = vadd.f32 %v2809_v14, %v2805_v2  ;;  %v5894_v36 = vpop.eup %5893 }
 0xffc   :  { %2823 = vrot.lane.b32.xlu1 %v7204_v54, %s6158_s8 }
 0xffd   :  { %2821 = vrot.lane.b32.xlu0 %v7206_v3, %s6158_s8 }
 0xffe   :  { %v2800_v43 = vpop.permute.xlu1 %2799 }
 0xfff   :  { %v2808_v51 = vmul.f32 %v2800_v43, %v2788_v41  ;;  %v2798_v5 = vpop.permute.xlu0 %2797 }
0x1000   :  { %v2807_v38 = vmul.f32 %v2798_v5, %v2787_v34 }
0x1001   :  { %v7218_v32 = vadd.f32 %v2812_v53, %v2808_v51 }
0x1002   :  { %v7220_v47 = vadd.f32 %v2811_v48, %v2807_v38 }
0x1003   :  { %2827 = vrot.lane.b32.xlu1 %v7218_v32, %s6158_s8 }
0x1004   :  { %2825 = vrot.lane.b32.xlu0 %v7220_v47, %s6158_s8 }
0x1007   :  { %v2527_v44 = vpop.permute.xlu1 %2526 }
0x1008   :  { %v2537_v57 = vmul.f32 %v5888_v19, %v2527_v44  ;;  %v2525_v42 = vpop.permute.xlu0 %2524 }
0x1009   :  { %v2536_v17 = vmul.f32 %v5890_v39, %v2525_v42 }
0x100a   :  { %2546 = vrot.lane.b32.xlu1 %v2537_v57, %s6157_s28  ;;  %v2589_v57 = vmul.f32 %v5888_v19, %v7112_v15 }
0x100b   :  { %v2531_v49 = vpop.permute.xlu1 %2530  ;;  %2544 = vrot.lane.b32.xlu0 %v2536_v17, %s6157_s28  ;;  %v2588_v17 = vmul.f32 %v5890_v39, %v7114_v50 }
0x100c   :  { %v2539_v60 = vmul.f32 %v5892_v56, %v2531_v49  ;;  %v2529_v14 = vpop.permute.xlu0 %2528 }
0x100d   :  { %v2538_v2 = vmul.f32 %v5894_v36, %v2529_v14  ;;  %v2567_v14 = vsub.f32 1.0, %v5892_v56 }
0x100e   :  { %2550 = vrot.lane.b32.xlu1 %v2539_v60, %s6157_s28 }
0x100f   :  { %2548 = vrot.lane.b32.xlu0 %v2538_v2, %s6157_s28 }
0x106e   :  { %v2824_v62 = vpop.permute.xlu1 %2823 }
0x106f   :  { %v2822_v26 = vpop.permute.xlu0 %2821 }
0x1070   :  { %5245 = vmatprep.mubr.msk.f32.mxu0 %vm433_vm1, %v2822_v26 }
0x1071   :  { %5246 = vmatmul.mubr.msk.f32.vlgmr.msra.gmra.mrb[24].mxu0 %vm433_vm1, %v2824_v62 }
0x1072   :  { %5540 = vmatpush3.bf16.msra.mxu0 %v6195_v6 }
0x1073   :  { %5542 = vmatprep.subr.bf16.mxu0 %v6210_v11 }
0x1075   :  { %v2828_v24 = vpop.permute.xlu1 %2827 }
0x1076   :  { %v2826_v63 = vpop.permute.xlu0 %2825  ;;  %5544 = vmatpush3.bf16.msra.mxu0 %v6210_v11 }
0x1077   :  { %5248 = vmatprep.mubr.msk.f32.mxu0 %vm433_vm1, %v2826_v63 }
0x1078   :  { %5249 = vmatmul.mubr.msk.f32.gmra.mrb[26].mxu0 %vm433_vm1, %v2828_v24 }
0x107c   :  { %v2547_v41 = vpop.permute.xlu1 %2546 }
0x107d   :  { %v2557_v8 = vadd.f32 %v2547_v41, %v7175_v1  ;;  %v2545_v43 = vpop.permute.xlu0 %2544 }
0x107e   :  { %v2556_v34 = vadd.f32 %v2545_v43, %v7178_v30  ;;  %v2565_v30 = vsub.f32 1.0, %v5888_v19  ;;  %v2591_v43 = vmul.f32 %v5892_v56, %v7124_v0 }
0x107f   :  { %5895 = vtanh.f32 %v2557_v8  ;;  %v2566_v8 = vsub.f32 1.0, %v5894_v36 }
0x1080   :  { %5897 = vtanh.f32 %v2556_v34  ;;  %v2551_v53 = vpop.permute.xlu1 %2550 }
0x1081   :  { %v2559_v6 = vadd.f32 %v2551_v53, %v7185_v58  ;;  %v2549_v51 = vpop.permute.xlu0 %2548  ;;  %v2564_v58 = vsub.f32 1.0, %v5890_v39 }
0x1082   :  { %v2558_v5 = vadd.f32 %v2549_v51, %v7188_v40 }
0x1083   :  { %5899 = vtanh.f32 %v2559_v6  ;;  %v2590_v6 = vmul.f32 %v5894_v36, %v7127_v31 }
0x1084   :  { %5901 = vtanh.f32 %v2558_v5 }
0x1089   :  { %v5896_v11 = vpop.eup %5895 }
0x108a   :  { %v5898_v48 = vpop.eup %5897  ;;  %2574 = vrot.lane.b32.xlu1 %v5896_v11, %s6158_s8 }
0x108b   :  { %2572 = vrot.lane.b32.xlu0 %v5898_v48, %s6158_s8 }
0x108d   :  { %v5900_v1 = vpop.eup %5899 }
0x108e   :  { %v5902_v38 = vpop.eup %5901  ;;  %2578 = vrot.lane.b32.xlu1 %v5900_v1, %s6158_s8 }
0x108f   :  { %2576 = vrot.lane.b32.xlu0 %v5902_v38, %s6158_s8 }
0x10fc   :  { %v2575_v44 = vpop.permute.xlu1 %2574 }
0x10fd   :  { %v2585_v40 = vmul.f32 %v2575_v44, %v2565_v30  ;;  %v2573_v42 = vpop.permute.xlu0 %2572 }
0x10fe   :  { %v2584_v49 = vmul.f32 %v2573_v42, %v2564_v58 }
0x10ff   :  { %v7247_v60 = vadd.f32 %v2589_v57, %v2585_v40 }
0x1100   :  { %v7249_v2 = vadd.f32 %v2588_v17, %v2584_v49  ;;  %v2579_v41 = vpop.permute.xlu1 %2578 }
0x1101   :  { %v2587_v34 = vmul.f32 %v2579_v41, %v2567_v14  ;;  %v2577_v53 = vpop.permute.xlu0 %2576  ;;  %v2834_v39 = vsel %vm433_vm1, %v2824_v62, %v7247_v60 }
0x1102   :  { %v2586_v51 = vmul.f32 %v2577_v53, %v2566_v8  ;;  %v2833_v19 = vsel %vm433_vm1, %v2822_v26, %v7249_v2  ;;  %v7280_v26 = vld [vmem:[%s7949_s2] ss:$0 sm:$0xff] }
0x1103   :  { %v7257_v5 = vadd.f32 %v2591_v43, %v2587_v34  ;;  %5231 = vmatprep.mubr.msk.f32.mxu1 %vm646_vm2, %v2833_v19  ;;  %v342_v62 = vadd.f32 %v7280_v26, %v6456_v4  ;;  %v352_v30 = vadd.f32 %v7280_v26, %v6463_v9  ;;  %v347_v4 = vadd.f32 %v7280_v26, %v6465_v12 }
0x1104   :  { %v7260_v11 = vadd.f32 %v2590_v6, %v2586_v51  ;;  %5232 = vmatmul.mubr.msk.f32.vlgmr.msra.gmra.mrb[38].mxu1 %vm646_vm2, %v2834_v39 }
0x1105   :  { %5524 = vmatpush3.bf16.msra.mxu1 %v6321_v13  ;;  %v2836_v36 = vsel %vm433_vm1, %v2828_v24, %v7257_v5 }
0x1106   :  { %v2835_v56 = vsel %vm433_vm1, %v2826_v63, %v7260_v11  ;;  %5526 = vmatprep.subr.bf16.mxu1 %v6331_v16  ;;  %v337_v63 = vadd.f32 %v7280_v26, %v6458_v7 }
0x1107   :  { %5234 = vmatprep.mubr.msk.f32.mxu1 %vm646_vm2, %v2835_v56 }
0x1108   :  { %5235 = vmatmul.mubr.msk.f32.gmra.mrb[40].mxu1 %vm646_vm2, %v2836_v36 }
0x1109   :  { %5528 = vmatpush3.bf16.msra.mxu1 %v6331_v16 }
0x110a   :  { %5530 = vmatprep.subr.bf16.mxu1 %v6350_v22 }
0x110d   :  { %5532 = vmatpush3.bf16.msra.mxu1 %v6350_v22 }
0x110e   :  { %5534 = vmatprep.subr.bf16.mxu1 %v6407_v37 }
0x1111   :  { %5536 = vmatpush3.bf16.msra.mxu1 %v6407_v37 }
0x1112   :  { %5546 = vmatprep.subr.bf16.mxu1 %v6321_v13 }
0x1144   :  { %v5247_v24 = vpop.f32.mrb[24].mxu0 }
0x1145   :  { %v7286_v48 = vadd.f32 %v5247_v24, %v342_v62  ;;  %v3132_v1 = vpop.f32.mrb[25].mxu0 }
0x1146   :  { %v7288_v38 = vadd.f32 %v3132_v1, %v337_v63 }
0x1147   :  { %3185 = vrot.lane.b32.xlu1 %v7286_v48, %s6156_s27  ;;  %v4647_v40 = vmul.f32 -1.442695, %v7286_v48 }
0x1148   :  { %3183 = vrot.lane.b32.xlu0 %v7288_v38, %s6156_s27  ;;  %v4646_v42 = vmul.f32 -1.442695, %v7288_v38 }
0x1149   :  { %5903 = vpow2.f32 %v4647_v40 }
0x114a   :  { %5905 = vpow2.f32 %v4646_v42 }
0x114b   :  { %v5250_v44 = vpop.f32.mrb[26].mxu0 }
0x114c   :  { %v7298_v7 = vadd.f32 %v5250_v44, %v352_v30  ;;  %v3142_v58 = vpop.f32.mrb[27].mxu0 }
0x114d   :  { %v7300_v57 = vadd.f32 %v3142_v58, %v347_v4 }
0x114e   :  { %3189 = vrot.lane.b32.xlu1 %v7298_v7, %s6156_s27  ;;  %v4649_v9 = vmul.f32 -1.442695, %v7298_v7 }
0x114f   :  { %3187 = vrot.lane.b32.xlu0 %v7300_v57, %s6156_s27  ;;  %v4648_v12 = vmul.f32 -1.442695, %v7300_v57 }
0x1150   :  { %5907 = vpow2.f32 %v4649_v9 }
0x1151   :  { %5909 = vpow2.f32 %v4648_v12 }
0x1153   :  { %v5904_v17 = vpop.eup %5903 }
0x1154   :  { %v5906_v49 = vpop.eup %5905  ;;  %v3168_v14 = vadd.f32 1.0, %v5904_v17 }
0x1155   :  { %v3167_v41 = vadd.f32 1.0, %v5906_v49 }
0x1156   :  { %5911 = vrcp.f32 %v3168_v14 }
0x1157   :  { %5913 = vrcp.f32 %v3167_v41 }
0x115a   :  { %v5908_v8 = vpop.eup %5907 }
0x115b   :  { %v5910_v43 = vpop.eup %5909  ;;  %v3170_v34 = vadd.f32 1.0, %v5908_v8 }
0x115c   :  { %v3169_v53 = vadd.f32 1.0, %v5910_v43 }
0x115d   :  { %5915 = vrcp.f32 %v3170_v34 }
0x115e   :  { %5917 = vrcp.f32 %v3169_v53 }
0x1160   :  { %v7310_v6 = vpop.eup %5911 }
0x1161   :  { %v7312_v19 = vpop.eup %5913 }
0x1167   :  { %v7318_v62 = vpop.eup %5915 }
0x1168   :  { %v7320_v24 = vpop.eup %5917 }
0x11b9   :  { %v3186_v51 = vpop.permute.xlu1 %3185 }
0x11ba   :  { %v3196_v39 = vmul.f32 %v7310_v6, %v3186_v51  ;;  %v3184_v56 = vpop.permute.xlu0 %3183 }
0x11bb   :  { %v3195_v36 = vmul.f32 %v7312_v19, %v3184_v56 }
0x11bc   :  { %3205 = vrot.lane.b32.xlu1 %v3196_v39, %s6157_s28 }
0x11bd   :  { %3203 = vrot.lane.b32.xlu0 %v3195_v36, %s6157_s28 }
0x11c0   :  { %v3190_v63 = vpop.permute.xlu1 %3189 }
0x11c1   :  { %v3198_v1 = vmul.f32 %v7318_v62, %v3190_v63  ;;  %v3188_v30 = vpop.permute.xlu0 %3187 }
0x11c2   :  { %v3197_v4 = vmul.f32 %v7320_v24, %v3188_v30 }
0x11c3   :  { %3209 = vrot.lane.b32.xlu1 %v3198_v1, %s6157_s28 }
0x11c4   :  { %3207 = vrot.lane.b32.xlu0 %v3197_v4, %s6157_s28 }
0x11d7   :  { %v5233_v44 = vpop.f32.mrb[38].mxu1 }
0x11d8   :  { %v7327_v58 = vadd.f32 %v7048_v35, %v5233_v44  ;;  %v2915_v40 = vpop.f32.mrb[39].mxu1 }
0x11d9   :  { %v7330_v42 = vadd.f32 %v7048_v35, %v2915_v40 }
0x11da   :  { %2964 = vrot.lane.b32.xlu1 %v7327_v58, %s6156_s27  ;;  %v4639_v14 = vmul.f32 -1.442695, %v7327_v58 }
0x11db   :  { %v5236_v9 = vpop.f32.mrb[40].mxu1  ;;  %2962 = vrot.lane.b32.xlu0 %v7330_v42, %s6156_s27  ;;  %v4638_v41 = vmul.f32 -1.442695, %v7330_v42 }
0x11dc   :  { %v7337_v12 = vadd.f32 %v7048_v35, %v5236_v9  ;;  %v2925_v17 = vpop.f32.mrb[41].mxu1  ;;  %5919 = vpow2.f32 %v4639_v14 }
0x11dd   :  { %v7340_v49 = vadd.f32 %v7048_v35, %v2925_v17  ;;  %5921 = vpow2.f32 %v4638_v41 }
0x11de   :  { %2968 = vrot.lane.b32.xlu1 %v7337_v12, %s6156_s27  ;;  %v4641_v35 = vmul.f32 -1.442695, %v7337_v12 }
0x11df   :  { %2966 = vrot.lane.b32.xlu0 %v7340_v49, %s6156_s27  ;;  %v4640_v51 = vmul.f32 -1.442695, %v7340_v49 }
0x122e   :  { %v3206_v8 = vpop.permute.xlu1 %3205 }
0x122f   :  { %v3216_v43 = vadd.f32 %v3206_v8, %v7286_v48  ;;  %v3204_v34 = vpop.permute.xlu0 %3203  ;;  %v5920_v48 = vpop.eup %5919 }
0x1230   :  { %v3215_v53 = vadd.f32 %v3204_v34, %v7288_v38  ;;  %v5922_v1 = vpop.eup %5921  ;;  %v2947_v4 = vadd.f32 1.0, %v5920_v48 }
0x1231   :  { %5923 = vtanh.f32 %v3216_v43  ;;  %v2946_v40 = vadd.f32 1.0, %v5922_v1  ;;  %v3224_v1 = vsub.f32 1.0, %v7310_v6 }
0x1232   :  { %5925 = vtanh.f32 %v3215_v53 }
0x1233   :  { %5927 = vpow2.f32 %v4641_v35 }
0x1234   :  { %5929 = vpow2.f32 %v4640_v51 }
0x1235   :  { %v3210_v39 = vpop.permute.xlu1 %3209 }
0x1236   :  { %v3218_v56 = vadd.f32 %v3210_v39, %v7298_v7  ;;  %v3208_v36 = vpop.permute.xlu0 %3207 }
0x1237   :  { %v3217_v63 = vadd.f32 %v3208_v36, %v7300_v57 }
0x1238   :  { %5931 = vtanh.f32 %v3218_v56 }
0x1239   :  { %5933 = vtanh.f32 %v3217_v63 }
0x123a   :  { %5935 = vrcp.f32 %v2947_v4  ;;  %v3248_v4 = vmul.f32 %v7310_v6, %v7204_v54  ;;  %v3225_v54 = vsub.f32 1.0, %v7320_v24  ;;  %v3250_v6 = vmul.f32 %v7318_v62, %v7218_v32 }
0x123b   :  { %v5924_v30 = vpop.eup %5923  ;;  %5937 = vrcp.f32 %v2946_v40 }
0x123c   :  { %v5926_v38 = vpop.eup %5925  ;;  %3233 = vrot.lane.b32.xlu1 %v5924_v30, %s6158_s8 }
0x123d   :  { %3231 = vrot.lane.b32.xlu0 %v5926_v38, %s6158_s8  ;;  %v5928_v44 = vpop.eup %5927  ;;  %v3223_v38 = vsub.f32 1.0, %v7312_v19 }
0x123e   :  { %v5930_v9 = vpop.eup %5929  ;;  %v2949_v7 = vadd.f32 1.0, %v5928_v44 }
0x123f   :  { %v2948_v57 = vadd.f32 1.0, %v5930_v9  ;;  %v3247_v9 = vmul.f32 %v7312_v19, %v7206_v3 }
0x1240   :  { %5939 = vrcp.f32 %v2949_v7 }
0x1241   :  { %5941 = vrcp.f32 %v2948_v57  ;;  %v3226_v57 = vsub.f32 1.0, %v7318_v62 }
0x1242   :  { %v5932_v17 = vpop.eup %5931 }
0x1243   :  { %v5934_v14 = vpop.eup %5933  ;;  %3237 = vrot.lane.b32.xlu1 %v5932_v17, %s6158_s8 }
0x1244   :  { %3235 = vrot.lane.b32.xlu0 %v5934_v14, %s6158_s8  ;;  %v7358_v41 = vpop.eup %5935 }
0x1245   :  { %v7360_v43 = vpop.eup %5937 }
0x124a   :  { %v7365_v51 = vpop.eup %5939 }
0x124b   :  { %v7368_v56 = vpop.eup %5941 }
0x124c   :  { %v2965_v8 = vpop.permute.xlu1 %2964 }
0x124d   :  { %v2975_v34 = vmul.f32 %v7358_v41, %v2965_v8  ;;  %v2963_v53 = vpop.permute.xlu0 %2962 }
0x124e   :  { %v2974_v35 = vmul.f32 %v7360_v43, %v2963_v53 }
0x124f   :  { %2984 = vrot.lane.b32.xlu1 %v2975_v34, %s6157_s28  ;;  %v3249_v34 = vmul.f32 %v7320_v24, %v7220_v47 }
0x1250   :  { %v2969_v39 = vpop.permute.xlu1 %2968  ;;  %2982 = vrot.lane.b32.xlu0 %v2974_v35, %s6157_s28 }
0x1251   :  { %v2977_v36 = vmul.f32 %v7365_v51, %v2969_v39  ;;  %v2967_v63 = vpop.permute.xlu0 %2966 }
0x1252   :  { %v2976_v48 = vmul.f32 %v7368_v56, %v2967_v63 }
0x1253   :  { %2988 = vrot.lane.b32.xlu1 %v2977_v36, %s6157_s28 }
0x1254   :  { %2986 = vrot.lane.b32.xlu0 %v2976_v48, %s6157_s28 }
0x12ae   :  { %v3234_v30 = vpop.permute.xlu1 %3233 }
0x12af   :  { %v3244_v44 = vmul.f32 %v3234_v30, %v3224_v1  ;;  %v3232_v40 = vpop.permute.xlu0 %3231 }
0x12b0   :  { %v3243_v17 = vmul.f32 %v3232_v40, %v3223_v38  ;;  %v3003_v40 = vsub.f32 1.0, %v7358_v41 }
0x12b1   :  { %v7380_v7 = vadd.f32 %v3248_v4, %v3244_v44 }
0x12b2   :  { %v7382_v14 = vadd.f32 %v3247_v9, %v3243_v17  ;;  %v3002_v17 = vsub.f32 1.0, %v7360_v43 }
0x12b3   :  { %3261 = vrot.lane.b32.xlu1 %v7380_v7, %s6158_s8 }
0x12b4   :  { %3259 = vrot.lane.b32.xlu0 %v7382_v14, %s6158_s8 }
0x12b5   :  { %v3238_v8 = vpop.permute.xlu1 %3237 }
0x12b6   :  { %v3246_v3 = vmul.f32 %v3238_v8, %v3226_v57  ;;  %v3236_v19 = vpop.permute.xlu0 %3235  ;;  %v3027_v57 = vmul.f32 %v7358_v41, %v7247_v60 }
0x12b7   :  { %v3245_v53 = vmul.f32 %v3236_v19, %v3225_v54 }
0x12b8   :  { %v7394_v35 = vadd.f32 %v3250_v6, %v3246_v3  ;;  %v3026_v6 = vmul.f32 %v7360_v43, %v7249_v2 }
0x12b9   :  { %v7396_v39 = vadd.f32 %v3249_v34, %v3245_v53  ;;  %v3005_v34 = vsub.f32 1.0, %v7365_v51 }
0x12ba   :  { %3265 = vrot.lane.b32.xlu1 %v7394_v35, %s6158_s8 }
0x12bb   :  { %3263 = vrot.lane.b32.xlu0 %v7396_v39, %s6158_s8 }
0x12c1   :  { %v2985_v36 = vpop.permute.xlu1 %2984 }
0x12c2   :  { %v2995_v63 = vadd.f32 %v2985_v36, %v7327_v58  ;;  %v2983_v32 = vpop.permute.xlu0 %2982 }
0x12c3   :  { %v2994_v62 = vadd.f32 %v2983_v32, %v7330_v42  ;;  %v3029_v32 = vmul.f32 %v7365_v51, %v7257_v5 }
0x12c4   :  { %5943 = vtanh.f32 %v2995_v63  ;;  %v3004_v63 = vsub.f32 1.0, %v7368_v56 }
0x12c5   :  { %5945 = vtanh.f32 %v2994_v62  ;;  %v2989_v47 = vpop.permute.xlu1 %2988 }
0x12c6   :  { %v2997_v24 = vadd.f32 %v2989_v47, %v7337_v12  ;;  %v2987_v48 = vpop.permute.xlu0 %2986  ;;  %v3028_v47 = vmul.f32 %v7368_v56, %v7260_v11 }
0x12c7   :  { %v2996_v1 = vadd.f32 %v2987_v48, %v7340_v49 }
0x12c8   :  { %5947 = vtanh.f32 %v2997_v24 }
0x12c9   :  { %5949 = vtanh.f32 %v2996_v1 }
0x12ce   :  { %v5944_v30 = vpop.eup %5943 }
0x12cf   :  { %v5946_v38 = vpop.eup %5945  ;;  %3012 = vrot.lane.b32.xlu1 %v5944_v30, %s6158_s8 }
0x12d0   :  { %3010 = vrot.lane.b32.xlu0 %v5946_v38, %s6158_s8  ;;  %v357_v38 = vadd.f32 %v7280_v26, %v6476_v20 }
0x12d2   :  { %v5948_v58 = vpop.eup %5947 }
0x12d3   :  { %v5950_v4 = vpop.eup %5949  ;;  %3016 = vrot.lane.b32.xlu1 %v5948_v58, %s6158_s8 }
0x12d4   :  { %3014 = vrot.lane.b32.xlu0 %v5950_v4, %s6158_s8 }
0x1325   :  { %v3262_v44 = vpop.permute.xlu1 %3261 }
0x1326   :  { %v3260_v42 = vpop.permute.xlu0 %3259 }
0x1327   :  { %5281 = vmatprep.mubr.msk.f32.mxu0 %vm433_vm1, %v3260_v42 }
0x1328   :  { %5282 = vmatmul.mubr.msk.f32.vlgmr.msra.gmra.mrb[28].mxu0 %vm433_vm1, %v3262_v44 }
0x132c   :  { %v3266_v49 = vpop.permute.xlu1 %3265 }
0x132d   :  { %v3264_v12 = vpop.permute.xlu0 %3263 }
0x132e   :  { %5284 = vmatprep.mubr.msk.f32.mxu0 %vm433_vm1, %v3264_v12 }
0x132f   :  { %5285 = vmatmul.mubr.msk.f32.gmra.mrb[30].mxu0 %vm433_vm1, %v3266_v49 }
0x1341   :  { %v3013_v9 = vpop.permute.xlu1 %3012 }
0x1342   :  { %v3023_v8 = vmul.f32 %v3013_v9, %v3003_v40  ;;  %v3011_v54 = vpop.permute.xlu0 %3010 }
0x1343   :  { %v3022_v3 = vmul.f32 %v3011_v54, %v3002_v17 }
0x1344   :  { %v7420_v19 = vadd.f32 %v3027_v57, %v3023_v8 }
0x1345   :  { %v7423_v53 = vadd.f32 %v3026_v6, %v3022_v3  ;;  %v3017_v36 = vpop.permute.xlu1 %3016 }
0x1346   :  { %v3025_v62 = vmul.f32 %v3017_v36, %v3005_v34  ;;  %v3015_v41 = vpop.permute.xlu0 %3014  ;;  %v3272_v48 = vsel %vm433_vm1, %v3262_v44, %v7420_v19 }
0x1347   :  { %v3024_v24 = vmul.f32 %v3015_v41, %v3004_v63  ;;  %v3271_v43 = vsel %vm433_vm1, %v3260_v42, %v7423_v53 }
0x1348   :  { %v7434_v1 = vadd.f32 %v3029_v32, %v3025_v62  ;;  %5267 = vmatprep.mubr.msk.f32.mxu1 %vm646_vm2, %v3271_v43 }
0x1349   :  { %v7437_v30 = vadd.f32 %v3028_v47, %v3024_v24  ;;  %5268 = vmatmul.mubr.msk.f32.vlgmr.msra.gmra.mrb[42].mxu1 %vm646_vm2, %v3272_v48 }
0x134a   :  { %5548 = vmatpush3.bf16.msra.mxu1 %v6321_v13  ;;  %v3274_v56 = vsel %vm433_vm1, %v3266_v49, %v7434_v1  ;;  %v362_v13 = vadd.f32 %v7280_v26, %v6473_v18 }
0x134b   :  { %v3273_v51 = vsel %vm433_vm1, %v3264_v12, %v7437_v30  ;;  %5550 = vmatprep.subr.bf16.mxu1 %v6331_v16 }
0x134c   :  { %5270 = vmatprep.mubr.msk.f32.mxu1 %vm646_vm2, %v3273_v51 }
0x134d   :  { %5271 = vmatmul.mubr.msk.f32.gmra.mrb[44].mxu1 %vm646_vm2, %v3274_v56 }
0x134e   :  { %5552 = vmatpush3.bf16.msra.mxu1 %v6331_v16  ;;  %v372_v16 = vadd.f32 %v7280_v26, %v6492_v23  ;;  %v7480_v23 = vld [vmem:[%s7949_s2 + $0x1] ss:$0 sm:$0xff] }
0x134f   :  { %5554 = vmatprep.subr.bf16.mxu1 %v6350_v22 }
0x1352   :  { %5556 = vmatpush3.bf16.msra.mxu1 %v6350_v22  ;;  %v367_v22 = vadd.f32 %v7280_v26, %v6494_v25 }
0x1353   :  { %5558 = vmatprep.subr.bf16.mxu1 %v6407_v37 }
0x1356   :  { %5560 = vmatpush3.bf16.msra.mxu1 %v6407_v37 }
0x13fb   :  { %v5283_v58 = vpop.f32.mrb[28].mxu0 }
0x13fc   :  { %v7457_v4 = vadd.f32 %v5283_v58, %v362_v13  ;;  %v3570_v42 = vpop.f32.mrb[29].mxu0 }
0x13fd   :  { %v7459_v44 = vadd.f32 %v3570_v42, %v357_v38 }
0x13fe   :  { %3623 = vrot.lane.b32.xlu1 %v7457_v4, %s6156_s27  ;;  %v4663_v54 = vmul.f32 -1.442695, %v7457_v4 }
0x13ff   :  { %3621 = vrot.lane.b32.xlu0 %v7459_v44, %s6156_s27  ;;  %v4662_v6 = vmul.f32 -1.442695, %v7459_v44 }
0x1400   :  { %5951 = vpow2.f32 %v4663_v54 }
0x1401   :  { %5953 = vpow2.f32 %v4662_v6 }
0x1402   :  { %v5286_v37 = vpop.f32.mrb[30].mxu0 }
0x1403   :  { %v7469_v18 = vadd.f32 %v5286_v37, %v372_v16  ;;  %v3580_v20 = vpop.f32.mrb[31].mxu0 }
0x1404   :  { %v7471_v12 = vadd.f32 %v3580_v20, %v367_v22 }
0x1405   :  { %3627 = vrot.lane.b32.xlu1 %v7469_v18, %s6156_s27  ;;  %v4665_v3 = vmul.f32 -1.442695, %v7469_v18 }
0x1406   :  { %3625 = vrot.lane.b32.xlu0 %v7471_v12, %s6156_s27  ;;  %v4664_v34 = vmul.f32 -1.442695, %v7471_v12 }
0x1407   :  { %5955 = vpow2.f32 %v4665_v3 }
0x1408   :  { %5957 = vpow2.f32 %v4664_v34 }
0x140a   :  { %v5952_v36 = vpop.eup %5951 }
0x140b   :  { %v5954_v63 = vpop.eup %5953  ;;  %v3606_v32 = vadd.f32 1.0, %v5952_v36 }
0x140c   :  { %v3605_v62 = vadd.f32 1.0, %v5954_v63 }
0x140d   :  { %5959 = vrcp.f32 %v3606_v32 }
0x140e   :  { %5961 = vrcp.f32 %v3605_v62 }
0x1411   :  { %v5956_v41 = vpop.eup %5955 }
0x1412   :  { %v5958_v47 = vpop.eup %5957  ;;  %v3608_v24 = vadd.f32 1.0, %v5956_v41 }
0x1413   :  { %v3607_v43 = vadd.f32 1.0, %v5958_v47 }
0x1414   :  { %5963 = vrcp.f32 %v3608_v24 }
0x1415   :  { %5965 = vrcp.f32 %v3607_v43 }
0x1417   :  { %v7506_v48 = vpop.eup %5959 }
0x1418   :  { %v7508_v56 = vpop.eup %5961 }
0x141c   :  { %v5269_v49 = vpop.f32.mrb[42].mxu1 }
0x141d   :  { %v7483_v25 = vadd.f32 %v7480_v23, %v5269_v49  ;;  %v3353_v26 = vpop.f32.mrb[43].mxu1 }
0x141e   :  { %v7486_v40 = vadd.f32 %v7480_v23, %v3353_v26  ;;  %v7517_v37 = vpop.eup %5963 }
0x141f   :  { %3402 = vrot.lane.b32.xlu1 %v7483_v25, %s6156_s27  ;;  %v4655_v58 = vmul.f32 -1.442695, %v7483_v25  ;;  %v7520_v26 = vpop.eup %5965 }
0x1420   :  { %3400 = vrot.lane.b32.xlu0 %v7486_v40, %s6156_s27  ;;  %v5272_v9 = vpop.f32.mrb[44].mxu1  ;;  %v4654_v16 = vmul.f32 -1.442695, %v7486_v40 }
0x1421   :  { %v7493_v17 = vadd.f32 %v7480_v23, %v5272_v9  ;;  %v3363_v57 = vpop.f32.mrb[45].mxu1  ;;  %5967 = vpow2.f32 %v4655_v58 }
0x1422   :  { %v7496_v8 = vadd.f32 %v7480_v23, %v3363_v57  ;;  %5969 = vpow2.f32 %v4654_v16 }
0x1423   :  { %3406 = vrot.lane.b32.xlu1 %v7493_v17, %s6156_s27  ;;  %v4657_v22 = vmul.f32 -1.442695, %v7493_v17 }
0x1424   :  { %3404 = vrot.lane.b32.xlu0 %v7496_v8, %s6156_s27  ;;  %v4656_v20 = vmul.f32 -1.442695, %v7496_v8 }
0x1425   :  { %5971 = vpow2.f32 %v4657_v22 }
0x1426   :  { %5973 = vpow2.f32 %v4656_v20 }
0x142b   :  { %v5968_v6 = vpop.eup %5967 }
0x142c   :  { %v5970_v3 = vpop.eup %5969  ;;  %v3385_v34 = vadd.f32 1.0, %v5968_v6 }
0x142d   :  { %v3384_v63 = vadd.f32 1.0, %v5970_v3 }
0x142e   :  { %5975 = vrcp.f32 %v3385_v34 }
0x142f   :  { %v5972_v36 = vpop.eup %5971  ;;  %5977 = vrcp.f32 %v3384_v63 }
0x1430   :  { %v5974_v32 = vpop.eup %5973  ;;  %v3387_v62 = vadd.f32 1.0, %v5972_v36 }
0x1431   :  { %v3386_v41 = vadd.f32 1.0, %v5974_v32 }
0x1432   :  { %5979 = vrcp.f32 %v3387_v62 }
0x1433   :  { %5981 = vrcp.f32 %v3386_v41 }
0x1438   :  { %v7526_v47 = vpop.eup %5975 }
0x1439   :  { %v7528_v43 = vpop.eup %5977 }
0x143c   :  { %v7533_v58 = vpop.eup %5979 }
0x143d   :  { %v7536_v16 = vpop.eup %5981 }
0x1470   :  { %v3624_v51 = vpop.permute.xlu1 %3623 }
0x1471   :  { %v3634_v13 = vmul.f32 %v7506_v48, %v3624_v51  ;;  %v3622_v38 = vpop.permute.xlu0 %3621 }
0x1472   :  { %v3633_v42 = vmul.f32 %v7508_v56, %v3622_v38 }
0x1473   :  { %3643 = vrot.lane.b32.xlu1 %v3634_v13, %s6157_s28 }
0x1474   :  { %3641 = vrot.lane.b32.xlu0 %v3633_v42, %s6157_s28 }
0x1477   :  { %v3628_v49 = vpop.permute.xlu1 %3627 }
0x1478   :  { %v3636_v9 = vmul.f32 %v7517_v37, %v3628_v49  ;;  %v3626_v57 = vpop.permute.xlu0 %3625 }
0x1479   :  { %v3635_v54 = vmul.f32 %v7520_v26, %v3626_v57 }
0x147a   :  { %3647 = vrot.lane.b32.xlu1 %v3636_v9, %s6157_s28 }
0x147b   :  { %3645 = vrot.lane.b32.xlu0 %v3635_v54, %s6157_s28 }
0x1491   :  { %v3403_v24 = vpop.permute.xlu1 %3402 }
0x1492   :  { %v3413_v51 = vmul.f32 %v7526_v47, %v3403_v24  ;;  %v3401_v13 = vpop.permute.xlu0 %3400 }
0x1493   :  { %v3412_v38 = vmul.f32 %v7528_v43, %v3401_v13 }
0x1494   :  { %3422 = vrot.lane.b32.xlu1 %v3413_v51, %s6157_s28 }
0x1495   :  { %v3407_v42 = vpop.permute.xlu1 %3406  ;;  %3420 = vrot.lane.b32.xlu0 %v3412_v38, %s6157_s28 }
0x1496   :  { %v3415_v22 = vmul.f32 %v7533_v58, %v3407_v42  ;;  %v3405_v20 = vpop.permute.xlu0 %3404 }
0x1497   :  { %v3414_v49 = vmul.f32 %v7536_v16, %v3405_v20 }
0x1498   :  { %3426 = vrot.lane.b32.xlu1 %v3415_v22, %s6157_s28 }
0x1499   :  { %3424 = vrot.lane.b32.xlu0 %v3414_v49, %s6157_s28  ;;  %v3661_v49 = vsub.f32 1.0, %v7508_v56 }
0x14e5   :  { %v3644_v9 = vpop.permute.xlu1 %3643 }
0x14e6   :  { %v3654_v57 = vadd.f32 %v3644_v9, %v7457_v4  ;;  %v3642_v54 = vpop.permute.xlu0 %3641 }
0x14e7   :  { %v3653_v6 = vadd.f32 %v3642_v54, %v7459_v44 }
0x14e8   :  { %5983 = vtanh.f32 %v3654_v57  ;;  %v3662_v57 = vsub.f32 1.0, %v7506_v48 }
0x14e9   :  { %5985 = vtanh.f32 %v3653_v6 }
0x14ec   :  { %v3648_v3 = vpop.permute.xlu1 %3647 }
0x14ed   :  { %v3656_v34 = vadd.f32 %v3648_v3, %v7469_v18  ;;  %v3646_v36 = vpop.permute.xlu0 %3645 }
0x14ee   :  { %v3655_v63 = vadd.f32 %v3646_v36, %v7471_v12  ;;  %v3664_v36 = vsub.f32 1.0, %v7517_v37 }
0x14ef   :  { %5987 = vtanh.f32 %v3656_v34  ;;  %v3686_v34 = vmul.f32 %v7506_v48, %v7380_v7 }
0x14f0   :  { %5989 = vtanh.f32 %v3655_v63 }
0x14f2   :  { %v5984_v32 = vpop.eup %5983 }
0x14f3   :  { %v5986_v62 = vpop.eup %5985  ;;  %3671 = vrot.lane.b32.xlu1 %v5984_v32, %s6158_s8  ;;  %v3663_v32 = vsub.f32 1.0, %v7520_v26 }
0x14f4   :  { %3669 = vrot.lane.b32.xlu0 %v5986_v62, %s6158_s8 }
0x14f9   :  { %v5988_v4 = vpop.eup %5987 }
0x14fa   :  { %v5990_v41 = vpop.eup %5989  ;;  %3675 = vrot.lane.b32.xlu1 %v5988_v4, %s6158_s8 }
0x14fb   :  { %3673 = vrot.lane.b32.xlu0 %v5990_v41, %s6158_s8 }
0x1506   :  { %v3423_v44 = vpop.permute.xlu1 %3422 }
0x1507   :  { %v3433_v18 = vadd.f32 %v3423_v44, %v7483_v25  ;;  %v3421_v24 = vpop.permute.xlu0 %3420  ;;  %v3687_v44 = vmul.f32 %v7520_v26, %v7396_v39  ;;  %v3441_v39 = vsub.f32 1.0, %v7526_v47  ;;  %v3464_v26 = vmul.f32 %v7528_v43, %v7423_v53 }
0x1508   :  { %v3432_v12 = vadd.f32 %v3421_v24, %v7486_v40  ;;  %v3440_v24 = vsub.f32 1.0, %v7528_v43 }
0x1509   :  { %5991 = vtanh.f32 %v3433_v18 }
0x150a   :  { %5993 = vtanh.f32 %v3432_v12  ;;  %v3427_v51 = vpop.permute.xlu1 %3426 }
0x150b   :  { %v3435_v13 = vadd.f32 %v3427_v51, %v7493_v17  ;;  %v3425_v38 = vpop.permute.xlu0 %3424 }
0x150c   :  { %v3434_v42 = vadd.f32 %v3425_v38, %v7496_v8  ;;  %v3685_v8 = vmul.f32 %v7508_v56, %v7382_v14  ;;  %v3688_v56 = vmul.f32 %v7517_v37, %v7394_v35 }
0x150d   :  { %5995 = vtanh.f32 %v3435_v13 }
0x150e   :  { %5997 = vtanh.f32 %v3434_v42  ;;  %v3442_v42 = vsub.f32 1.0, %v7536_v16 }
0x1513   :  { %v5992_v22 = vpop.eup %5991 }
0x1514   :  { %v5994_v20 = vpop.eup %5993  ;;  %3450 = vrot.lane.b32.xlu1 %v5992_v22, %s6158_s8 }
0x1515   :  { %3448 = vrot.lane.b32.xlu0 %v5994_v20, %s6158_s8  ;;  %v3465_v20 = vmul.f32 %v7526_v47, %v7420_v19 }
0x1517   :  { %v5996_v25 = vpop.eup %5995 }
0x1518   :  { %v5998_v40 = vpop.eup %5997 }
0x1519   :  { %3454 = vrot.lane.b32.xlu0 %v5996_v25, %s6158_s8  ;;  %v3443_v25 = vsub.f32 1.0, %v7533_v58 }
0x151d   :  { %3452 = vrot.lane.b32.xlu0 %v5998_v40, %s6158_s8 }
0x1565   :  { %v3672_v17 = vpop.permute.xlu1 %3671 }
0x1566   :  { %v3670_v9 = vpop.permute.xlu0 %3669  ;;  %v3682_v6 = vmul.f32 %v3672_v17, %v3662_v57 }
0x1567   :  { %v3681_v54 = vmul.f32 %v3670_v9, %v3661_v49  ;;  %v3466_v9 = vmul.f32 %v7536_v16, %v7437_v30 }
0x1568   :  { %v3690_v62 = vadd.f32 %v3686_v34, %v3682_v6 }
0x1569   :  { %v3689_v3 = vadd.f32 %v3685_v8, %v3681_v54  ;;  %v3467_v8 = vmul.f32 %v7533_v58, %v7434_v1 }
0x156b   :  { %3697 = vrot.lane.b32.xlu1 %v3689_v3, %s6158_s8 }
0x156c   :  { %v3676_v63 = vpop.permute.xlu1 %3675 }
0x156d   :  { %v3684_v4 = vmul.f32 %v3676_v63, %v3664_v36  ;;  %v3674_v41 = vpop.permute.xlu0 %3673 }
0x156e   :  { %v3683_v14 = vmul.f32 %v3674_v41, %v3663_v32 }
0x156f   :  { %3699 = vrot.lane.b32.xlu1 %v3690_v62, %s6158_s8  ;;  %v3692_v48 = vadd.f32 %v3688_v56, %v3684_v4 }
0x1570   :  { %v3691_v7 = vadd.f32 %v3687_v44, %v3683_v14 }
0x1572   :  { %3701 = vrot.lane.b32.xlu0 %v3691_v7, %s6158_s8 }
0x1573   :  { %3703 = vrot.lane.b32.xlu1 %v3692_v48, %s6158_s8 }
0x1586   :  { %v3451_v13 = vpop.permute.xlu1 %3450 }
0x1587   :  { %v3449_v18 = vpop.permute.xlu0 %3448  ;;  %v3461_v35 = vmul.f32 %v3451_v13, %v3441_v39 }
0x1588   :  { %v3460_v51 = vmul.f32 %v3449_v18, %v3440_v24 }
0x1589   :  { %v7587_v17 = vadd.f32 %v3465_v20, %v3461_v35 }
0x158a   :  { %v7578_v37 = vadd.f32 %v3464_v26, %v3460_v51 }
0x158b   :  { %v3455_v12 = vpop.permute.xlu0 %3454 }
0x158c   :  { %v3463_v43 = vmul.f32 %v3455_v12, %v3443_v25 }
0x158e   :  { %v7598_v6 = vadd.f32 %v3467_v8, %v3463_v43 }
0x158f   :  { %v3453_v38 = vpop.permute.xlu0 %3452 }
0x1590   :  { %v3462_v49 = vmul.f32 %v3453_v38, %v3442_v42 }
0x1592   :  { %v7595_v54 = vadd.f32 %v3466_v9, %v3462_v49 }
0x15dd   :  { %v3698_v22 = vpop.permute.xlu1 %3697 }
0x15de   :  { %v3709_v40 = vsel %vm433_vm1, %v3698_v22, %v7578_v37 }
0x15df   :  { %5303 = vmatprep.mubr.msk.f32.mxu1 %vm646_vm2, %v3709_v40 }
0x15e1   :  { %v3700_v57 = vpop.permute.xlu1 %3699 }
0x15e2   :  { %v3710_v47 = vsel %vm433_vm1, %v3700_v57, %v7587_v17 }
0x15e3   :  { %5304 = vmatmul.mubr.msk.f32.vlgmr.msra.gmra.mrb[46].mxu1 %vm646_vm2, %v3710_v47 }
0x15e4   :  { %v3702_v3 = vpop.permute.xlu0 %3701 }
0x15e5   :  { %v3711_v34 = vsel %vm433_vm1, %v3702_v3, %v7595_v54  ;;  %v3704_v36 = vpop.permute.xlu1 %3703 }
0x15e6   :  { %v3712_v16 = vsel %vm433_vm1, %v3704_v36, %v7598_v6  ;;  %5306 = vmatprep.mubr.msk.f32.mxu1 %vm646_vm2, %v3711_v34 }
0x15e7   :  { %5307 = vmatmul.mubr.msk.f32.gmra.mrb[48].mxu1 %vm646_vm2, %v3712_v16 }
0x16b6   :  { %v5305_v58 = vpop.f32.mrb[46].mxu1 }
0x16b7   :  { %v3797_v63 = vadd.f32 %v7480_v23, %v5305_v58  ;;  %v3791_v32 = vpop.f32.mrb[47].mxu1 }
0x16b8   :  { %v3792_v62 = vadd.f32 %v7480_v23, %v3791_v32 }
0x16b9   :  { %3840 = vrot.lane.b32.xlu1 %v3797_v63, %s6156_s27  ;;  %v4671_v56 = vmul.f32 -1.442695, %v3797_v63 }
0x16ba   :  { %3838 = vrot.lane.b32.xlu0 %v3792_v62, %s6156_s27  ;;  %v5308_v4 = vpop.f32.mrb[48].mxu1  ;;  %v4670_v7 = vmul.f32 -1.442695, %v3792_v62 }
0x16bb   :  { %v3807_v41 = vadd.f32 %v7480_v23, %v5308_v4  ;;  %v3801_v44 = vpop.f32.mrb[49].mxu1  ;;  %5999 = vpow2.f32 %v4671_v56  ;;  %v419_v56 = vld [vmem:[%s7947_s1 + $0x70] sm:$0xff] }
0x16bc   :  { %v3802_v14 = vadd.f32 %v7480_v23, %v3801_v44  ;;  %6001 = vpow2.f32 %v4670_v7  ;;  %v420_v7 = vld [vmem:[%s7947_s1 + $0x78] sm:$0xff] }
0x16bd   :  { %3844 = vrot.lane.b32.xlu1 %v3807_v41, %s6156_s27  ;;  %v4673_v48 = vmul.f32 -1.442695, %v3807_v41 }
0x16be   :  { %3842 = vrot.lane.b32.xlu0 %v3802_v14, %s6156_s27  ;;  %v4672_v18 = vmul.f32 -1.442695, %v3802_v14 }
0x16bf   :  { %6003 = vpow2.f32 %v4673_v48  ;;  %v5561_v48 = vpack.c.bf16 %v420_v7, %v419_v56 }
0x16c0   :  { %6005 = vpow2.f32 %v4672_v18 }
0x16c1   :  { %5562 = vmatprep.subr.bf16.mxu0 %v5561_v48 }
0x16c2   :  { %5564 = vmatpush3.bf16.msra.mxu0 %v5561_v48 }
0x16c5   :  { %v6000_v24 = vpop.eup %5999 }
0x16c6   :  { %v6002_v12 = vpop.eup %6001  ;;  %v3823_v51 = vadd.f32 1.0, %v6000_v24 }
0x16c7   :  { %v3822_v39 = vadd.f32 1.0, %v6002_v12 }
0x16c8   :  { %6007 = vrcp.f32 %v3823_v51 }
0x16c9   :  { %v6004_v13 = vpop.eup %6003  ;;  %6009 = vrcp.f32 %v3822_v39 }
0x16ca   :  { %v6006_v26 = vpop.eup %6005  ;;  %v3825_v23 = vadd.f32 1.0, %v6004_v13 }
0x16cb   :  { %v3824_v35 = vadd.f32 1.0, %v6006_v26 }
0x16cc   :  { %6011 = vrcp.f32 %v3825_v23 }
0x16cd   :  { %6013 = vrcp.f32 %v3824_v35 }
0x16d2   :  { %v7614_v38 = vpop.eup %6007 }
0x16d3   :  { %v7616_v22 = vpop.eup %6009 }
0x16d6   :  { %v7621_v49 = vpop.eup %6011 }
0x16d7   :  { %v7624_v9 = vpop.eup %6013 }
0x172b   :  { %v3841_v42 = vpop.permute.xlu1 %3840 }
0x172c   :  { %v3851_v20 = vmul.f32 %v7614_v38, %v3841_v42  ;;  %v3839_v25 = vpop.permute.xlu0 %3838 }
0x172d   :  { %v3850_v40 = vmul.f32 %v7616_v22, %v3839_v25 }
0x172e   :  { %3860 = vrot.lane.b32.xlu1 %v3851_v20, %s6157_s28 }
0x172f   :  { %v3845_v43 = vpop.permute.xlu1 %3844  ;;  %3858 = vrot.lane.b32.xlu0 %v3850_v40, %s6157_s28 }
0x1730   :  { %v3853_v57 = vmul.f32 %v7621_v49, %v3845_v43  ;;  %v3843_v8 = vpop.permute.xlu0 %3842 }
0x1731   :  { %v3852_v47 = vmul.f32 %v7624_v9, %v3843_v8 }
0x1732   :  { %3864 = vrot.lane.b32.xlu1 %v3853_v57, %s6157_s28 }
0x1733   :  { %3862 = vrot.lane.b32.xlu0 %v3852_v47, %s6157_s28 }
0x17a0   :  { %v3861_v3 = vpop.permute.xlu1 %3860 }
0x17a1   :  { %v3871_v34 = vadd.f32 %v3861_v3, %v3797_v63  ;;  %v3859_v36 = vpop.permute.xlu0 %3858 }
0x17a2   :  { %v3870_v16 = vadd.f32 %v3859_v36, %v3792_v62  ;;  %v421_v62 = vld [vmem:[%s7947_s1 + $0x80] sm:$0xff] }
0x17a3   :  { %6015 = vtanh.f32 %v3871_v34 }
0x17a4   :  { %6017 = vtanh.f32 %v3870_v16  ;;  %v3865_v58 = vpop.permute.xlu1 %3864 }
0x17a5   :  { %v3873_v32 = vadd.f32 %v3865_v58, %v3807_v41  ;;  %v3863_v4 = vpop.permute.xlu0 %3862  ;;  %v422_v41 = vld [vmem:[%s7947_s1 + $0x88] sm:$0xff] }
0x17a6   :  { %v3872_v44 = vadd.f32 %v3863_v4, %v3802_v14  ;;  %v5565_v18 = vpack.c.bf16 %v422_v41, %v421_v62 }
0x17a7   :  { %6019 = vtanh.f32 %v3873_v32 }
0x17a8   :  { %6021 = vtanh.f32 %v3872_v44  ;;  %5566 = vmatprep.subr.bf16.mxu0 %v5565_v18 }
0x17a9   :  { %5568 = vmatpush3.bf16.msra.mxu0 %v5565_v18 }
0x17ad   :  { %v6016_v63 = vpop.eup %6015 }
0x17ae   :  { %v6018_v14 = vpop.eup %6017  ;;  %3888 = vrot.lane.b32.xlu1 %v6016_v63, %s6158_s8 }
0x17af   :  { %3886 = vrot.lane.b32.xlu0 %v6018_v14, %s6158_s8 }
0x17b1   :  { %v6020_v24 = vpop.eup %6019 }
0x17b2   :  { %v6022_v12 = vpop.eup %6021  ;;  %3892 = vrot.lane.b32.xlu1 %v6020_v24, %s6158_s8 }
0x17b3   :  { %3890 = vrot.lane.b32.xlu0 %v6022_v12, %s6158_s8 }
0x17b6   :  { %850 = vrot.lane.b32.xlu1 %v6665_v33, %s6158_s8 }
0x17b7   :  { %848 = vrot.lane.b32.xlu0 %v6651_v55, %s6158_s8  ;;  %v3879_v55 = vsub.f32 1.0, %v7614_v38 }
0x17ba   :  { %854 = vrot.lane.b32.xlu1 %v6686_v28, %s6158_s8  ;;  %v3903_v28 = vmul.f32 %v7614_v38, %v7587_v17 }
0x17bb   :  { %852 = vrot.lane.b32.xlu0 %v6674_v52, %s6158_s8  ;;  %v3878_v52 = vsub.f32 1.0, %v7616_v22 }
0x17be   :  { %1288 = vrot.lane.b32.xlu1 %v6839_v10, %s6158_s8 }
0x17bf   :  { %1286 = vrot.lane.b32.xlu0 %v6842_v45, %s6158_s8 }
0x17c2   :  { %1292 = vrot.lane.b32.xlu1 %v6855_v27, %s6158_s8  ;;  %v3902_v27 = vmul.f32 %v7616_v22, %v7578_v37 }
0x17c3   :  { %1290 = vrot.lane.b32.xlu0 %v6858_v46, %s6158_s8 }
0x17c6   :  { %1726 = vrot.lane.b32.xlu1 %v6975_v59, %s6158_s8 }
0x17c7   :  { %1724 = vrot.lane.b32.xlu0 %v6977_v21, %s6158_s8  ;;  %v3881_v21 = vsub.f32 1.0, %v7621_v49 }
0x17ca   :  { %1730 = vrot.lane.b32.xlu1 %v6987_v61, %s6158_s8 }
0x17cb   :  { %1728 = vrot.lane.b32.xlu0 %v6990_v29, %s6158_s8 }
0x17ce   :  { %2164 = vrot.lane.b32.xlu1 %v7112_v15, %s6158_s8  ;;  %v3880_v15 = vsub.f32 1.0, %v7624_v9 }
0x17cf   :  { %2162 = vrot.lane.b32.xlu0 %v7114_v50, %s6158_s8  ;;  %v3905_v50 = vmul.f32 %v7621_v49, %v7598_v6 }
0x17d2   :  { %2168 = vrot.lane.b32.xlu1 %v7124_v0, %s6158_s8 }
0x17d3   :  { %2166 = vrot.lane.b32.xlu0 %v7127_v31, %s6158_s8 }
0x17d6   :  { %2602 = vrot.lane.b32.xlu1 %v7247_v60, %s6158_s8  ;;  %v3904_v60 = vmul.f32 %v7624_v9, %v7595_v54 }
0x17d7   :  { %2600 = vrot.lane.b32.xlu0 %v7249_v2, %s6158_s8 }
0x17da   :  { %2606 = vrot.lane.b32.xlu1 %v7257_v5, %s6158_s8 }
0x17db   :  { %2604 = vrot.lane.b32.xlu0 %v7260_v11, %s6158_s8 }
0x17de   :  { %3040 = vrot.lane.b32.xlu1 %v7420_v19, %s6158_s8 }
0x17df   :  { %3038 = vrot.lane.b32.xlu0 %v7423_v53, %s6158_s8 }
0x17e2   :  { %3044 = vrot.lane.b32.xlu1 %v7434_v1, %s6158_s8 }
0x17e3   :  { %3042 = vrot.lane.b32.xlu0 %v7437_v30, %s6158_s8 }
0x17e6   :  { %3478 = vrot.lane.b32.xlu1 %v7587_v17, %s6158_s8 }
0x17e7   :  { %3476 = vrot.lane.b32.xlu0 %v7578_v37, %s6158_s8 }
0x17ea   :  { %3482 = vrot.lane.b32.xlu1 %v7598_v6, %s6158_s8 }
0x17eb   :  { %3480 = vrot.lane.b32.xlu0 %v7595_v54, %s6158_s8 }
0x1820   :  { %v3889_v33 = vpop.permute.xlu1 %3888 }
0x1821   :  { %v3899_v10 = vmul.f32 %v3889_v33, %v3879_v55  ;;  %v3887_v45 = vpop.permute.xlu0 %3886 }
0x1822   :  { %v3898_v46 = vmul.f32 %v3887_v45, %v3878_v52 }
0x1823   :  { %v3907_v59 = vadd.f32 %v3903_v28, %v3899_v10 }
0x1824   :  { %v3906_v61 = vadd.f32 %v3902_v27, %v3898_v46  ;;  %v3893_v29 = vpop.permute.xlu1 %3892 }
0x1825   :  { %v3901_v0 = vmul.f32 %v3893_v29, %v3881_v21  ;;  %3916 = vrot.lane.b32.xlu1 %v3907_v59, %s6158_s8  ;;  %v3891_v31 = vpop.permute.xlu0 %3890 }
0x1826   :  { %v3900_v2 = vmul.f32 %v3891_v31, %v3880_v15  ;;  %3914 = vrot.lane.b32.xlu0 %v3906_v61, %s6158_s8 }
0x1827   :  { %v3909_v5 = vadd.f32 %v3905_v50, %v3901_v0 }
0x1828   :  { %v3908_v11 = vadd.f32 %v3904_v60, %v3900_v2  ;;  %v851_v19 = vpop.permute.xlu1 %850 }
0x1829   :  { %861 = vst.msk [vmem:[#allocation3 + $0x8] sm:$0xff] %vm433_vm1, %v851_v19  ;;  %3920 = vrot.lane.b32.xlu1 %v3909_v5, %s6158_s8  ;;  %v849_v53 = vpop.permute.xlu0 %848  ;;  %v7785_v19 = vld [vmem:[%s7949_s2 + $0x2] ss:$0 sm:$0xff] }
0x182a   :  { %860 = vst.msk [vmem:[#allocation3] sm:$0xff] %vm433_vm1, %v849_v53  ;;  %3918 = vrot.lane.b32.xlu0 %v3908_v11, %s6158_s8 }
0x182c   :  { %v855_v1 = vpop.permute.xlu1 %854 }
0x182d   :  { %863 = vst.msk [vmem:[#allocation3 + $0x18] sm:$0xff] %vm433_vm1, %v855_v1  ;;  %v853_v30 = vpop.permute.xlu0 %852 }
0x182e   :  { %862 = vst.msk [vmem:[#allocation3 + $0x10] sm:$0xff] %vm433_vm1, %v853_v30 }
0x1830   :  { %v1289_v37 = vpop.permute.xlu1 %1288  ;;  %v3931_v6 = vld [vmem:[#allocation3 + $0x8] sm:$0xff] }
0x1831   :  { %1299 = vst.msk [vmem:[#allocation3 + $0x28] sm:$0xff] %vm433_vm1, %v1289_v37  ;;  %v1287_v17 = vpop.permute.xlu0 %1286  ;;  %v3930_v54 = vld [vmem:[#allocation3] sm:$0xff] }
0x1832   :  { %1298 = vst.msk [vmem:[#allocation3 + $0x20] sm:$0xff] %vm433_vm1, %v1287_v17  ;;  %5317 = vmatprep.mubr.msk.f32.mxu0 %vm433_vm1, %v3930_v54 }
0x1833   :  { %5318 = vmatmul.mubr.msk.f32.vlgmr.msra.gmra.mrb[32].mxu0 %vm433_vm1, %v3931_v6 }
0x1834   :  { %v1293_v51 = vpop.permute.xlu1 %1292  ;;  %v3933_v26 = vld [vmem:[#allocation3 + $0x18] sm:$0xff] }
0x1835   :  { %1301 = vst.msk [vmem:[#allocation3 + $0x38] sm:$0xff] %vm433_vm1, %v1293_v51  ;;  %v1291_v13 = vpop.permute.xlu0 %1290  ;;  %v3932_v39 = vld [vmem:[#allocation3 + $0x10] sm:$0xff] }
0x1836   :  { %1300 = vst.msk [vmem:[#allocation3 + $0x30] sm:$0xff] %vm433_vm1, %v1291_v13  ;;  %5320 = vmatprep.mubr.msk.f32.mxu0 %vm433_vm1, %v3932_v39 }
0x1837   :  { %5321 = vmatmul.mubr.msk.f32.gmra.mrb[34].mxu0 %vm433_vm1, %v3933_v26 }
0x1838   :  { %v1727_v23 = vpop.permute.xlu1 %1726  ;;  %v3935_v42 = vld [vmem:[#allocation3 + $0x28] sm:$0xff] }
0x1839   :  { %1737 = vst.msk [vmem:[#allocation3 + $0x48] sm:$0xff] %vm433_vm1, %v1727_v23  ;;  %v1725_v35 = vpop.permute.xlu0 %1724  ;;  %v3934_v38 = vld [vmem:[#allocation3 + $0x20] sm:$0xff] }
0x183a   :  { %1736 = vst.msk [vmem:[#allocation3 + $0x40] sm:$0xff] %vm433_vm1, %v1725_v35  ;;  %5323 = vmatprep.mubr.msk.f32.mxu0 %vm433_vm1, %v3934_v38 }
0x183b   :  { %5324 = vmatmul.mubr.msk.f32.gmra.mrb[36].mxu0 %vm433_vm1, %v3935_v42 }
0x183c   :  { %v1731_v22 = vpop.permute.xlu1 %1730  ;;  %v3937_v40 = vld [vmem:[#allocation3 + $0x38] sm:$0xff] }
0x183d   :  { %1739 = vst.msk [vmem:[#allocation3 + $0x58] sm:$0xff] %vm433_vm1, %v1731_v22  ;;  %v1729_v20 = vpop.permute.xlu0 %1728  ;;  %v3936_v25 = vld [vmem:[#allocation3 + $0x30] sm:$0xff] }
0x183e   :  { %1738 = vst.msk [vmem:[#allocation3 + $0x50] sm:$0xff] %vm433_vm1, %v1729_v20  ;;  %5326 = vmatprep.mubr.msk.f32.mxu0 %vm433_vm1, %v3936_v25 }
0x183f   :  { %5327 = vmatmul.mubr.msk.f32.gmra.mrb[38].mxu0 %vm433_vm1, %v3937_v40 }
0x1840   :  { %v2165_v49 = vpop.permute.xlu1 %2164  ;;  %v3939_v57 = vld [vmem:[#allocation3 + $0x48] sm:$0xff] }
0x1841   :  { %2175 = vst.msk [vmem:[#allocation3 + $0x68] sm:$0xff] %vm433_vm1, %v2165_v49  ;;  %v2163_v43 = vpop.permute.xlu0 %2162  ;;  %v3938_v9 = vld [vmem:[#allocation3 + $0x40] sm:$0xff] }
0x1842   :  { %2174 = vst.msk [vmem:[#allocation3 + $0x60] sm:$0xff] %vm433_vm1, %v2163_v43  ;;  %5329 = vmatprep.mubr.msk.f32.mxu0 %vm433_vm1, %v3938_v9 }
0x1843   :  { %5330 = vmatmul.mubr.msk.f32.gmra.mrb[40].mxu0 %vm433_vm1, %v3939_v57 }
0x1844   :  { %v2169_v8 = vpop.permute.xlu1 %2168  ;;  %v3941_v34 = vld [vmem:[#allocation3 + $0x58] sm:$0xff] }
0x1845   :  { %2177 = vst.msk [vmem:[#allocation3 + $0x78] sm:$0xff] %vm433_vm1, %v2169_v8  ;;  %v2167_v47 = vpop.permute.xlu0 %2166  ;;  %v3940_v3 = vld [vmem:[#allocation3 + $0x50] sm:$0xff] }
0x1846   :  { %2176 = vst.msk [vmem:[#allocation3 + $0x70] sm:$0xff] %vm433_vm1, %v2167_v47  ;;  %5332 = vmatprep.mubr.msk.f32.mxu0 %vm433_vm1, %v3940_v3 }
0x1847   :  { %5333 = vmatmul.mubr.msk.f32.gmra.mrb[42].mxu0 %vm433_vm1, %v3941_v34 }
0x1848   :  { %v2603_v36 = vpop.permute.xlu1 %2602  ;;  %v3943_v32 = vld [vmem:[#allocation3 + $0x68] sm:$0xff] }
0x1849   :  { %2613 = vst.msk [vmem:[#allocation3 + $0x88] sm:$0xff] %vm433_vm1, %v2603_v36  ;;  %v2601_v16 = vpop.permute.xlu0 %2600  ;;  %v3942_v58 = vld [vmem:[#allocation3 + $0x60] sm:$0xff] }
0x184a   :  { %2612 = vst.msk [vmem:[#allocation3 + $0x80] sm:$0xff] %vm433_vm1, %v2601_v16  ;;  %5335 = vmatprep.mubr.msk.f32.mxu0 %vm433_vm1, %v3942_v58 }
0x184b   :  { %5336 = vmatmul.mubr.msk.f32.gmra.mrb[44].mxu0 %vm433_vm1, %v3943_v32 }
0x184c   :  { %v2607_v4 = vpop.permute.xlu1 %2606  ;;  %v3945_v7 = vld [vmem:[#allocation3 + $0x78] sm:$0xff] }
0x184d   :  { %2615 = vst.msk [vmem:[#allocation3 + $0x98] sm:$0xff] %vm433_vm1, %v2607_v4  ;;  %v2605_v44 = vpop.permute.xlu0 %2604  ;;  %v3944_v56 = vld [vmem:[#allocation3 + $0x70] sm:$0xff] }
0x184e   :  { %2614 = vst.msk [vmem:[#allocation3 + $0x90] sm:$0xff] %vm433_vm1, %v2605_v44  ;;  %5338 = vmatprep.mubr.msk.f32.mxu0 %vm433_vm1, %v3944_v56 }
0x184f   :  { %5339 = vmatmul.mubr.msk.f32.gmra.mrb[46].mxu0 %vm433_vm1, %v3945_v7 }
0x1850   :  { %v3041_v48 = vpop.permute.xlu1 %3040  ;;  %v3947_v41 = vld [vmem:[#allocation3 + $0x88] sm:$0xff] }
0x1851   :  { %3051 = vst.msk [vmem:[#allocation3 + $0xa8] sm:$0xff] %vm433_vm1, %v3041_v48  ;;  %v3039_v63 = vpop.permute.xlu0 %3038  ;;  %v3946_v62 = vld [vmem:[#allocation3 + $0x80] sm:$0xff] }
0x1852   :  { %3050 = vst.msk [vmem:[#allocation3 + $0xa0] sm:$0xff] %vm433_vm1, %v3039_v63  ;;  %5341 = vmatprep.mubr.msk.f32.mxu0 %vm433_vm1, %v3946_v62 }
0x1853   :  { %5342 = vmatmul.mubr.msk.f32.gmra.mrb[48].mxu0 %vm433_vm1, %v3947_v41 }
0x1854   :  { %v3045_v14 = vpop.permute.xlu1 %3044  ;;  %v3949_v12 = vld [vmem:[#allocation3 + $0x98] sm:$0xff] }
0x1855   :  { %3053 = vst.msk [vmem:[#allocation3 + $0xb8] sm:$0xff] %vm433_vm1, %v3045_v14  ;;  %v3043_v18 = vpop.permute.xlu0 %3042  ;;  %v3948_v24 = vld [vmem:[#allocation3 + $0x90] sm:$0xff] }
0x1856   :  { %3052 = vst.msk [vmem:[#allocation3 + $0xb0] sm:$0xff] %vm433_vm1, %v3043_v18  ;;  %5344 = vmatprep.mubr.msk.f32.mxu0 %vm433_vm1, %v3948_v24 }
0x1857   :  { %5345 = vmatmul.mubr.msk.f32.gmra.mrb[50].mxu0 %vm433_vm1, %v3949_v12 }
0x1858   :  { %v3479_v55 = vpop.permute.xlu1 %3478  ;;  %v3951_v28 = vld [vmem:[#allocation3 + $0xa8] sm:$0xff] }
0x1859   :  { %3489 = vst.msk [vmem:[#allocation3 + $0xc8] sm:$0xff] %vm433_vm1, %v3479_v55  ;;  %v3477_v33 = vpop.permute.xlu0 %3476  ;;  %v3950_v52 = vld [vmem:[#allocation3 + $0xa0] sm:$0xff] }
0x185a   :  { %3488 = vst.msk [vmem:[#allocation3 + $0xc0] sm:$0xff] %vm433_vm1, %v3477_v33  ;;  %5347 = vmatprep.mubr.msk.f32.mxu0 %vm433_vm1, %v3950_v52 }
0x185b   :  { %5348 = vmatmul.mubr.msk.f32.gmra.mrb[52].mxu0 %vm433_vm1, %v3951_v28 }
0x185c   :  { %v3483_v10 = vpop.permute.xlu1 %3482  ;;  %v3953_v46 = vld [vmem:[#allocation3 + $0xb8] sm:$0xff] }
0x185d   :  { %3491 = vst.msk [vmem:[#allocation3 + $0xd8] sm:$0xff] %vm433_vm1, %v3483_v10  ;;  %v3481_v45 = vpop.permute.xlu0 %3480  ;;  %v3952_v27 = vld [vmem:[#allocation3 + $0xb0] sm:$0xff] }
0x185e   :  { %3490 = vst.msk [vmem:[#allocation3 + $0xd0] sm:$0xff] %vm433_vm1, %v3481_v45  ;;  %5350 = vmatprep.mubr.msk.f32.mxu0 %vm433_vm1, %v3952_v27 }
0x185f   :  { %5351 = vmatmul.mubr.msk.f32.gmra.mrb[54].mxu0 %vm433_vm1, %v3953_v46 }
0x1860   :  { %v3955_v21 = vld [vmem:[#allocation3 + $0xc8] sm:$0xff] }
0x1861   :  { %v3954_v59 = vld [vmem:[#allocation3 + $0xc0] sm:$0xff] }
0x1862   :  { %5353 = vmatprep.mubr.msk.f32.mxu0 %vm433_vm1, %v3954_v59 }
0x1863   :  { %5354 = vmatmul.mubr.msk.f32.gmra.mrb[56].mxu0 %vm433_vm1, %v3955_v21 }
0x1864   :  { %v3957_v29 = vld [vmem:[#allocation3 + $0xd8] sm:$0xff] }
0x1865   :  { %v3956_v61 = vld [vmem:[#allocation3 + $0xd0] sm:$0xff] }
0x1866   :  { %5356 = vmatprep.mubr.msk.f32.mxu0 %vm433_vm1, %v3956_v61 }
0x1867   :  { %5357 = vmatmul.mubr.msk.f32.gmra.mrb[58].mxu0 %vm433_vm1, %v3957_v29 }
0x1897   :  { %v3917_v15 = vpop.permute.xlu1 %3916 }
0x1898   :  { %3927 = vst.msk [vmem:[#allocation3 + $0xe8] sm:$0xff] %vm433_vm1, %v3917_v15  ;;  %v3915_v50 = vpop.permute.xlu0 %3914 }
0x1899   :  { %3926 = vst.msk [vmem:[#allocation3 + $0xe0] sm:$0xff] %vm433_vm1, %v3915_v50 }
0x189b   :  { %v3921_v0 = vpop.permute.xlu1 %3920 }
0x189c   :  { %3929 = vst.msk [vmem:[#allocation3 + $0xf8] sm:$0xff] %vm433_vm1, %v3921_v0  ;;  %v3919_v31 = vpop.permute.xlu0 %3918 }
0x189d   :  { %3928 = vst.msk [vmem:[#allocation3 + $0xf0] sm:$0xff] %vm433_vm1, %v3919_v31 }
0x189f   :  { %v3959_v2 = vld [vmem:[#allocation3 + $0xe8] sm:$0xff] }
0x18a0   :  { %v3958_v60 = vld [vmem:[#allocation3 + $0xe0] sm:$0xff] }
0x18a1   :  { %5359 = vmatprep.mubr.msk.f32.mxu0 %vm433_vm1, %v3958_v60 }
0x18a2   :  { %5360 = vmatmul.mubr.msk.f32.gmra.mrb[60].mxu0 %vm433_vm1, %v3959_v2 }
0x18a3   :  { %v3961_v11 = vld [vmem:[#allocation3 + $0xf8] sm:$0xff] }
0x18a4   :  { %v3960_v5 = vld [vmem:[#allocation3 + $0xf0] sm:$0xff] }
0x18a5   :  { %5362 = vmatprep.mubr.msk.f32.mxu0 %vm433_vm1, %v3960_v5 }
0x18a6   :  { %5363 = vmatmul.mubr.msk.f32.gmra.mrb[62].mxu0 %vm433_vm1, %v3961_v11 }
0x1906   :  { %v5319_v53 = vpop.f32.mrb[32].mxu0 }
0x1907   :  { %v4134_v1 = vadd.f32 %v5319_v53, %v7785_v19  ;;  %v4128_v30 = vpop.f32.mrb[33].mxu0 }
0x1908   :  { %v4129_v37 = vadd.f32 %v7785_v19, %v4128_v30 }
0x1909   :  { %v4708_v17 = vmul.f32 -1.442695, %v4134_v1 }
0x190a   :  { %v4707_v54 = vmul.f32 -1.442695, %v4129_v37  ;;  %v5322_v6 = vpop.f32.mrb[34].mxu0 }
0x190b   :  { %6023 = vpow2.f32 %v4708_v17  ;;  %v4144_v51 = vadd.f32 %v5322_v6, %v7785_v19  ;;  %v4138_v13 = vpop.f32.mrb[35].mxu0 }
0x190c   :  { %6025 = vpow2.f32 %v4707_v54  ;;  %v4139_v39 = vadd.f32 %v7785_v19, %v4138_v13 }
0x190d   :  { %v4710_v26 = vmul.f32 -1.442695, %v4144_v51 }
0x190e   :  { %v4709_v23 = vmul.f32 -1.442695, %v4139_v39  ;;  %v5325_v35 = vpop.f32.mrb[36].mxu0 }
0x190f   :  { %6027 = vpow2.f32 %v4710_v26  ;;  %v4154_v38 = vadd.f32 %v5325_v35, %v7785_v19  ;;  %v4148_v42 = vpop.f32.mrb[37].mxu0 }
0x1910   :  { %6029 = vpow2.f32 %v4709_v23  ;;  %v4149_v22 = vadd.f32 %v7785_v19, %v4148_v42 }
0x1911   :  { %v4712_v20 = vmul.f32 -1.442695, %v4154_v38 }
0x1912   :  { %v4711_v25 = vmul.f32 -1.442695, %v4149_v22  ;;  %v5328_v40 = vpop.f32.mrb[38].mxu0 }
0x1913   :  { %6031 = vpow2.f32 %v4712_v20  ;;  %v4164_v49 = vadd.f32 %v5328_v40, %v7785_v19  ;;  %v4158_v43 = vpop.f32.mrb[39].mxu0 }
0x1914   :  { %6033 = vpow2.f32 %v4711_v25  ;;  %v4159_v9 = vadd.f32 %v7785_v19, %v4158_v43 }
0x1915   :  { %v6024_v57 = vpop.eup %6023  ;;  %v4714_v8 = vmul.f32 -1.442695, %v4164_v49 }
0x1916   :  { %v6026_v47 = vpop.eup %6025  ;;  %v4384_v3 = vadd.f32 1.0, %v6024_v57  ;;  %v4713_v34 = vmul.f32 -1.442695, %v4159_v9  ;;  %v5331_v36 = vpop.f32.mrb[40].mxu0 }
0x1917   :  { %v4383_v16 = vadd.f32 1.0, %v6026_v47  ;;  %6035 = vpow2.f32 %v4714_v8  ;;  %v4174_v58 = vadd.f32 %v5331_v36, %v7785_v19  ;;  %v4168_v32 = vpop.f32.mrb[41].mxu0 }
0x1918   :  { %6037 = vrcp.f32 %v4384_v3  ;;  %v4169_v4 = vadd.f32 %v7785_v19, %v4168_v32 }
0x1919   :  { %v6028_v44 = vpop.eup %6027  ;;  %6039 = vrcp.f32 %v4383_v16  ;;  %v4716_v56 = vmul.f32 -1.442695, %v4174_v58 }
0x191a   :  { %v6030_v7 = vpop.eup %6029  ;;  %v4386_v48 = vadd.f32 1.0, %v6028_v44  ;;  %6041 = vpow2.f32 %v4713_v34  ;;  %v4715_v63 = vmul.f32 -1.442695, %v4169_v4  ;;  %v5334_v62 = vpop.f32.mrb[42].mxu0 }
0x191b   :  { %v4385_v41 = vadd.f32 1.0, %v6030_v7  ;;  %6043 = vpow2.f32 %v4716_v56  ;;  %v4184_v14 = vadd.f32 %v5334_v62, %v7785_v19  ;;  %v4178_v18 = vpop.f32.mrb[43].mxu0 }
0x191c   :  { %6045 = vrcp.f32 %v4386_v48  ;;  %v4179_v24 = vadd.f32 %v7785_v19, %v4178_v18 }
0x191d   :  { %v6032_v12 = vpop.eup %6031  ;;  %6047 = vrcp.f32 %v4385_v41  ;;  %v4718_v55 = vmul.f32 -1.442695, %v4184_v14 }
0x191e   :  { %v6034_v33 = vpop.eup %6033  ;;  %v4388_v52 = vadd.f32 1.0, %v6032_v12  ;;  %6049 = vpow2.f32 %v4715_v63  ;;  %v4717_v28 = vmul.f32 -1.442695, %v4179_v24  ;;  %v5337_v10 = vpop.f32.mrb[44].mxu0 }
0x191f   :  { %v4387_v45 = vadd.f32 1.0, %v6034_v33  ;;  %6051 = vpow2.f32 %v4718_v55  ;;  %v4194_v27 = vadd.f32 %v5337_v10, %v7785_v19  ;;  %v4188_v46 = vpop.f32.mrb[45].mxu0 }
0x1920   :  { %6053 = vrcp.f32 %v4388_v52  ;;  %v4189_v59 = vadd.f32 %v7785_v19, %v4188_v46 }
0x1921   :  { %v6036_v21 = vpop.eup %6035  ;;  %6055 = vrcp.f32 %v4387_v45  ;;  %v4720_v61 = vmul.f32 -1.442695, %v4194_v27 }
0x1922   :  { %v6038_v29 = vpop.eup %6037  ;;  %v4390_v15 = vadd.f32 1.0, %v6036_v21  ;;  %6057 = vpow2.f32 %v4717_v28  ;;  %v4719_v50 = vmul.f32 -1.442695, %v4189_v59  ;;  %v5340_v0 = vpop.f32.mrb[46].mxu0 }
0x1923   :  { %v6040_v31 = vpop.eup %6039  ;;  %4481 = vst.msk [vmem:[%s7950_s3 + $0x8] sm:$0xff] %vm4479_vm3, %v6038_v29  ;;  %6059 = vpow2.f32 %v4720_v61  ;;  %v4204_v60 = vadd.f32 %v5340_v0, %v7785_v19  ;;  %v4198_v2 = vpop.f32.mrb[47].mxu0 }
0x1924   :  { %v6042_v5 = vpop.eup %6041  ;;  %4480 = vst.msk [vmem:[%s7950_s3] sm:$0xff] %vm4479_vm3, %v6040_v31  ;;  %6061 = vrcp.f32 %v4390_v15  ;;  %v4199_v11 = vadd.f32 %v7785_v19, %v4198_v2 }
0x1925   :  { %v6044_v53 = vpop.eup %6043  ;;  %v4389_v1 = vadd.f32 1.0, %v6042_v5  ;;  %6063 = vpow2.f32 %v4719_v50  ;;  %v4722_v30 = vmul.f32 -1.442695, %v4204_v60 }
0x1926   :  { %v6046_v37 = vpop.eup %6045  ;;  %v4392_v17 = vadd.f32 1.0, %v6044_v53  ;;  %v4721_v54 = vmul.f32 -1.442695, %v4199_v11  ;;  %v5343_v6 = vpop.f32.mrb[48].mxu0 }
0x1927   :  { %v6048_v51 = vpop.eup %6047  ;;  %4483 = vst.msk [vmem:[%s7950_s3 + $0x18] sm:$0xff] %vm4479_vm3, %v6046_v37  ;;  %6065 = vrcp.f32 %v4389_v1  ;;  %v4214_v13 = vadd.f32 %v5343_v6, %v7785_v19  ;;  %v4208_v39 = vpop.f32.mrb[49].mxu0 }
0x1928   :  { %v6050_v26 = vpop.eup %6049  ;;  %4482 = vst.msk [vmem:[%s7950_s3 + $0x10] sm:$0xff] %vm4479_vm3, %v6048_v51  ;;  %6067 = vrcp.f32 %v4392_v17  ;;  %v4209_v23 = vadd.f32 %v7785_v19, %v4208_v39 }
0x1929   :  { %v6052_v35 = vpop.eup %6051  ;;  %v4391_v38 = vadd.f32 1.0, %v6050_v26  ;;  %6069 = vpow2.f32 %v4722_v30  ;;  %v4724_v42 = vmul.f32 -1.442695, %v4214_v13 }
0x192a   :  { %v6054_v22 = vpop.eup %6053  ;;  %v4394_v20 = vadd.f32 1.0, %v6052_v35  ;;  %6071 = vpow2.f32 %v4721_v54  ;;  %v4723_v25 = vmul.f32 -1.442695, %v4209_v23  ;;  %v5346_v40 = vpop.f32.mrb[50].mxu0 }
0x192b   :  { %v6056_v49 = vpop.eup %6055  ;;  %4485 = vst.msk [vmem:[%s7950_s3 + $0x28] sm:$0xff] %vm4479_vm3, %v6054_v22  ;;  %6073 = vrcp.f32 %v4391_v38  ;;  %v4224_v43 = vadd.f32 %v5346_v40, %v7785_v19  ;;  %v4218_v9 = vpop.f32.mrb[51].mxu0 }
0x192c   :  { %v6058_v57 = vpop.eup %6057  ;;  %4484 = vst.msk [vmem:[%s7950_s3 + $0x20] sm:$0xff] %vm4479_vm3, %v6056_v49  ;;  %6075 = vrcp.f32 %v4394_v20  ;;  %v4219_v8 = vadd.f32 %v7785_v19, %v4218_v9 }
0x192d   :  { %v6060_v47 = vpop.eup %6059  ;;  %v4393_v3 = vadd.f32 1.0, %v6058_v57  ;;  %6077 = vpow2.f32 %v4724_v42  ;;  %v4726_v34 = vmul.f32 -1.442695, %v4224_v43 }
0x192e   :  { %v6062_v36 = vpop.eup %6061  ;;  %v4396_v16 = vadd.f32 1.0, %v6060_v47  ;;  %6079 = vpow2.f32 %v4723_v25  ;;  %v5349_v58 = vpop.f32.mrb[52].mxu0  ;;  %v4725_v4 = vmul.f32 -1.442695, %v4219_v8 }
0x192f   :  { %v6064_v32 = vpop.eup %6063  ;;  %4487 = vst.msk [vmem:[%s7950_s3 + $0x38] sm:$0xff] %vm4479_vm3, %v6062_v36  ;;  %6081 = vrcp.f32 %v4393_v3  ;;  %v4234_v44 = vadd.f32 %v5349_v58, %v7785_v19  ;;  %v4228_v56 = vpop.f32.mrb[53].mxu0 }
0x1930   :  { %6083 = vrcp.f32 %v4396_v16  ;;  %v4395_v7 = vadd.f32 1.0, %v6064_v32  ;;  %v4229_v48 = vadd.f32 %v7785_v19, %v4228_v56 }
0x1931   :  { %v6066_v63 = vpop.eup %6065  ;;  %6085 = vpow2.f32 %v4726_v34  ;;  %v4728_v62 = vmul.f32 -1.442695, %v4234_v44 }
0x1932   :  { %v6068_v41 = vpop.eup %6067  ;;  %4486 = vst.msk [vmem:[%s7950_s3 + $0x30] sm:$0xff] %vm4479_vm3, %v6066_v63  ;;  %6087 = vrcp.f32 %v4395_v7  ;;  %v4727_v14 = vmul.f32 -1.442695, %v4229_v48  ;;  %v5352_v18 = vpop.f32.mrb[54].mxu0 }
0x1933   :  { %v6070_v24 = vpop.eup %6069  ;;  %4489 = vst.msk [vmem:[%s7950_s3 + $0x48] sm:$0xff] %vm4479_vm3, %v6068_v41  ;;  %6089 = vpow2.f32 %v4725_v4  ;;  %v4244_v12 = vadd.f32 %v5352_v18, %v7785_v19  ;;  %v4238_v55 = vpop.f32.mrb[55].mxu0 }
0x1934   :  { %v6072_v33 = vpop.eup %6071  ;;  %v4398_v52 = vadd.f32 1.0, %v6070_v24  ;;  %6091 = vpow2.f32 %v4728_v62  ;;  %v4239_v28 = vadd.f32 %v7785_v19, %v4238_v55 }
0x1935   :  { %v6074_v10 = vpop.eup %6073  ;;  %v4397_v45 = vadd.f32 1.0, %v6072_v33  ;;  %6093 = vpow2.f32 %v4727_v14  ;;  %v4730_v27 = vmul.f32 -1.442695, %v4244_v12 }
0x1936   :  { %v6076_v46 = vpop.eup %6075  ;;  %4488 = vst.msk [vmem:[%s7950_s3 + $0x40] sm:$0xff] %vm4479_vm3, %v6074_v10  ;;  %6095 = vrcp.f32 %v4398_v52  ;;  %v4729_v59 = vmul.f32 -1.442695, %v4239_v28  ;;  %v5355_v21 = vpop.f32.mrb[56].mxu0 }
0x1937   :  { %v6078_v61 = vpop.eup %6077  ;;  %4491 = vst.msk [vmem:[%s7950_s3 + $0x58] sm:$0xff] %vm4479_vm3, %v6076_v46  ;;  %6097 = vrcp.f32 %v4397_v45  ;;  %v4254_v29 = vadd.f32 %v5355_v21, %v7785_v19  ;;  %v4248_v15 = vpop.f32.mrb[57].mxu0 }
0x1938   :  { %v6080_v50 = vpop.eup %6079  ;;  %v4400_v0 = vadd.f32 1.0, %v6078_v61  ;;  %6099 = vpow2.f32 %v4730_v27  ;;  %v4249_v31 = vadd.f32 %v7785_v19, %v4248_v15 }
0x1939   :  { %v6082_v60 = vpop.eup %6081  ;;  %v4399_v2 = vadd.f32 1.0, %v6080_v50  ;;  %6101 = vpow2.f32 %v4729_v59  ;;  %v4732_v5 = vmul.f32 -1.442695, %v4254_v29 }
0x193a   :  { %v6084_v11 = vpop.eup %6083  ;;  %4490 = vst.msk [vmem:[%s7950_s3 + $0x50] sm:$0xff] %vm4479_vm3, %v6082_v60  ;;  %6103 = vrcp.f32 %v4400_v0  ;;  %v4731_v53 = vmul.f32 -1.442695, %v4249_v31  ;;  %v5358_v1 = vpop.f32.mrb[58].mxu0 }
0x193b   :  { %v6086_v30 = vpop.eup %6085  ;;  %4493 = vst.msk [vmem:[%s7950_s3 + $0x68] sm:$0xff] %vm4479_vm3, %v6084_v11  ;;  %6105 = vrcp.f32 %v4399_v2  ;;  %v4264_v37 = vadd.f32 %v5358_v1, %v7785_v19  ;;  %v4258_v17 = vpop.f32.mrb[59].mxu0 }
0x193c   :  { %v6088_v54 = vpop.eup %6087  ;;  %v4402_v6 = vadd.f32 1.0, %v6086_v30  ;;  %6107 = vpow2.f32 %v4732_v5  ;;  %v4259_v51 = vadd.f32 %v7785_v19, %v4258_v17 }
0x193d   :  { %v6090_v13 = vpop.eup %6089  ;;  %4492 = vst.msk [vmem:[%s7950_s3 + $0x60] sm:$0xff] %vm4479_vm3, %v6088_v54  ;;  %6109 = vpow2.f32 %v4731_v53  ;;  %v4734_v39 = vmul.f32 -1.442695, %v4264_v37 }
0x193e   :  { %v6092_v26 = vpop.eup %6091  ;;  %6111 = vrcp.f32 %v4402_v6  ;;  %v4401_v23 = vadd.f32 1.0, %v6090_v13  ;;  %v4733_v42 = vmul.f32 -1.442695, %v4259_v51 }
0x193f   :  { %v6094_v35 = vpop.eup %6093  ;;  %v4404_v38 = vadd.f32 1.0, %v6092_v26  ;;  %6113 = vpow2.f32 %v4734_v39 }
0x1940   :  { %v6096_v22 = vpop.eup %6095  ;;  %6115 = vrcp.f32 %v4401_v23  ;;  %v4403_v20 = vadd.f32 1.0, %v6094_v35 }
0x1941   :  { %v6098_v25 = vpop.eup %6097  ;;  %4495 = vst.msk [vmem:[%s7950_s3 + $0x78] sm:$0xff] %vm4479_vm3, %v6096_v22  ;;  %6117 = vrcp.f32 %v4404_v38 }
0x1942   :  { %v6100_v40 = vpop.eup %6099  ;;  %4494 = vst.msk [vmem:[%s7950_s3 + $0x70] sm:$0xff] %vm4479_vm3, %v6098_v25  ;;  %6119 = vrcp.f32 %v4403_v20 }
0x1943   :  { %v6102_v49 = vpop.eup %6101  ;;  %v4406_v43 = vadd.f32 1.0, %v6100_v40  ;;  %6121 = vpow2.f32 %v4733_v42 }
0x1944   :  { %v6104_v9 = vpop.eup %6103  ;;  %v4405_v57 = vadd.f32 1.0, %v6102_v49 }
0x1945   :  { %v6106_v8 = vpop.eup %6105  ;;  %4497 = vst.msk [vmem:[%s7950_s3 + $0x88] sm:$0xff] %vm4479_vm3, %v6104_v9  ;;  %6123 = vrcp.f32 %v4406_v43 }
0x1946   :  { %v6108_v47 = vpop.eup %6107  ;;  %4496 = vst.msk [vmem:[%s7950_s3 + $0x80] sm:$0xff] %vm4479_vm3, %v6106_v8  ;;  %6125 = vrcp.f32 %v4405_v57 }
0x1947   :  { %v6110_v3 = vpop.eup %6109  ;;  %v4408_v34 = vadd.f32 1.0, %v6108_v47 }
0x1948   :  { %v6112_v36 = vpop.eup %6111  ;;  %v4407_v16 = vadd.f32 1.0, %v6110_v3 }
0x1949   :  { %v6114_v58 = vpop.eup %6113  ;;  %4499 = vst.msk [vmem:[%s7950_s3 + $0x98] sm:$0xff] %vm4479_vm3, %v6112_v36  ;;  %6127 = vrcp.f32 %v4408_v34 }
0x194a   :  { %v6116_v32 = vpop.eup %6115  ;;  %6129 = vrcp.f32 %v4407_v16  ;;  %v4410_v4 = vadd.f32 1.0, %v6114_v58 }
0x194b   :  { %v6118_v44 = vpop.eup %6117  ;;  %4498 = vst.msk [vmem:[%s7950_s3 + $0x90] sm:$0xff] %vm4479_vm3, %v6116_v32 }
0x194c   :  { %v6120_v56 = vpop.eup %6119  ;;  %4501 = vst.msk [vmem:[%s7950_s3 + $0xa8] sm:$0xff] %vm4479_vm3, %v6118_v44  ;;  %6131 = vrcp.f32 %v4410_v4 }
0x194d   :  { %v6122_v7 = vpop.eup %6121  ;;  %4500 = vst.msk [vmem:[%s7950_s3 + $0xa0] sm:$0xff] %vm4479_vm3, %v6120_v56 }
0x194e   :  { %v4409_v48 = vadd.f32 1.0, %v6122_v7 }
0x194f   :  { %v6124_v63 = vpop.eup %6123 }
0x1950   :  { %v6126_v62 = vpop.eup %6125  ;;  %4503 = vst.msk [vmem:[%s7950_s3 + $0xb8] sm:$0xff] %vm4479_vm3, %v6124_v63  ;;  %6133 = vrcp.f32 %v4409_v48 }
0x1951   :  { %4502 = vst.msk [vmem:[%s7950_s3 + $0xb0] sm:$0xff] %vm4479_vm3, %v6126_v62 }
0x1953   :  { %v6128_v41 = vpop.eup %6127 }
0x1954   :  { %v6130_v14 = vpop.eup %6129  ;;  %4505 = vst.msk [vmem:[%s7950_s3 + $0xc8] sm:$0xff] %vm4479_vm3, %v6128_v41 }
0x1955   :  { %4504 = vst.msk [vmem:[%s7950_s3 + $0xc0] sm:$0xff] %vm4479_vm3, %v6130_v14 }
0x1956   :  { %v6132_v18 = vpop.eup %6131 }
0x1957   :  { %4507 = vst.msk [vmem:[%s7950_s3 + $0xd8] sm:$0xff] %vm4479_vm3, %v6132_v18 }
0x195a   :  { %v6134_v24 = vpop.eup %6133 }
0x195b   :  { %4506 = vst.msk [vmem:[%s7950_s3 + $0xd0] sm:$0xff] %vm4479_vm3, %v6134_v24 }
0x1975   :  { %v5361_v12 = vpop.f32.mrb[60].mxu0 }
0x1976   :  { %v4274_v55 = vadd.f32 %v5361_v12, %v7785_v19  ;;  %v4268_v33 = vpop.f32.mrb[61].mxu0 }
0x1977   :  { %v4269_v52 = vadd.f32 %v7785_v19, %v4268_v33 }
0x1978   :  { %v4736_v28 = vmul.f32 -1.442695, %v4274_v55 }
0x1979   :  { %v4735_v10 = vmul.f32 -1.442695, %v4269_v52  ;;  %v5364_v45 = vpop.f32.mrb[62].mxu0 }
0x197a   :  { %6135 = vpow2.f32 %v4736_v28  ;;  %v4284_v27 = vadd.f32 %v5364_v45, %v7785_v19  ;;  %v4278_v46 = vpop.f32.mrb[63].mxu0 }
0x197b   :  { %6137 = vpow2.f32 %v4735_v10  ;;  %v4279_v59 = vadd.f32 %v7785_v19, %v4278_v46 }
0x197c   :  { %v4738_v21 = vmul.f32 -1.442695, %v4284_v27 }
0x197d   :  { %v4737_v61 = vmul.f32 -1.442695, %v4279_v59 }
0x197e   :  { %6139 = vpow2.f32 %v4738_v21 }
0x197f   :  { %6141 = vpow2.f32 %v4737_v61 }
0x1984   :  { %v6136_v29 = vpop.eup %6135 }
0x1985   :  { %v6138_v15 = vpop.eup %6137  ;;  %v4412_v50 = vadd.f32 1.0, %v6136_v29 }
0x1986   :  { %v4411_v0 = vadd.f32 1.0, %v6138_v15 }
0x1987   :  { %6143 = vrcp.f32 %v4412_v50 }
0x1988   :  { %v6140_v31 = vpop.eup %6139  ;;  %6145 = vrcp.f32 %v4411_v0 }
0x1989   :  { %v6142_v60 = vpop.eup %6141  ;;  %v4414_v2 = vadd.f32 1.0, %v6140_v31 }
0x198a   :  { %v4413_v5 = vadd.f32 1.0, %v6142_v60 }
0x198b   :  { %6147 = vrcp.f32 %v4414_v2 }
0x198c   :  { %6149 = vrcp.f32 %v4413_v5 }
0x1991   :  { %v6144_v11 = vpop.eup %6143 }
0x1992   :  { %v6146_v53 = vpop.eup %6145  ;;  %4509 = vst.msk [vmem:[%s7950_s3 + $0xe8] sm:$0xff] %vm4479_vm3, %v6144_v11 }
0x1993   :  { %4508 = vst.msk [vmem:[%s7950_s3 + $0xe0] sm:$0xff] %vm4479_vm3, %v6146_v53 }
0x1995   :  { %v6148_v19 = vpop.eup %6147 }
0x1996   :  { %v6150_v1 = vpop.eup %6149  ;;  %4511 = vst.msk [vmem:[%s7950_s3 + $0xf8] sm:$0xff] %vm4479_vm3, %v6148_v19 }
0x1997   :  { %4510 = vst.msk [vmem:[%s7950_s3 + $0xf0] sm:$0xff] %vm4479_vm3, %v6150_v1 }

</bundles_post_ra>
